<compile_context>
chip_gen: v7x
topology: tpu7x:2x2x1
jax: 0.10.0
libtpu: 0.0.40
codegen_flags: <defaults>
</compile_context>

<pallas_src>
import numpy as np
import jax
import jax.numpy as jnp
from jax.experimental import pallas as pl
from jax.experimental.pallas import tpu as pltpu

BN_EPS = 1e-5


# ----------------------------- fused kernel -----------------------------

def _fused_kernel(xsh_ref, wbe_ref, wbo_ref, mask1_ref, g1_ref, g1t_ref, bn1_ref,
                  e1_ref, w2e_ref, w2o_ref, g2e_ref, g2et_ref, g2o_ref, g2ot_ref,
                  bn2_ref, e2_ref, eq_ref, wfc1_ref, fc1b_ref, wfc2_ref, b2n_ref,
                  o_ref):
    f32 = jnp.float32
    B = o_ref.shape[0]

    def mm(a, b):
        return jnp.dot(a, b, preferred_element_type=f32)

    # ---- conv1 (3x3, valid): 3 row-shifted slabs x banded weights ----------------
    # xsh_ref[kh] rows = (b, oh), lanes = (w, c); wbe/wbo give lanes (pw, out_ch)
    # for output columns ow = 2*pw (even) / ow = 2*pw+1 (odd).
    y1e = (mm(xsh_ref[0], wbe_ref[0]) + mm(xsh_ref[1], wbe_ref[1])
           + mm(xsh_ref[2], wbe_ref[2]))                      # [B*32, 300]
    y1o = (mm(xsh_ref[0], wbo_ref[0]) + mm(xsh_ref[1], wbo_ref[1])
           + mm(xsh_ref[2], wbo_ref[2]))                      # [B*32, 300]

    # ---- BatchNorm1 (training-mode batch stats) + ReLU ---------------------------
    # (conv1 bias omitted: it cancels exactly in the mean subtraction)
    m1 = mask1_ref[...]                                       # [B*32, 1], 1.0 for oh<30
    inv_n1 = 1.0 / (B * 900.0)
    s20 = mm(jnp.sum(y1e * m1, axis=0, keepdims=True)
             + jnp.sum(y1o * m1, axis=0, keepdims=True), g1_ref[...])          # [1,20]
    q20 = mm(jnp.sum(y1e * y1e * m1, axis=0, keepdims=True)
             + jnp.sum(y1o * y1o * m1, axis=0, keepdims=True), g1_ref[...])    # [1,20]
    mean1 = s20 * inv_n1
    var1 = jnp.maximum(q20 * inv_n1 - mean1 * mean1, 0.0)
    bn1 = bn1_ref[...]                                        # [2,20] = (gamma; beta)
    a1 = bn1[0:1, :] * jax.lax.rsqrt(var1 + BN_EPS)
    c1 = bn1[1:2, :] - mean1 * a1
    a1w = mm(a1, g1t_ref[...])                                # tile to [1,300]
    c1w = mm(c1, g1t_ref[...])
    y1e = jnp.maximum(y1e * a1w + c1w, 0.0)
    y1o = jnp.maximum(y1o * a1w + c1w, 0.0)

    # ---- MaxPool1 (2x2): rows via selection matmuls, cols via even/odd split -----
    e10 = e1_ref[0]
    e11 = e1_ref[1]                                           # [B*15, B*32]
    p1 = jnp.maximum(jnp.maximum(mm(e10, y1e), mm(e11, y1e)),
                     jnp.maximum(mm(e10, y1o), mm(e11, y1o)))  # [B*15, 300]

    # ---- conv2 (1x1), split into even / odd pw columns (bias cancels in BN2) -----
    y2e = mm(p1, w2e_ref[...])                                # [B*15, 40]  pw=0,2,..,14
    y2o = mm(p1, w2o_ref[...])                                # [B*15, 35]  pw=1,3,..,13

    # ---- BatchNorm2 (training-mode batch stats) + ReLU ---------------------------
    inv_n2 = 1.0 / (B * 225.0)
    s5 = (mm(jnp.sum(y2e, axis=0, keepdims=True), g2e_ref[...])
          + mm(jnp.sum(y2o, axis=0, keepdims=True), g2o_ref[...]))             # [1,5]
    q5 = (mm(jnp.sum(y2e * y2e, axis=0, keepdims=True), g2e_ref[...])
          + mm(jnp.sum(y2o * y2o, axis=0, keepdims=True), g2o_ref[...]))       # [1,5]
    mean2 = s5 * inv_n2
    var2 = jnp.maximum(q5 * inv_n2 - mean2 * mean2, 0.0)
    bn2 = bn2_ref[...]
    a2 = bn2[0:1, :] * jax.lax.rsqrt(var2 + BN_EPS)
    c2 = bn2[1:2, :] - mean2 * a2
    y2e = jnp.maximum(y2e * mm(a2, g2et_ref[...]) + mm(c2, g2et_ref[...]), 0.0)
    y2o = jnp.maximum(y2o * mm(a2, g2ot_ref[...]) + mm(c2, g2ot_ref[...]), 0.0)

    # ---- MaxPool2 (2x2) ----------------------------------------------------------
    y2ec = y2e[:, 0:35]                 # drop pw=14 column (only needed for BN2 stats)
    e20 = e2_ref[0]
    e21 = e2_ref[1]                                           # [B*7, B*15]
    p2 = jnp.maximum(jnp.maximum(mm(e20, y2ec), mm(e21, y2ec)),
                     jnp.maximum(mm(e20, y2o), mm(e21, y2o)))  # [B*7, 35]

    # ---- Flatten + fc1 + ReLU (flatten folded into 7 row-gather matmuls) ---------
    h = fc1b_ref[...] + mm(mm(eq_ref[0], p2), wfc1_ref[0])    # [B, 40]
    for qh in range(1, 7):
        h = h + mm(mm(eq_ref[qh], p2), wfc1_ref[qh])
    h = jnp.maximum(h, 0.0)

    # ---- fc2 + NoiseLayer (bias+noise pre-summed) + LogSoftmax(dim=-1) ------------
    z = mm(h, wfc2_ref[...]) + b2n_ref[...]                   # [B, 10]
    zmax = jnp.max(z, axis=-1, keepdims=True)
    lse = zmax + jnp.log(jnp.sum(jnp.exp(z - zmax), axis=-1, keepdims=True))
    o_ref[...] = z - lse


# ----------------------------- parameter prep (run once) -----------------------------

def init_params(key):
    ks = jax.random.split(key, 8)

    def rn(k, shape, scale):
        return jax.random.normal(k, shape, jnp.float32) * scale

    return dict(
        conv1_w=rn(ks[0], (20, 3, 3, 3), 0.1),
        conv1_b=rn(ks[1], (20,), 0.1),     # unused: cancels in training-mode BN1
        bn1_g=jnp.ones((20,), jnp.float32),
        bn1_b=jnp.zeros((20,), jnp.float32),
        conv2_w=rn(ks[2], (5, 20, 1, 1), 0.1),
        conv2_b=rn(ks[3], (5,), 0.1),      # unused: cancels in training-mode BN2
        bn2_g=jnp.ones((5,), jnp.float32),
        bn2_b=jnp.zeros((5,), jnp.float32),
        fc1_w=rn(ks[4], (40, 245), 0.05),
        fc1_b=rn(ks[5], (40,), 0.05),
        fc2_w=rn(ks[6], (10, 40), 0.05),
        fc2_b=rn(ks[7], (10,), 0.05),
    )


def prepare_params(params, batch):
    """One-time weight repacking for the fused kernel (hoisted out of the forward)."""
    B = batch

    # conv1 -> banded matmul weights; even / odd output-column split.
    # wbe[kh, w*3+c, pw*20+o] = conv1_w[o, c, kh, w-2*pw]   (if 0 <= w-2*pw <= 2)
    w1 = params["conv1_w"]                                   # [o, c, kh, kw]
    pe = np.zeros((3, 32, 15), np.float32)                   # [kw, w, pw] : w = 2pw+kw
    po = np.zeros((3, 32, 15), np.float32)                   # [kw, w, pw] : w = 2pw+1+kw
    for kw in range(3):
        for pw in range(15):
            pe[kw, 2 * pw + kw, pw] = 1.0
            po[kw, 2 * pw + 1 + kw, pw] = 1.0
    wbe = jnp.einsum("kwp,ocak->awcpo", jnp.asarray(pe), w1).reshape(3, 96, 300)
    wbo = jnp.einsum("kwp,ocak->awcpo", jnp.asarray(po), w1).reshape(3, 96, 300)

    # per-channel group-sum / broadcast matrices (lane layout is (spatial, channel))
    g1 = jnp.asarray(np.tile(np.eye(20, dtype=np.float32), (15, 1)))   # [300, 20]
    g2e = jnp.asarray(np.tile(np.eye(5, dtype=np.float32), (8, 1)))    # [40, 5]
    g2o = jnp.asarray(np.tile(np.eye(5, dtype=np.float32), (7, 1)))    # [35, 5]

    # conv2 (1x1) as block matrices that also pick even / odd pw columns
    w2mat = params["conv2_w"].reshape(5, 20).T                          # [c, o2]
    qe = np.zeros((15, 8), np.float32)
    qo = np.zeros((15, 7), np.float32)
    for q in range(8):
        qe[2 * q, q] = 1.0
    for q in range(7):
        qo[2 * q + 1, q] = 1.0
    w2e = jnp.einsum("pq,co->pcqo", jnp.asarray(qe), w2mat).reshape(300, 40)
    w2o = jnp.einsum("pq,co->pcqo", jnp.asarray(qo), w2mat).reshape(300, 35)

    # row-validity mask (conv1 rows h<30) and row-selection matrices for the pools/fc1
    mask1 = ((np.arange(B * 32) % 32) < 30).astype(np.float32)[:, None]
    e1 = np.zeros((2, B * 15, B * 32), np.float32)
    e2 = np.zeros((2, B * 7, B * 15), np.float32)
    eq = np.zeros((7, B, B * 7), np.float32)
    for dh in range(2):
        for b in range(B):
            for ph in range(15):
                e1[dh, b * 15 + ph, b * 32 + 2 * ph + dh] = 1.0
            for qh in range(7):
                e2[dh, b * 7 + qh, b * 15 + 2 * qh + dh] = 1.0
    for qh in range(7):
        for b in range(B):
            eq[qh, b, b * 7 + qh] = 1.0

    # fc1 weights rearranged from torch's (c2, qh, qw) flatten order to (qh, qw, c2)
    wfc1 = params["fc1_w"].reshape(40, 5, 7, 7).transpose(2, 3, 1, 0).reshape(7, 35, 40)

    return dict(
        wbe=wbe, wbo=wbo,
        g1=g1, g1t=g1.T,
        bn1=jnp.stack([params["bn1_g"], params["bn1_b"]]),
        mask1=jnp.asarray(mask1), e1=jnp.asarray(e1),
        w2e=w2e, w2o=w2o,
        g2e=g2e, g2et=g2e.T, g2o=g2o, g2ot=g2o.T,
        bn2=jnp.stack([params["bn2_g"], params["bn2_b"]]),
        e2=jnp.asarray(e2), eq=jnp.asarray(eq),
        wfc1=wfc1, fc1_b=params["fc1_b"][None, :],
        wfc2=params["fc2_w"].T, fc2_b=params["fc2_b"][None, :],
    )


# ----------------------------- jit'ed forward -----------------------------

@jax.jit
def net_forward(prep, x, noise_key):
    B = x.shape[0]
    R1 = B * 32

    # NCHW -> rows=(b,h), lanes=(w,c); 2 zero pad rows; 3 row-shifted views for kh=0,1,2.
    x2d = jnp.transpose(x, (0, 2, 3, 1)).reshape(R1, 96)
    x2dp = jnp.concatenate([x2d, jnp.zeros((2, 96), jnp.float32)], axis=0)
    xsh = jnp.stack([x2dp[k:k + R1] for k in range(3)], axis=0)        # [3, B*32, 96]

    # TODO(synk): torch.randn's RNG stream cannot be reproduced bit-exactly; the noise
    # vector is drawn with jax.random (same shape / std / broadcast-over-batch semantics).
    noise = jax.random.normal(noise_key, (1, 10), jnp.float32) * 0.02
    b2n = prep["fc2_b"] + noise

    args = (xsh, prep["wbe"], prep["wbo"], prep["mask1"],
            prep["g1"], prep["g1t"], prep["bn1"], prep["e1"],
            prep["w2e"], prep["w2o"], prep["g2e"], prep["g2et"],
            prep["g2o"], prep["g2ot"], prep["bn2"], prep["e2"],
            prep["eq"], prep["wfc1"], prep["fc1_b"], prep["wfc2"], b2n)

    flops = 2 * (6 * R1 * 96 * 300 + 4 * (B * 15) * R1 * 300 + (B * 15) * 300 * 75
                 + 4 * (B * 7) * (B * 15) * 35 + 7 * (B * (B * 7) * 35 + B * 35 * 40)
                 + B * 40 * 10)
    bytes_accessed = 4 * (sum(int(np.prod(a.shape)) for a in args) + B * 10)

    return pl.pallas_call(
        _fused_kernel,
        out_shape=jax.ShapeDtypeStruct((B, 10), jnp.float32),
        in_specs=[pl.BlockSpec(memory_space=pltpu.MemorySpace.VMEM) for _ in args],
        out_specs=pl.BlockSpec(memory_space=pltpu.MemorySpace.VMEM),
        cost_estimate=pl.CostEstimate(flops=int(flops), transcendentals=64,
                                      bytes_accessed=int(bytes_accessed)),
    )(*args)


if __name__ == "__main__":
    key = jax.random.PRNGKey(0)
    pkey, xkey, nkey = jax.random.split(key, 3)
    params = init_params(pkey)
    x = jax.random.normal(xkey, (2, 3, 32, 32), jnp.float32)   # CIFAR-10 sized input
    prep = prepare_params(params, batch=x.shape[0])            # one-time weight repack
    out = jax.block_until_ready(net_forward(prep, x, nkey))
    assert out.shape == (2, 10) and out.dtype == jnp.float32
    assert bool(jnp.all(jnp.isfinite(out)))
    assert bool(jnp.allclose(jnp.sum(jnp.exp(out), axis=-1), 1.0, atol=1e-4))
    print("KERNEL_OK")
</pallas_src>

<mosaic_0001>
module attributes {stable_mosaic.version = 11 : i64} {
  func.func @_fused_kernel(%arg0: memref<3x64x96xf32, #tpu.memory_space<vmem>>, %arg1: memref<3x96x300xf32, #tpu.memory_space<vmem>>, %arg2: memref<3x96x300xf32, #tpu.memory_space<vmem>>, %arg3: memref<64x1xf32, #tpu.memory_space<vmem>>, %arg4: memref<300x20xf32, #tpu.memory_space<vmem>>, %arg5: memref<20x300xf32, #tpu.memory_space<vmem>>, %arg6: memref<2x20xf32, #tpu.memory_space<vmem>>, %arg7: memref<2x30x64xf32, #tpu.memory_space<vmem>>, %arg8: memref<300x40xf32, #tpu.memory_space<vmem>>, %arg9: memref<300x35xf32, #tpu.memory_space<vmem>>, %arg10: memref<40x5xf32, #tpu.memory_space<vmem>>, %arg11: memref<5x40xf32, #tpu.memory_space<vmem>>, %arg12: memref<35x5xf32, #tpu.memory_space<vmem>>, %arg13: memref<5x35xf32, #tpu.memory_space<vmem>>, %arg14: memref<2x5xf32, #tpu.memory_space<vmem>>, %arg15: memref<2x14x30xf32, #tpu.memory_space<vmem>>, %arg16: memref<7x2x14xf32, #tpu.memory_space<vmem>>, %arg17: memref<7x35x40xf32, #tpu.memory_space<vmem>>, %arg18: memref<1x40xf32, #tpu.memory_space<vmem>>, %arg19: memref<40x10xf32, #tpu.memory_space<vmem>>, %arg20: memref<1x10xf32, #tpu.memory_space<vmem>>, %arg21: memref<2x10xf32, #tpu.memory_space<vmem>>) attributes {dimension_semantics = [], scalar_prefetch = 0 : i64, scratch_operands = 0 : i64, tpu.core_type = #tpu.core_type<tc>} {
    %c0 = arith.constant 0 : index
    %c0_0 = arith.constant 0 : index
    %c0_1 = arith.constant 0 : index
    %0 = vector.load %arg0[%c0, %c0_0, %c0_1] : memref<3x64x96xf32, #tpu.memory_space<vmem>>, vector<1x64x96xf32>
    %1 = vector.shape_cast %0 : vector<1x64x96xf32> to vector<64x96xf32>
    %c0_2 = arith.constant 0 : index
    %c0_3 = arith.constant 0 : index
    %c0_4 = arith.constant 0 : index
    %2 = vector.load %arg1[%c0_2, %c0_3, %c0_4] : memref<3x96x300xf32, #tpu.memory_space<vmem>>, vector<1x96x300xf32>
    %3 = vector.shape_cast %2 : vector<1x96x300xf32> to vector<96x300xf32>
    %cst = arith.constant dense<0.000000e+00> : vector<64x300xf32>
    %4 = tpu.matmul %1, %3, %cst {dimension_numbers = #tpu.dot_dimension_numbers<[1], [0], [0], [1], [0, 0, 1, 1], [], []>} : vector<64x96xf32>, vector<96x300xf32>, vector<64x300xf32> -> vector<64x300xf32>
    %c1 = arith.constant 1 : index
    %c0_5 = arith.constant 0 : index
    %c0_6 = arith.constant 0 : index
    %5 = vector.load %arg0[%c1, %c0_5, %c0_6] : memref<3x64x96xf32, #tpu.memory_space<vmem>>, vector<1x64x96xf32>
    %6 = vector.shape_cast %5 : vector<1x64x96xf32> to vector<64x96xf32>
    %c1_7 = arith.constant 1 : index
    %c0_8 = arith.constant 0 : index
    %c0_9 = arith.constant 0 : index
    %7 = vector.load %arg1[%c1_7, %c0_8, %c0_9] : memref<3x96x300xf32, #tpu.memory_space<vmem>>, vector<1x96x300xf32>
    %8 = vector.shape_cast %7 : vector<1x96x300xf32> to vector<96x300xf32>
    %cst_10 = arith.constant dense<0.000000e+00> : vector<64x300xf32>
    %9 = tpu.matmul %6, %8, %cst_10 {dimension_numbers = #tpu.dot_dimension_numbers<[1], [0], [0], [1], [0, 0, 1, 1], [], []>} : vector<64x96xf32>, vector<96x300xf32>, vector<64x300xf32> -> vector<64x300xf32>
    %10 = arith.addf %4, %9 : vector<64x300xf32>
    %c2 = arith.constant 2 : index
    %c0_11 = arith.constant 0 : index
    %c0_12 = arith.constant 0 : index
    %11 = vector.load %arg0[%c2, %c0_11, %c0_12] : memref<3x64x96xf32, #tpu.memory_space<vmem>>, vector<1x64x96xf32>
    %12 = vector.shape_cast %11 : vector<1x64x96xf32> to vector<64x96xf32>
    %c2_13 = arith.constant 2 : index
    %c0_14 = arith.constant 0 : index
    %c0_15 = arith.constant 0 : index
    %13 = vector.load %arg1[%c2_13, %c0_14, %c0_15] : memref<3x96x300xf32, #tpu.memory_space<vmem>>, vector<1x96x300xf32>
    %14 = vector.shape_cast %13 : vector<1x96x300xf32> to vector<96x300xf32>
    %cst_16 = arith.constant dense<0.000000e+00> : vector<64x300xf32>
    %15 = tpu.matmul %12, %14, %cst_16 {dimension_numbers = #tpu.dot_dimension_numbers<[1], [0], [0], [1], [0, 0, 1, 1], [], []>} : vector<64x96xf32>, vector<96x300xf32>, vector<64x300xf32> -> vector<64x300xf32>
    %16 = arith.addf %10, %15 : vector<64x300xf32>
    %c0_17 = arith.constant 0 : index
    %c0_18 = arith.constant 0 : index
    %c0_19 = arith.constant 0 : index
    %17 = vector.load %arg0[%c0_17, %c0_18, %c0_19] : memref<3x64x96xf32, #tpu.memory_space<vmem>>, vector<1x64x96xf32>
    %18 = vector.shape_cast %17 : vector<1x64x96xf32> to vector<64x96xf32>
    %c0_20 = arith.constant 0 : index
    %c0_21 = arith.constant 0 : index
    %c0_22 = arith.constant 0 : index
    %19 = vector.load %arg2[%c0_20, %c0_21, %c0_22] : memref<3x96x300xf32, #tpu.memory_space<vmem>>, vector<1x96x300xf32>
    %20 = vector.shape_cast %19 : vector<1x96x300xf32> to vector<96x300xf32>
    %cst_23 = arith.constant dense<0.000000e+00> : vector<64x300xf32>
    %21 = tpu.matmul %18, %20, %cst_23 {dimension_numbers = #tpu.dot_dimension_numbers<[1], [0], [0], [1], [0, 0, 1, 1], [], []>} : vector<64x96xf32>, vector<96x300xf32>, vector<64x300xf32> -> vector<64x300xf32>
    %c1_24 = arith.constant 1 : index
    %c0_25 = arith.constant 0 : index
    %c0_26 = arith.constant 0 : index
    %22 = vector.load %arg0[%c1_24, %c0_25, %c0_26] : memref<3x64x96xf32, #tpu.memory_space<vmem>>, vector<1x64x96xf32>
    %23 = vector.shape_cast %22 : vector<1x64x96xf32> to vector<64x96xf32>
    %c1_27 = arith.constant 1 : index
    %c0_28 = arith.constant 0 : index
    %c0_29 = arith.constant 0 : index
    %24 = vector.load %arg2[%c1_27, %c0_28, %c0_29] : memref<3x96x300xf32, #tpu.memory_space<vmem>>, vector<1x96x300xf32>
    %25 = vector.shape_cast %24 : vector<1x96x300xf32> to vector<96x300xf32>
    %cst_30 = arith.constant dense<0.000000e+00> : vector<64x300xf32>
    %26 = tpu.matmul %23, %25, %cst_30 {dimension_numbers = #tpu.dot_dimension_numbers<[1], [0], [0], [1], [0, 0, 1, 1], [], []>} : vector<64x96xf32>, vector<96x300xf32>, vector<64x300xf32> -> vector<64x300xf32>
    %27 = arith.addf %21, %26 : vector<64x300xf32>
    %c2_31 = arith.constant 2 : index
    %c0_32 = arith.constant 0 : index
    %c0_33 = arith.constant 0 : index
    %28 = vector.load %arg0[%c2_31, %c0_32, %c0_33] : memref<3x64x96xf32, #tpu.memory_space<vmem>>, vector<1x64x96xf32>
    %29 = vector.shape_cast %28 : vector<1x64x96xf32> to vector<64x96xf32>
    %c2_34 = arith.constant 2 : index
    %c0_35 = arith.constant 0 : index
    %c0_36 = arith.constant 0 : index
    %30 = vector.load %arg2[%c2_34, %c0_35, %c0_36] : memref<3x96x300xf32, #tpu.memory_space<vmem>>, vector<1x96x300xf32>
    %31 = vector.shape_cast %30 : vector<1x96x300xf32> to vector<96x300xf32>
    %cst_37 = arith.constant dense<0.000000e+00> : vector<64x300xf32>
    %32 = tpu.matmul %29, %31, %cst_37 {dimension_numbers = #tpu.dot_dimension_numbers<[1], [0], [0], [1], [0, 0, 1, 1], [], []>} : vector<64x96xf32>, vector<96x300xf32>, vector<64x300xf32> -> vector<64x300xf32>
    %33 = arith.addf %27, %32 : vector<64x300xf32>
    %c0_38 = arith.constant 0 : index
    %c0_39 = arith.constant 0 : index
    %34 = vector.load %arg3[%c0_38, %c0_39] : memref<64x1xf32, #tpu.memory_space<vmem>>, vector<64x1xf32>
    %35 = vector.broadcast %34 : vector<64x1xf32> to vector<64x300xf32>
    %36 = arith.mulf %16, %35 : vector<64x300xf32>
    %cst_40 = arith.constant dense<0.000000e+00> : vector<300xf32>
    %37 = vector.multi_reduction <add>, %36, %cst_40 [0] : vector<64x300xf32> to vector<300xf32>
    %38 = vector.shape_cast %37 : vector<300xf32> to vector<1x300xf32>
    %39 = vector.broadcast %34 : vector<64x1xf32> to vector<64x300xf32>
    %40 = arith.mulf %33, %39 : vector<64x300xf32>
    %cst_41 = arith.constant dense<0.000000e+00> : vector<300xf32>
    %41 = vector.multi_reduction <add>, %40, %cst_41 [0] : vector<64x300xf32> to vector<300xf32>
    %42 = vector.shape_cast %41 : vector<300xf32> to vector<1x300xf32>
    %43 = arith.addf %38, %42 : vector<1x300xf32>
    %c0_42 = arith.constant 0 : index
    %c0_43 = arith.constant 0 : index
    %44 = vector.load %arg4[%c0_42, %c0_43] : memref<300x20xf32, #tpu.memory_space<vmem>>, vector<300x20xf32>
    %cst_44 = arith.constant dense<0.000000e+00> : vector<1x20xf32>
    %45 = tpu.matmul %43, %44, %cst_44 {dimension_numbers = #tpu.dot_dimension_numbers<[1], [0], [0], [1], [0, 0, 1, 1], [], []>} : vector<1x300xf32>, vector<300x20xf32>, vector<1x20xf32> -> vector<1x20xf32>
    %46 = arith.mulf %16, %16 : vector<64x300xf32>
    %47 = vector.broadcast %34 : vector<64x1xf32> to vector<64x300xf32>
    %48 = arith.mulf %46, %47 : vector<64x300xf32>
    %cst_45 = arith.constant dense<0.000000e+00> : vector<300xf32>
    %49 = vector.multi_reduction <add>, %48, %cst_45 [0] : vector<64x300xf32> to vector<300xf32>
    %50 = vector.shape_cast %49 : vector<300xf32> to vector<1x300xf32>
    %51 = arith.mulf %33, %33 : vector<64x300xf32>
    %52 = vector.broadcast %34 : vector<64x1xf32> to vector<64x300xf32>
    %53 = arith.mulf %51, %52 : vector<64x300xf32>
    %cst_46 = arith.constant dense<0.000000e+00> : vector<300xf32>
    %54 = vector.multi_reduction <add>, %53, %cst_46 [0] : vector<64x300xf32> to vector<300xf32>
    %55 = vector.shape_cast %54 : vector<300xf32> to vector<1x300xf32>
    %56 = arith.addf %50, %55 : vector<1x300xf32>
    %c0_47 = arith.constant 0 : index
    %c0_48 = arith.constant 0 : index
    %57 = vector.load %arg4[%c0_47, %c0_48] : memref<300x20xf32, #tpu.memory_space<vmem>>, vector<300x20xf32>
    %cst_49 = arith.constant dense<0.000000e+00> : vector<1x20xf32>
    %58 = tpu.matmul %56, %57, %cst_49 {dimension_numbers = #tpu.dot_dimension_numbers<[1], [0], [0], [1], [0, 0, 1, 1], [], []>} : vector<1x300xf32>, vector<300x20xf32>, vector<1x20xf32> -> vector<1x20xf32>
    %cst_50 = arith.constant 5.55555569E-4 : f32
    %59 = vector.broadcast %cst_50 : f32 to vector<1x20xf32>
    %60 = arith.mulf %45, %59 : vector<1x20xf32>
    %cst_51 = arith.constant 5.55555569E-4 : f32
    %61 = vector.broadcast %cst_51 : f32 to vector<1x20xf32>
    %62 = arith.mulf %58, %61 : vector<1x20xf32>
    %63 = arith.mulf %60, %60 : vector<1x20xf32>
    %64 = arith.subf %62, %63 : vector<1x20xf32>
    %cst_52 = arith.constant 0.000000e+00 : f32
    %65 = vector.broadcast %cst_52 : f32 to vector<1x20xf32>
    %66 = arith.maximumf %64, %65 : vector<1x20xf32>
    %c0_53 = arith.constant 0 : index
    %c0_54 = arith.constant 0 : index
    %67 = vector.load %arg6[%c0_53, %c0_54] : memref<2x20xf32, #tpu.memory_space<vmem>>, vector<2x20xf32>
    %68 = vector.extract_strided_slice %67 {offsets = [0, 0], sizes = [1, 20], strides = [1, 1]} : vector<2x20xf32> to vector<1x20xf32>
    %cst_55 = arith.constant 9.99999974E-6 : f32
    %69 = vector.broadcast %cst_55 : f32 to vector<1x20xf32>
    %70 = arith.addf %66, %69 : vector<1x20xf32>
    %71 = math.rsqrt %70 : vector<1x20xf32>
    %72 = arith.mulf %68, %71 : vector<1x20xf32>
    %73 = vector.extract_strided_slice %67 {offsets = [1, 0], sizes = [1, 20], strides = [1, 1]} : vector<2x20xf32> to vector<1x20xf32>
    %74 = arith.mulf %60, %72 : vector<1x20xf32>
    %75 = arith.subf %73, %74 : vector<1x20xf32>
    %c0_56 = arith.constant 0 : index
    %c0_57 = arith.constant 0 : index
    %76 = vector.load %arg5[%c0_56, %c0_57] : memref<20x300xf32, #tpu.memory_space<vmem>>, vector<20x300xf32>
    %cst_58 = arith.constant dense<0.000000e+00> : vector<1x300xf32>
    %77 = tpu.matmul %72, %76, %cst_58 {dimension_numbers = #tpu.dot_dimension_numbers<[1], [0], [0], [1], [0, 0, 1, 1], [], []>} : vector<1x20xf32>, vector<20x300xf32>, vector<1x300xf32> -> vector<1x300xf32>
    %c0_59 = arith.constant 0 : index
    %c0_60 = arith.constant 0 : index
    %78 = vector.load %arg5[%c0_59, %c0_60] : memref<20x300xf32, #tpu.memory_space<vmem>>, vector<20x300xf32>
    %cst_61 = arith.constant dense<0.000000e+00> : vector<1x300xf32>
    %79 = tpu.matmul %75, %78, %cst_61 {dimension_numbers = #tpu.dot_dimension_numbers<[1], [0], [0], [1], [0, 0, 1, 1], [], []>} : vector<1x20xf32>, vector<20x300xf32>, vector<1x300xf32> -> vector<1x300xf32>
    %80 = vector.broadcast %77 : vector<1x300xf32> to vector<64x300xf32>
    %81 = arith.mulf %16, %80 : vector<64x300xf32>
    %82 = vector.broadcast %79 : vector<1x300xf32> to vector<64x300xf32>
    %83 = arith.addf %81, %82 : vector<64x300xf32>
    %cst_62 = arith.constant 0.000000e+00 : f32
    %84 = vector.broadcast %cst_62 : f32 to vector<64x300xf32>
    %85 = arith.maximumf %83, %84 : vector<64x300xf32>
    %86 = vector.broadcast %77 : vector<1x300xf32> to vector<64x300xf32>
    %87 = arith.mulf %33, %86 : vector<64x300xf32>
    %88 = vector.broadcast %79 : vector<1x300xf32> to vector<64x300xf32>
    %89 = arith.addf %87, %88 : vector<64x300xf32>
    %cst_63 = arith.constant 0.000000e+00 : f32
    %90 = vector.broadcast %cst_63 : f32 to vector<64x300xf32>
    %91 = arith.maximumf %89, %90 : vector<64x300xf32>
    %c0_64 = arith.constant 0 : index
    %c0_65 = arith.constant 0 : index
    %c0_66 = arith.constant 0 : index
    %92 = vector.load %arg7[%c0_64, %c0_65, %c0_66] : memref<2x30x64xf32, #tpu.memory_space<vmem>>, vector<1x30x64xf32>
    %93 = vector.shape_cast %92 : vector<1x30x64xf32> to vector<30x64xf32>
    %c1_67 = arith.constant 1 : index
    %c0_68 = arith.constant 0 : index
    %c0_69 = arith.constant 0 : index
    %94 = vector.load %arg7[%c1_67, %c0_68, %c0_69] : memref<2x30x64xf32, #tpu.memory_space<vmem>>, vector<1x30x64xf32>
    %95 = vector.shape_cast %94 : vector<1x30x64xf32> to vector<30x64xf32>
    %cst_70 = arith.constant dense<0.000000e+00> : vector<30x300xf32>
    %96 = tpu.matmul %93, %85, %cst_70 {dimension_numbers = #tpu.dot_dimension_numbers<[1], [0], [0], [1], [0, 0, 1, 1], [], []>} : vector<30x64xf32>, vector<64x300xf32>, vector<30x300xf32> -> vector<30x300xf32>
    %cst_71 = arith.constant dense<0.000000e+00> : vector<30x300xf32>
    %97 = tpu.matmul %95, %85, %cst_71 {dimension_numbers = #tpu.dot_dimension_numbers<[1], [0], [0], [1], [0, 0, 1, 1], [], []>} : vector<30x64xf32>, vector<64x300xf32>, vector<30x300xf32> -> vector<30x300xf32>
    %98 = arith.maximumf %96, %97 : vector<30x300xf32>
    %cst_72 = arith.constant dense<0.000000e+00> : vector<30x300xf32>
    %99 = tpu.matmul %93, %91, %cst_72 {dimension_numbers = #tpu.dot_dimension_numbers<[1], [0], [0], [1], [0, 0, 1, 1], [], []>} : vector<30x64xf32>, vector<64x300xf32>, vector<30x300xf32> -> vector<30x300xf32>
    %cst_73 = arith.constant dense<0.000000e+00> : vector<30x300xf32>
    %100 = tpu.matmul %95, %91, %cst_73 {dimension_numbers = #tpu.dot_dimension_numbers<[1], [0], [0], [1], [0, 0, 1, 1], [], []>} : vector<30x64xf32>, vector<64x300xf32>, vector<30x300xf32> -> vector<30x300xf32>
    %101 = arith.maximumf %99, %100 : vector<30x300xf32>
    %102 = arith.maximumf %98, %101 : vector<30x300xf32>
    %c0_74 = arith.constant 0 : index
    %c0_75 = arith.constant 0 : index
    %103 = vector.load %arg8[%c0_74, %c0_75] : memref<300x40xf32, #tpu.memory_space<vmem>>, vector<300x40xf32>
    %cst_76 = arith.constant dense<0.000000e+00> : vector<30x40xf32>
    %104 = tpu.matmul %102, %103, %cst_76 {dimension_numbers = #tpu.dot_dimension_numbers<[1], [0], [0], [1], [0, 0, 1, 1], [], []>} : vector<30x300xf32>, vector<300x40xf32>, vector<30x40xf32> -> vector<30x40xf32>
    %c0_77 = arith.constant 0 : index
    %c0_78 = arith.constant 0 : index
    %105 = vector.load %arg9[%c0_77, %c0_78] : memref<300x35xf32, #tpu.memory_space<vmem>>, vector<300x35xf32>
    %cst_79 = arith.constant dense<0.000000e+00> : vector<30x35xf32>
    %106 = tpu.matmul %102, %105, %cst_79 {dimension_numbers = #tpu.dot_dimension_numbers<[1], [0], [0], [1], [0, 0, 1, 1], [], []>} : vector<30x300xf32>, vector<300x35xf32>, vector<30x35xf32> -> vector<30x35xf32>
    %cst_80 = arith.constant dense<0.000000e+00> : vector<40xf32>
    %107 = vector.multi_reduction <add>, %104, %cst_80 [0] : vector<30x40xf32> to vector<40xf32>
    %108 = vector.shape_cast %107 : vector<40xf32> to vector<1x40xf32>
    %c0_81 = arith.constant 0 : index
    %c0_82 = arith.constant 0 : index
    %109 = vector.load %arg10[%c0_81, %c0_82] : memref<40x5xf32, #tpu.memory_space<vmem>>, vector<40x5xf32>
    %cst_83 = arith.constant dense<0.000000e+00> : vector<1x5xf32>
    %110 = tpu.matmul %108, %109, %cst_83 {dimension_numbers = #tpu.dot_dimension_numbers<[1], [0], [0], [1], [0, 0, 1, 1], [], []>} : vector<1x40xf32>, vector<40x5xf32>, vector<1x5xf32> -> vector<1x5xf32>
    %cst_84 = arith.constant dense<0.000000e+00> : vector<35xf32>
    %111 = vector.multi_reduction <add>, %106, %cst_84 [0] : vector<30x35xf32> to vector<35xf32>
    %112 = vector.shape_cast %111 : vector<35xf32> to vector<1x35xf32>
    %c0_85 = arith.constant 0 : index
    %c0_86 = arith.constant 0 : index
    %113 = vector.load %arg12[%c0_85, %c0_86] : memref<35x5xf32, #tpu.memory_space<vmem>>, vector<35x5xf32>
    %cst_87 = arith.constant dense<0.000000e+00> : vector<1x5xf32>
    %114 = tpu.matmul %112, %113, %cst_87 {dimension_numbers = #tpu.dot_dimension_numbers<[1], [0], [0], [1], [0, 0, 1, 1], [], []>} : vector<1x35xf32>, vector<35x5xf32>, vector<1x5xf32> -> vector<1x5xf32>
    %115 = arith.addf %110, %114 : vector<1x5xf32>
    %116 = arith.mulf %104, %104 : vector<30x40xf32>
    %cst_88 = arith.constant dense<0.000000e+00> : vector<40xf32>
    %117 = vector.multi_reduction <add>, %116, %cst_88 [0] : vector<30x40xf32> to vector<40xf32>
    %118 = vector.shape_cast %117 : vector<40xf32> to vector<1x40xf32>
    %c0_89 = arith.constant 0 : index
    %c0_90 = arith.constant 0 : index
    %119 = vector.load %arg10[%c0_89, %c0_90] : memref<40x5xf32, #tpu.memory_space<vmem>>, vector<40x5xf32>
    %cst_91 = arith.constant dense<0.000000e+00> : vector<1x5xf32>
    %120 = tpu.matmul %118, %119, %cst_91 {dimension_numbers = #tpu.dot_dimension_numbers<[1], [0], [0], [1], [0, 0, 1, 1], [], []>} : vector<1x40xf32>, vector<40x5xf32>, vector<1x5xf32> -> vector<1x5xf32>
    %121 = arith.mulf %106, %106 : vector<30x35xf32>
    %cst_92 = arith.constant dense<0.000000e+00> : vector<35xf32>
    %122 = vector.multi_reduction <add>, %121, %cst_92 [0] : vector<30x35xf32> to vector<35xf32>
    %123 = vector.shape_cast %122 : vector<35xf32> to vector<1x35xf32>
    %c0_93 = arith.constant 0 : index
    %c0_94 = arith.constant 0 : index
    %124 = vector.load %arg12[%c0_93, %c0_94] : memref<35x5xf32, #tpu.memory_space<vmem>>, vector<35x5xf32>
    %cst_95 = arith.constant dense<0.000000e+00> : vector<1x5xf32>
    %125 = tpu.matmul %123, %124, %cst_95 {dimension_numbers = #tpu.dot_dimension_numbers<[1], [0], [0], [1], [0, 0, 1, 1], [], []>} : vector<1x35xf32>, vector<35x5xf32>, vector<1x5xf32> -> vector<1x5xf32>
    %126 = arith.addf %120, %125 : vector<1x5xf32>
    %cst_96 = arith.constant 0.00222222228 : f32
    %127 = vector.broadcast %cst_96 : f32 to vector<1x5xf32>
    %128 = arith.mulf %115, %127 : vector<1x5xf32>
    %cst_97 = arith.constant 0.00222222228 : f32
    %129 = vector.broadcast %cst_97 : f32 to vector<1x5xf32>
    %130 = arith.mulf %126, %129 : vector<1x5xf32>
    %131 = arith.mulf %128, %128 : vector<1x5xf32>
    %132 = arith.subf %130, %131 : vector<1x5xf32>
    %cst_98 = arith.constant 0.000000e+00 : f32
    %133 = vector.broadcast %cst_98 : f32 to vector<1x5xf32>
    %134 = arith.maximumf %132, %133 : vector<1x5xf32>
    %c0_99 = arith.constant 0 : index
    %c0_100 = arith.constant 0 : index
    %135 = vector.load %arg14[%c0_99, %c0_100] : memref<2x5xf32, #tpu.memory_space<vmem>>, vector<2x5xf32>
    %136 = vector.extract_strided_slice %135 {offsets = [0, 0], sizes = [1, 5], strides = [1, 1]} : vector<2x5xf32> to vector<1x5xf32>
    %cst_101 = arith.constant 9.99999974E-6 : f32
    %137 = vector.broadcast %cst_101 : f32 to vector<1x5xf32>
    %138 = arith.addf %134, %137 : vector<1x5xf32>
    %139 = math.rsqrt %138 : vector<1x5xf32>
    %140 = arith.mulf %136, %139 : vector<1x5xf32>
    %141 = vector.extract_strided_slice %135 {offsets = [1, 0], sizes = [1, 5], strides = [1, 1]} : vector<2x5xf32> to vector<1x5xf32>
    %142 = arith.mulf %128, %140 : vector<1x5xf32>
    %143 = arith.subf %141, %142 : vector<1x5xf32>
    %c0_102 = arith.constant 0 : index
    %c0_103 = arith.constant 0 : index
    %144 = vector.load %arg11[%c0_102, %c0_103] : memref<5x40xf32, #tpu.memory_space<vmem>>, vector<5x40xf32>
    %cst_104 = arith.constant dense<0.000000e+00> : vector<1x40xf32>
    %145 = tpu.matmul %140, %144, %cst_104 {dimension_numbers = #tpu.dot_dimension_numbers<[1], [0], [0], [1], [0, 0, 1, 1], [], []>} : vector<1x5xf32>, vector<5x40xf32>, vector<1x40xf32> -> vector<1x40xf32>
    %146 = vector.broadcast %145 : vector<1x40xf32> to vector<30x40xf32>
    %147 = arith.mulf %104, %146 : vector<30x40xf32>
    %c0_105 = arith.constant 0 : index
    %c0_106 = arith.constant 0 : index
    %148 = vector.load %arg11[%c0_105, %c0_106] : memref<5x40xf32, #tpu.memory_space<vmem>>, vector<5x40xf32>
    %cst_107 = arith.constant dense<0.000000e+00> : vector<1x40xf32>
    %149 = tpu.matmul %143, %148, %cst_107 {dimension_numbers = #tpu.dot_dimension_numbers<[1], [0], [0], [1], [0, 0, 1, 1], [], []>} : vector<1x5xf32>, vector<5x40xf32>, vector<1x40xf32> -> vector<1x40xf32>
    %150 = vector.broadcast %149 : vector<1x40xf32> to vector<30x40xf32>
    %151 = arith.addf %147, %150 : vector<30x40xf32>
    %cst_108 = arith.constant 0.000000e+00 : f32
    %152 = vector.broadcast %cst_108 : f32 to vector<30x40xf32>
    %153 = arith.maximumf %151, %152 : vector<30x40xf32>
    %c0_109 = arith.constant 0 : index
    %c0_110 = arith.constant 0 : index
    %154 = vector.load %arg13[%c0_109, %c0_110] : memref<5x35xf32, #tpu.memory_space<vmem>>, vector<5x35xf32>
    %cst_111 = arith.constant dense<0.000000e+00> : vector<1x35xf32>
    %155 = tpu.matmul %140, %154, %cst_111 {dimension_numbers = #tpu.dot_dimension_numbers<[1], [0], [0], [1], [0, 0, 1, 1], [], []>} : vector<1x5xf32>, vector<5x35xf32>, vector<1x35xf32> -> vector<1x35xf32>
    %156 = vector.broadcast %155 : vector<1x35xf32> to vector<30x35xf32>
    %157 = arith.mulf %106, %156 : vector<30x35xf32>
    %c0_112 = arith.constant 0 : index
    %c0_113 = arith.constant 0 : index
    %158 = vector.load %arg13[%c0_112, %c0_113] : memref<5x35xf32, #tpu.memory_space<vmem>>, vector<5x35xf32>
    %cst_114 = arith.constant dense<0.000000e+00> : vector<1x35xf32>
    %159 = tpu.matmul %143, %158, %cst_114 {dimension_numbers = #tpu.dot_dimension_numbers<[1], [0], [0], [1], [0, 0, 1, 1], [], []>} : vector<1x5xf32>, vector<5x35xf32>, vector<1x35xf32> -> vector<1x35xf32>
    %160 = vector.broadcast %159 : vector<1x35xf32> to vector<30x35xf32>
    %161 = arith.addf %157, %160 : vector<30x35xf32>
    %cst_115 = arith.constant 0.000000e+00 : f32
    %162 = vector.broadcast %cst_115 : f32 to vector<30x35xf32>
    %163 = arith.maximumf %161, %162 : vector<30x35xf32>
    %164 = vector.extract_strided_slice %153 {offsets = [0, 0], sizes = [30, 35], strides = [1, 1]} : vector<30x40xf32> to vector<30x35xf32>
    %c0_116 = arith.constant 0 : index
    %c0_117 = arith.constant 0 : index
    %c0_118 = arith.constant 0 : index
    %165 = vector.load %arg15[%c0_116, %c0_117, %c0_118] : memref<2x14x30xf32, #tpu.memory_space<vmem>>, vector<1x14x30xf32>
    %166 = vector.shape_cast %165 : vector<1x14x30xf32> to vector<14x30xf32>
    %c1_119 = arith.constant 1 : index
    %c0_120 = arith.constant 0 : index
    %c0_121 = arith.constant 0 : index
    %167 = vector.load %arg15[%c1_119, %c0_120, %c0_121] : memref<2x14x30xf32, #tpu.memory_space<vmem>>, vector<1x14x30xf32>
    %168 = vector.shape_cast %167 : vector<1x14x30xf32> to vector<14x30xf32>
    %cst_122 = arith.constant dense<0.000000e+00> : vector<14x35xf32>
    %169 = tpu.matmul %166, %164, %cst_122 {dimension_numbers = #tpu.dot_dimension_numbers<[1], [0], [0], [1], [0, 0, 1, 1], [], []>} : vector<14x30xf32>, vector<30x35xf32>, vector<14x35xf32> -> vector<14x35xf32>
    %cst_123 = arith.constant dense<0.000000e+00> : vector<14x35xf32>
    %170 = tpu.matmul %168, %164, %cst_123 {dimension_numbers = #tpu.dot_dimension_numbers<[1], [0], [0], [1], [0, 0, 1, 1], [], []>} : vector<14x30xf32>, vector<30x35xf32>, vector<14x35xf32> -> vector<14x35xf32>
    %171 = arith.maximumf %169, %170 : vector<14x35xf32>
    %cst_124 = arith.constant dense<0.000000e+00> : vector<14x35xf32>
    %172 = tpu.matmul %166, %163, %cst_124 {dimension_numbers = #tpu.dot_dimension_numbers<[1], [0], [0], [1], [0, 0, 1, 1], [], []>} : vector<14x30xf32>, vector<30x35xf32>, vector<14x35xf32> -> vector<14x35xf32>
    %cst_125 = arith.constant dense<0.000000e+00> : vector<14x35xf32>
    %173 = tpu.matmul %168, %163, %cst_125 {dimension_numbers = #tpu.dot_dimension_numbers<[1], [0], [0], [1], [0, 0, 1, 1], [], []>} : vector<14x30xf32>, vector<30x35xf32>, vector<14x35xf32> -> vector<14x35xf32>
    %174 = arith.maximumf %172, %173 : vector<14x35xf32>
    %175 = arith.maximumf %171, %174 : vector<14x35xf32>
    %c0_126 = arith.constant 0 : index
    %c0_127 = arith.constant 0 : index
    %176 = vector.load %arg18[%c0_126, %c0_127] : memref<1x40xf32, #tpu.memory_space<vmem>>, vector<1x40xf32>
    %c0_128 = arith.constant 0 : index
    %c0_129 = arith.constant 0 : index
    %c0_130 = arith.constant 0 : index
    %177 = vector.load %arg16[%c0_128, %c0_129, %c0_130] : memref<7x2x14xf32, #tpu.memory_space<vmem>>, vector<1x2x14xf32>
    %178 = vector.shape_cast %177 : vector<1x2x14xf32> to vector<2x14xf32>
    %cst_131 = arith.constant dense<0.000000e+00> : vector<2x35xf32>
    %179 = tpu.matmul %178, %175, %cst_131 {dimension_numbers = #tpu.dot_dimension_numbers<[1], [0], [0], [1], [0, 0, 1, 1], [], []>} : vector<2x14xf32>, vector<14x35xf32>, vector<2x35xf32> -> vector<2x35xf32>
    %c0_132 = arith.constant 0 : index
    %c0_133 = arith.constant 0 : index
    %c0_134 = arith.constant 0 : index
    %180 = vector.load %arg17[%c0_132, %c0_133, %c0_134] : memref<7x35x40xf32, #tpu.memory_space<vmem>>, vector<1x35x40xf32>
    %181 = vector.shape_cast %180 : vector<1x35x40xf32> to vector<35x40xf32>
    %cst_135 = arith.constant dense<0.000000e+00> : vector<2x40xf32>
    %182 = tpu.matmul %179, %181, %cst_135 {dimension_numbers = #tpu.dot_dimension_numbers<[1], [0], [0], [1], [0, 0, 1, 1], [], []>} : vector<2x35xf32>, vector<35x40xf32>, vector<2x40xf32> -> vector<2x40xf32>
    %183 = vector.broadcast %176 : vector<1x40xf32> to vector<2x40xf32>
    %184 = arith.addf %183, %182 : vector<2x40xf32>
    %c1_136 = arith.constant 1 : index
    %c0_137 = arith.constant 0 : index
    %c0_138 = arith.constant 0 : index
    %185 = vector.load %arg16[%c1_136, %c0_137, %c0_138] : memref<7x2x14xf32, #tpu.memory_space<vmem>>, vector<1x2x14xf32>
    %186 = vector.shape_cast %185 : vector<1x2x14xf32> to vector<2x14xf32>
    %cst_139 = arith.constant dense<0.000000e+00> : vector<2x35xf32>
    %187 = tpu.matmul %186, %175, %cst_139 {dimension_numbers = #tpu.dot_dimension_numbers<[1], [0], [0], [1], [0, 0, 1, 1], [], []>} : vector<2x14xf32>, vector<14x35xf32>, vector<2x35xf32> -> vector<2x35xf32>
    %c1_140 = arith.constant 1 : index
    %c0_141 = arith.constant 0 : index
    %c0_142 = arith.constant 0 : index
    %188 = vector.load %arg17[%c1_140, %c0_141, %c0_142] : memref<7x35x40xf32, #tpu.memory_space<vmem>>, vector<1x35x40xf32>
    %189 = vector.shape_cast %188 : vector<1x35x40xf32> to vector<35x40xf32>
    %cst_143 = arith.constant dense<0.000000e+00> : vector<2x40xf32>
    %190 = tpu.matmul %187, %189, %cst_143 {dimension_numbers = #tpu.dot_dimension_numbers<[1], [0], [0], [1], [0, 0, 1, 1], [], []>} : vector<2x35xf32>, vector<35x40xf32>, vector<2x40xf32> -> vector<2x40xf32>
    %191 = arith.addf %184, %190 : vector<2x40xf32>
    %c2_144 = arith.constant 2 : index
    %c0_145 = arith.constant 0 : index
    %c0_146 = arith.constant 0 : index
    %192 = vector.load %arg16[%c2_144, %c0_145, %c0_146] : memref<7x2x14xf32, #tpu.memory_space<vmem>>, vector<1x2x14xf32>
    %193 = vector.shape_cast %192 : vector<1x2x14xf32> to vector<2x14xf32>
    %cst_147 = arith.constant dense<0.000000e+00> : vector<2x35xf32>
    %194 = tpu.matmul %193, %175, %cst_147 {dimension_numbers = #tpu.dot_dimension_numbers<[1], [0], [0], [1], [0, 0, 1, 1], [], []>} : vector<2x14xf32>, vector<14x35xf32>, vector<2x35xf32> -> vector<2x35xf32>
    %c2_148 = arith.constant 2 : index
    %c0_149 = arith.constant 0 : index
    %c0_150 = arith.constant 0 : index
    %195 = vector.load %arg17[%c2_148, %c0_149, %c0_150] : memref<7x35x40xf32, #tpu.memory_space<vmem>>, vector<1x35x40xf32>
    %196 = vector.shape_cast %195 : vector<1x35x40xf32> to vector<35x40xf32>
    %cst_151 = arith.constant dense<0.000000e+00> : vector<2x40xf32>
    %197 = tpu.matmul %194, %196, %cst_151 {dimension_numbers = #tpu.dot_dimension_numbers<[1], [0], [0], [1], [0, 0, 1, 1], [], []>} : vector<2x35xf32>, vector<35x40xf32>, vector<2x40xf32> -> vector<2x40xf32>
    %198 = arith.addf %191, %197 : vector<2x40xf32>
    %c3 = arith.constant 3 : index
    %c0_152 = arith.constant 0 : index
    %c0_153 = arith.constant 0 : index
    %199 = vector.load %arg16[%c3, %c0_152, %c0_153] : memref<7x2x14xf32, #tpu.memory_space<vmem>>, vector<1x2x14xf32>
    %200 = vector.shape_cast %199 : vector<1x2x14xf32> to vector<2x14xf32>
    %cst_154 = arith.constant dense<0.000000e+00> : vector<2x35xf32>
    %201 = tpu.matmul %200, %175, %cst_154 {dimension_numbers = #tpu.dot_dimension_numbers<[1], [0], [0], [1], [0, 0, 1, 1], [], []>} : vector<2x14xf32>, vector<14x35xf32>, vector<2x35xf32> -> vector<2x35xf32>
    %c3_155 = arith.constant 3 : index
    %c0_156 = arith.constant 0 : index
    %c0_157 = arith.constant 0 : index
    %202 = vector.load %arg17[%c3_155, %c0_156, %c0_157] : memref<7x35x40xf32, #tpu.memory_space<vmem>>, vector<1x35x40xf32>
    %203 = vector.shape_cast %202 : vector<1x35x40xf32> to vector<35x40xf32>
    %cst_158 = arith.constant dense<0.000000e+00> : vector<2x40xf32>
    %204 = tpu.matmul %201, %203, %cst_158 {dimension_numbers = #tpu.dot_dimension_numbers<[1], [0], [0], [1], [0, 0, 1, 1], [], []>} : vector<2x35xf32>, vector<35x40xf32>, vector<2x40xf32> -> vector<2x40xf32>
    %205 = arith.addf %198, %204 : vector<2x40xf32>
    %c4 = arith.constant 4 : index
    %c0_159 = arith.constant 0 : index
    %c0_160 = arith.constant 0 : index
    %206 = vector.load %arg16[%c4, %c0_159, %c0_160] : memref<7x2x14xf32, #tpu.memory_space<vmem>>, vector<1x2x14xf32>
    %207 = vector.shape_cast %206 : vector<1x2x14xf32> to vector<2x14xf32>
    %cst_161 = arith.constant dense<0.000000e+00> : vector<2x35xf32>
    %208 = tpu.matmul %207, %175, %cst_161 {dimension_numbers = #tpu.dot_dimension_numbers<[1], [0], [0], [1], [0, 0, 1, 1], [], []>} : vector<2x14xf32>, vector<14x35xf32>, vector<2x35xf32> -> vector<2x35xf32>
    %c4_162 = arith.constant 4 : index
    %c0_163 = arith.constant 0 : index
    %c0_164 = arith.constant 0 : index
    %209 = vector.load %arg17[%c4_162, %c0_163, %c0_164] : memref<7x35x40xf32, #tpu.memory_space<vmem>>, vector<1x35x40xf32>
    %210 = vector.shape_cast %209 : vector<1x35x40xf32> to vector<35x40xf32>
    %cst_165 = arith.constant dense<0.000000e+00> : vector<2x40xf32>
    %211 = tpu.matmul %208, %210, %cst_165 {dimension_numbers = #tpu.dot_dimension_numbers<[1], [0], [0], [1], [0, 0, 1, 1], [], []>} : vector<2x35xf32>, vector<35x40xf32>, vector<2x40xf32> -> vector<2x40xf32>
    %212 = arith.addf %205, %211 : vector<2x40xf32>
    %c5 = arith.constant 5 : index
    %c0_166 = arith.constant 0 : index
    %c0_167 = arith.constant 0 : index
    %213 = vector.load %arg16[%c5, %c0_166, %c0_167] : memref<7x2x14xf32, #tpu.memory_space<vmem>>, vector<1x2x14xf32>
    %214 = vector.shape_cast %213 : vector<1x2x14xf32> to vector<2x14xf32>
    %cst_168 = arith.constant dense<0.000000e+00> : vector<2x35xf32>
    %215 = tpu.matmul %214, %175, %cst_168 {dimension_numbers = #tpu.dot_dimension_numbers<[1], [0], [0], [1], [0, 0, 1, 1], [], []>} : vector<2x14xf32>, vector<14x35xf32>, vector<2x35xf32> -> vector<2x35xf32>
    %c5_169 = arith.constant 5 : index
    %c0_170 = arith.constant 0 : index
    %c0_171 = arith.constant 0 : index
    %216 = vector.load %arg17[%c5_169, %c0_170, %c0_171] : memref<7x35x40xf32, #tpu.memory_space<vmem>>, vector<1x35x40xf32>
    %217 = vector.shape_cast %216 : vector<1x35x40xf32> to vector<35x40xf32>
    %cst_172 = arith.constant dense<0.000000e+00> : vector<2x40xf32>
    %218 = tpu.matmul %215, %217, %cst_172 {dimension_numbers = #tpu.dot_dimension_numbers<[1], [0], [0], [1], [0, 0, 1, 1], [], []>} : vector<2x35xf32>, vector<35x40xf32>, vector<2x40xf32> -> vector<2x40xf32>
    %219 = arith.addf %212, %218 : vector<2x40xf32>
    %c6 = arith.constant 6 : index
    %c0_173 = arith.constant 0 : index
    %c0_174 = arith.constant 0 : index
    %220 = vector.load %arg16[%c6, %c0_173, %c0_174] : memref<7x2x14xf32, #tpu.memory_space<vmem>>, vector<1x2x14xf32>
    %221 = vector.shape_cast %220 : vector<1x2x14xf32> to vector<2x14xf32>
    %cst_175 = arith.constant dense<0.000000e+00> : vector<2x35xf32>
    %222 = tpu.matmul %221, %175, %cst_175 {dimension_numbers = #tpu.dot_dimension_numbers<[1], [0], [0], [1], [0, 0, 1, 1], [], []>} : vector<2x14xf32>, vector<14x35xf32>, vector<2x35xf32> -> vector<2x35xf32>
    %c6_176 = arith.constant 6 : index
    %c0_177 = arith.constant 0 : index
    %c0_178 = arith.constant 0 : index
    %223 = vector.load %arg17[%c6_176, %c0_177, %c0_178] : memref<7x35x40xf32, #tpu.memory_space<vmem>>, vector<1x35x40xf32>
    %224 = vector.shape_cast %223 : vector<1x35x40xf32> to vector<35x40xf32>
    %cst_179 = arith.constant dense<0.000000e+00> : vector<2x40xf32>
    %225 = tpu.matmul %222, %224, %cst_179 {dimension_numbers = #tpu.dot_dimension_numbers<[1], [0], [0], [1], [0, 0, 1, 1], [], []>} : vector<2x35xf32>, vector<35x40xf32>, vector<2x40xf32> -> vector<2x40xf32>
    %226 = arith.addf %219, %225 : vector<2x40xf32>
    %cst_180 = arith.constant 0.000000e+00 : f32
    %227 = vector.broadcast %cst_180 : f32 to vector<2x40xf32>
    %228 = arith.maximumf %226, %227 : vector<2x40xf32>
    %c0_181 = arith.constant 0 : index
    %c0_182 = arith.constant 0 : index
    %229 = vector.load %arg19[%c0_181, %c0_182] : memref<40x10xf32, #tpu.memory_space<vmem>>, vector<40x10xf32>
    %cst_183 = arith.constant dense<0.000000e+00> : vector<2x10xf32>
    %230 = tpu.matmul %228, %229, %cst_183 {dimension_numbers = #tpu.dot_dimension_numbers<[1], [0], [0], [1], [0, 0, 1, 1], [], []>} : vector<2x40xf32>, vector<40x10xf32>, vector<2x10xf32> -> vector<2x10xf32>
    %c0_184 = arith.constant 0 : index
    %c0_185 = arith.constant 0 : index
    %231 = vector.load %arg20[%c0_184, %c0_185] : memref<1x10xf32, #tpu.memory_space<vmem>>, vector<1x10xf32>
    %232 = vector.broadcast %231 : vector<1x10xf32> to vector<2x10xf32>
    %233 = arith.addf %230, %232 : vector<2x10xf32>
    %cst_186 = arith.constant dense<0xFF800000> : vector<2xf32>
    %234 = vector.multi_reduction <maximumf>, %233, %cst_186 [1] : vector<2x10xf32> to vector<2xf32>
    %235 = vector.shape_cast %234 : vector<2xf32> to vector<2x1xf32>
    %236 = vector.broadcast %235 : vector<2x1xf32> to vector<2x10xf32>
    %237 = arith.subf %233, %236 : vector<2x10xf32>
    %238 = math.exp %237 : vector<2x10xf32>
    %cst_187 = arith.constant dense<0.000000e+00> : vector<2xf32>
    %239 = vector.multi_reduction <add>, %238, %cst_187 [1] : vector<2x10xf32> to vector<2xf32>
    %240 = vector.shape_cast %239 : vector<2xf32> to vector<2x1xf32>
    %241 = math.log %240 : vector<2x1xf32>
    %242 = arith.addf %235, %241 : vector<2x1xf32>
    %243 = vector.broadcast %242 : vector<2x1xf32> to vector<2x10xf32>
    %244 = arith.subf %233, %243 : vector<2x10xf32>
    %c0_188 = arith.constant 0 : index
    %c0_189 = arith.constant 0 : index
    %245 = vector.load %arg21[%c0_188, %c0_189] : memref<2x10xf32, #tpu.memory_space<vmem>>, vector<2x10xf32>
    tpu.vector_store %arg21[%c0_188, %c0_189], %244 {strides = array<i32>} : memref<2x10xf32, #tpu.memory_space<vmem>>, vector<2x10xf32>,
    return
  }
}

</mosaic_0001>

<bundles_post_ra>
// kernel: net_forward.1
= control target key start
LH: loop header
LB: loop body
LE: loop exit
PB: predicated region body
PF: predicated region fallthrough
CT: control target
= control target key end

     0   :  { %s11931_s0 = inlined_call_operand.vmem [shape: f32[3,64,96], index: 0, kind: input, shape index: {}]   ;;  %s11932_s1 = inlined_call_operand.vmem [shape: f32[3,96,300], index: 1, kind: input, shape index: {}]   ;;  %s11933_s2 = inlined_call_operand.vmem [shape: f32[3,96,300], index: 2, kind: input, shape index: {}]   ;;  %s11934_s3 = inlined_call_operand.vmem [shape: f32[64,1], index: 3, kind: input, shape index: {}]   ;;  %s11935_s4 = inlined_call_operand.vmem [shape: f32[300,20], index: 4, kind: input, shape index: {}]   ;;  %s11936_s5 = inlined_call_operand.vmem [shape: f32[20,300], index: 5, kind: input, shape index: {}]   ;;  %s11937_s6 = inlined_call_operand.vmem [shape: f32[2,20], index: 6, kind: input, shape index: {}]   ;;  %s11938_s7 = inlined_call_operand.vmem [shape: f32[2,30,64], index: 7, kind: input, shape index: {}]   ;;  %s11939_s8 = inlined_call_operand.vmem [shape: f32[300,40], index: 8, kind: input, shape index: {}]   ;;  %s11940_s9 = inlined_call_operand.vmem [shape: f32[300,35], index: 9, kind: input, shape index: {}]   ;;  %s11941_s10 = inlined_call_operand.vmem [shape: f32[40,5], index: 10, kind: input, shape index: {}]   ;;  %s11942_s11 = inlined_call_operand.vmem [shape: f32[5,40], index: 11, kind: input, shape index: {}]   ;;  %s11943_s12 = inlined_call_operand.vmem [shape: f32[35,5], index: 12, kind: input, shape index: {}]   ;;  %s11944_s13 = inlined_call_operand.vmem [shape: f32[5,35], index: 13, kind: input, shape index: {}]   ;;  %s11945_s14 = inlined_call_operand.vmem [shape: f32[2,5], index: 14, kind: input, shape index: {}]   ;;  %s11946_s15 = inlined_call_operand.vmem [shape: f32[2,14,30], index: 15, kind: input, shape index: {}]   ;;  %s11947_s16 = inlined_call_operand.vmem [shape: f32[7,2,14], index: 16, kind: input, shape index: {}]   ;;  %s11948_s17 = inlined_call_operand.vmem [shape: f32[7,35,40], index: 17, kind: input, shape index: {}]   ;;  %s11949_s18 = inlined_call_operand.vmem [shape: f32[1,40], index: 18, kind: input, shape index: {}]   ;;  %s11950_s19 = inlined_call_operand.vmem [shape: f32[40,10], index: 19, kind: input, shape index: {}]   ;;  %s11951_s20 = inlined_call_operand.vmem [shape: f32[1,10], index: 20, kind: input, shape index: {}]   ;;  %s11952_s21 = inlined_call_operand.hbm [shape: f32[2,10], index: 21, kind: output, shape index: {}]  }
   0x1   :  { %12002 = sst [smem:[#allocation44_spill]] %s11931_s0 }
   0x2   :  { %12003 = sst [smem:[#allocation45_spill]] %s11932_s1 }
   0x3   :  { %12004 = sst [smem:[#allocation46_spill]] %s11933_s2 }
   0x4   :  { %12005 = sst [smem:[#allocation47_spill]] %s11934_s3 }
   0x5   :  { %12006 = sst [smem:[#allocation48_spill]] %s11935_s4 }
   0x6   :  { %12007 = sst [smem:[#allocation49_spill]] %s11936_s5 }
   0x7   :  { %s12008_s26 = sld [smem:[#allocation45_spill]]  ;;  %v11959_v7 = vmov 0.0   ;;  %vm159_vm0 = vcmask 785408   ;;  %s12009_s27 = sld [smem:[#allocation44_spill]] }
   0x8   :  { %248 = vmatprep.mubr.f32.mxu0 %v11959_v7  ;;  %s12010_s3 = sld [smem:[#allocation46_spill]] }
   0xd   :  { %v6440_v0 = vld [vmem:[%s12008_s26 + $0x128] sm:$0xff]  ;;  %v6443_v1 = vld [vmem:[%s12008_s26 + $0x140] sm:$0xff]  ;;  %v6441_v2 = vld [vmem:[%s12008_s26 + $0x130] sm:$0xff] }
   0xe   :  { %v7992_v3 = vpack.c.bf16 %v6443_v1, %v6440_v0  ;;  %v6444_v4 = vld [vmem:[%s12008_s26 + $0x148] sm:$0xff]  ;;  %v6439_v5 = vld [vmem:[%s12008_s26 + $0x120] sm:$0xff]  ;;  %v6442_v6 = vld [vmem:[%s12008_s26 + $0x138] sm:$0xff] }
   0xf   :  { %v8016_v8 = vpack.c.bf16 %v6444_v4, %v6441_v2  ;;  %v7994_v9 = vpack.c.bf16 %v6442_v6, %v6439_v5  ;;  %v6446_v10 = vld [vmem:[%s12008_s26 + $0x158] sm:$0xff]  ;;  %v6449_v11 = vld [vmem:[%s12008_s26 + $0x170] sm:$0xff]  ;;  %v6447_v12 = vld [vmem:[%s12008_s26 + $0x160] sm:$0xff] }
  0x10   :  { %7993 = vmatprep.subr.bf16.mxu0 %v7992_v3  ;;  %v7996_v13 = vpack.c.bf16 %v6449_v11, %v6446_v10  ;;  %v6450_v14 = vld [vmem:[%s12008_s26 + $0x178] sm:$0xff]  ;;  %v6445_v15 = vld [vmem:[%s12008_s26 + $0x150] sm:$0xff]  ;;  %v6448_v16 = vld [vmem:[%s12008_s26 + $0x168] sm:$0xff] }
  0x11   :  { %8017 = vmatprep.subr.bf16.mxu1 %v8016_v8  ;;  %7995 = vmatpush1.bf16.msra.mxu0 %v7994_v9  ;;  %v8020_v17 = vpack.c.bf16 %v6450_v14, %v6447_v12  ;;  %v7998_v18 = vpack.c.bf16 %v6448_v16, %v6445_v15  ;;  %v6452_v19 = vld [vmem:[%s12008_s26 + $0x188] sm:$0xff]  ;;  %v6455_v20 = vld [vmem:[%s12008_s26 + $0x1a0] sm:$0xff]  ;;  %v6453_v21 = vld [vmem:[%s12008_s26 + $0x190] sm:$0xff] }
  0x12   :  { %8019 = vmatpush3.bf16.msra.mxu1 %v8016_v8  ;;  %7997 = vmatprep.subr.bf16.mxu0 %v7996_v13  ;;  %v8000_v22 = vpack.c.bf16 %v6455_v20, %v6452_v19  ;;  %v6456_v23 = vld [vmem:[%s12008_s26 + $0x1a8] sm:$0xff]  ;;  %v6451_v24 = vld [vmem:[%s12008_s26 + $0x180] sm:$0xff]  ;;  %v6454_v25 = vld [vmem:[%s12008_s26 + $0x198] sm:$0xff]  ;;  %v8892_v13 = vmov 0  }
  0x13   :  { %8021 = vmatprep.subr.bf16.mxu1 %v8020_v17  ;;  %v8024_v26 = vpack.c.bf16 %v6456_v23, %v6453_v21  ;;  %v6458_v27 = vld [vmem:[%s12008_s26 + $0x1b8] sm:$0xff]  ;;  %v6461_v28 = vld [vmem:[%s12008_s26 + $0x1d0] sm:$0xff]  ;;  %v6459_v29 = vld [vmem:[%s12008_s26 + $0x1c0] sm:$0xff]  ;;  %v8002_v31 = vpack.c.bf16 %v6454_v25, %v6451_v24  ;;  %8857 = vset.pattern.permute.xlu0 %v8892_v13 }
  0x14   :  { %v6462_v30 = vld [vmem:[%s12008_s26 + $0x1d8] sm:$0xff]  ;;  %v8004_v32 = vpack.c.bf16 %v6461_v28, %v6458_v27  ;;  %v6457_v33 = vld [vmem:[%s12008_s26 + $0x1b0] sm:$0xff]  ;;  %v6460_v34 = vld [vmem:[%s12008_s26 + $0x1c8] sm:$0xff]  ;;  %8858 = vset.pattern.permute.xlu1 %v8892_v13 }
  0x15   :  { %7999 = vmatpush1.bf16.msra.mxu0 %v7998_v18  ;;  %v8028_v35 = vpack.c.bf16 %v6462_v30, %v6459_v29  ;;  %v6464_v36 = vld [vmem:[%s12008_s26 + $0x1e8] sm:$0xff]  ;;  %v6467_v37 = vld [vmem:[%s12008_s26 + $0x200] sm:$0xff]  ;;  %v6465_v38 = vld [vmem:[%s12008_s26 + $0x1f0] sm:$0xff]  ;;  %v8006_v40 = vpack.c.bf16 %v6460_v34, %v6457_v33 }
  0x16   :  { %8023 = vmatpush3.bf16.msra.mxu1 %v8020_v17  ;;  %8001 = vmatprep.subr.bf16.mxu0 %v8000_v22  ;;  %v6468_v39 = vld [vmem:[%s12008_s26 + $0x208] sm:$0xff]  ;;  %v9095_v41 = vld [vmem:[%s12009_s27 + $0x40] sm:$0xff]  ;;  %v8008_v42 = vpack.c.bf16 %v6467_v37, %v6464_v36  ;;  %v6466_v44 = vld [vmem:[%s12008_s26 + $0x1f8] sm:$0xff] }
  0x17   :  { %8025 = vmatprep.subr.bf16.mxu1 %v8024_v26  ;;  %v6463_v43 = vld [vmem:[%s12008_s26 + $0x1e0] sm:$0xff]  ;;  %v8032_v45 = vpack.c.bf16 %v6468_v39, %v6465_v38  ;;  %v6470_v46 = vld [vmem:[%s12008_s26 + $0x218] sm:$0xff]  ;;  %v6473_v47 = vld [vmem:[%s12008_s26 + $0x230] sm:$0xff]  ;;  %7359 = vmatprep.mubr.msk.f32.mxu1 %vm159_vm0, %v9095_v41 }
  0x18   :  { %v6471_v48 = vld [vmem:[%s12008_s26 + $0x220] sm:$0xff]  ;;  %v6474_v49 = vld [vmem:[%s12008_s26 + $0x238] sm:$0xff]  ;;  %v8010_v50 = vpack.c.bf16 %v6466_v44, %v6463_v43  ;;  %v8012_v51 = vpack.c.bf16 %v6473_v47, %v6470_v46  ;;  %v6469_v52 = vld [vmem:[%s12008_s26 + $0x210] sm:$0xff] }
  0x19   :  { %8003 = vmatpush1.bf16.msra.mxu0 %v8002_v31  ;;  %v6472_v53 = vld [vmem:[%s12008_s26 + $0x228] sm:$0xff]  ;;  %v8036_v54 = vpack.c.bf16 %v6474_v49, %v6471_v48  ;;  %v81_v56 = vld [vmem:[%s12008_s26 + $0x20] sm:$0xff]  ;;  %v79_v57 = vld [vmem:[%s12008_s26 + $0x10] sm:$0xff] }
  0x1a   :  { %8027 = vmatpush3.bf16.msra.mxu1 %v8024_v26  ;;  %8005 = vmatprep.subr.bf16.mxu0 %v8004_v32  ;;  %v78_v55 = vld [vmem:[%s12008_s26 + $0x8] sm:$0xff]  ;;  %v8014_v59 = vpack.c.bf16 %v6472_v53, %v6469_v52  ;;  %v77_v61 = vld [vmem:[%s12008_s26] sm:$0xff]  ;;  %v80_v62 = vld [vmem:[%s12008_s26 + $0x18] sm:$0xff] }
  0x1b   :  { %8029 = vmatprep.subr.bf16.mxu1 %v8028_v35  ;;  %v82_v58 = vld [vmem:[%s12008_s26 + $0x28] sm:$0xff]  ;;  %v8040_v60 = vpack.c.bf16 %v81_v56, %v78_v55  ;;  %v85_v0 = vld [vmem:[%s12008_s26 + $0x40] sm:$0xff]  ;;  %v88_v1 = vld [vmem:[%s12008_s26 + $0x58] sm:$0xff]  ;;  %v8042_v4 = vpack.c.bf16 %v80_v62, %v77_v61 }
  0x1c   :  { %v8064_v63 = vpack.c.bf16 %v82_v58, %v79_v57  ;;  %v84_v2 = vld [vmem:[%s12008_s26 + $0x38] sm:$0xff]  ;;  %v87_v3 = vld [vmem:[%s12008_s26 + $0x50] sm:$0xff]  ;;  %v9156_v5 = vld [vmem:[%s12009_s27 + $0x48] sm:$0xff]  ;;  %v8068_v9 = vpack.c.bf16 %v88_v1, %v85_v0 }
  0x1d   :  { %8007 = vmatpush1.bf16.msra.mxu0 %v8006_v40  ;;  %v83_v6 = vld [vmem:[%s12008_s26 + $0x30] sm:$0xff]  ;;  %v86_v8 = vld [vmem:[%s12008_s26 + $0x48] sm:$0xff]  ;;  %v8044_v10 = vpack.c.bf16 %v87_v3, %v84_v2  ;;  %v93_v12 = vld [vmem:[%s12008_s26 + $0x80] sm:$0xff] }
  0x1e   :  { %8031 = vmatpush3.bf16.msra.mxu1 %v8028_v35  ;;  %8009 = vmatprep.subr.bf16.mxu0 %v8008_v42  ;;  %v90_v11 = vld [vmem:[%s12008_s26 + $0x68] sm:$0xff]  ;;  %v91_v14 = vld [vmem:[%s12008_s26 + $0x70] sm:$0xff]  ;;  %v8046_v16 = vpack.c.bf16 %v86_v8, %v83_v6  ;;  %v89_v18 = vld [vmem:[%s12008_s26 + $0x60] sm:$0xff] }
  0x1f   :  { %8033 = vmatprep.subr.bf16.mxu1 %v8032_v45  ;;  %v94_v15 = vld [vmem:[%s12008_s26 + $0x88] sm:$0xff]  ;;  %v8048_v17 = vpack.c.bf16 %v93_v12, %v90_v11  ;;  %v92_v19 = vld [vmem:[%s12008_s26 + $0x78] sm:$0xff]  ;;  %v9190_v20 = vld [vmem:[%s12009_s27 + $0x50] sm:$0xff] }
  0x20   :  { %v8072_v21 = vpack.c.bf16 %v94_v15, %v91_v14  ;;  %v96_v22 = vld [vmem:[%s12008_s26 + $0x98] sm:$0xff]  ;;  %v99_v23 = vld [vmem:[%s12008_s26 + $0xb0] sm:$0xff]  ;;  %v97_v25 = vld [vmem:[%s12008_s26 + $0xa0] sm:$0xff]  ;;  %v8050_v27 = vpack.c.bf16 %v92_v19, %v89_v18 }
  0x21   :  { %8011 = vmatpush1.bf16.msra.mxu0 %v8010_v50  ;;  %v9203_v24 = vld [vmem:[%s12009_s27 + $0x58] sm:$0xff]  ;;  %v9217_v28 = vld [vmem:[%s12009_s27 + $0x60] sm:$0xff]  ;;  %v8052_v29 = vpack.c.bf16 %v99_v23, %v96_v22  ;;  %v95_v30 = vld [vmem:[%s12008_s26 + $0x90] sm:$0xff] }
  0x22   :  { %8035 = vmatpush3.bf16.msra.mxu1 %v8032_v45  ;;  %8013 = vmatprep.subr.bf16.mxu0 %v8012_v51  ;;  %v100_v26 = vld [vmem:[%s12008_s26 + $0xb8] sm:$0xff]  ;;  %v98_v31 = vld [vmem:[%s12008_s26 + $0xa8] sm:$0xff]  ;;  %v105_v34 = vld [vmem:[%s12008_s26 + $0xe0] sm:$0xff] }
  0x23   :  { %8037 = vmatprep.subr.bf16.mxu1 %v8036_v54  ;;  %v8076_v32 = vpack.c.bf16 %v100_v26, %v97_v25  ;;  %v102_v33 = vld [vmem:[%s12008_s26 + $0xc8] sm:$0xff]  ;;  %v103_v35 = vld [vmem:[%s12008_s26 + $0xd0] sm:$0xff]  ;;  %v8054_v38 = vpack.c.bf16 %v98_v31, %v95_v30  ;;  %v101_v42 = vld [vmem:[%s12008_s26 + $0xc0] sm:$0xff] }
  0x24   :  { %v106_v36 = vld [vmem:[%s12008_s26 + $0xe8] sm:$0xff]  ;;  %v9252_v39 = vld [vmem:[%s12009_s27 + $0x70] sm:$0xff]  ;;  %v8056_v40 = vpack.c.bf16 %v105_v34, %v102_v33  ;;  %v104_v43 = vld [vmem:[%s12008_s26 + $0xd8] sm:$0xff] }
  0x25   :  { %8015 = vmatpush1.bf16.msra.mxu0 %v8014_v59  ;;  %v9246_v37 = vld [vmem:[%s12009_s27 + $0x68] sm:$0xff]  ;;  %v8080_v44 = vpack.c.bf16 %v106_v36, %v103_v35  ;;  %v108_v45 = vld [vmem:[%s12008_s26 + $0xf8] sm:$0xff]  ;;  %v111_v46 = vld [vmem:[%s12008_s26 + $0x110] sm:$0xff]  ;;  %v8058_v50 = vpack.c.bf16 %v104_v43, %v101_v42 }
  0x26   :  { %8039 = vmatpush3.bf16.msra.mxu1 %v8036_v54  ;;  %8041 = vmatprep.subr.bf16.mxu0 %v8040_v60  ;;  %v109_v47 = vld [vmem:[%s12008_s26 + $0x100] sm:$0xff]  ;;  %v112_v48 = vld [vmem:[%s12008_s26 + $0x118] sm:$0xff]  ;;  %v8060_v52 = vpack.c.bf16 %v111_v46, %v108_v45  ;;  %v107_v53 = vld [vmem:[%s12008_s26 + $0xf0] sm:$0xff] }
  0x27   :  { %8065 = vmatprep.subr.bf16.mxu1 %v8064_v63  ;;  %v9281_v49 = vld [vmem:[%s12009_s27 + $0x78] sm:$0xff]  ;;  %v9287_v51 = vld [vmem:[%s12009_s27] sm:$0xff]  ;;  %v110_v54 = vld [vmem:[%s12008_s26 + $0x108] sm:$0xff]  ;;  %v8084_v55 = vpack.c.bf16 %v112_v48, %v109_v47 }
  0x28   :  { %6475 = vmatmul.mubr.msk.f32.vlgmr.msra.gmra.mrb[0].mxu0 %vm159_vm0, %v9095_v41  ;;  %v6516_v56 = vld [vmem:[%s12008_s26 + $0x248] sm:$0xff]  ;;  %v6519_v57 = vld [vmem:[%s12008_s26 + $0x260] sm:$0xff]  ;;  %v6517_v58 = vld [vmem:[%s12008_s26 + $0x250] sm:$0xff]  ;;  %v8062_v60 = vpack.c.bf16 %v110_v54, %v107_v53 }
  0x29   :  { %7360 = vmatmul.mubr.msk.f32.vlgmr.msra.gmra.mrb[0].mxu1 %vm159_vm0, %v9156_v5  ;;  %8043 = vmatpush1.bf16.msra.mxu0 %v8042_v4  ;;  %v6520_v59 = vld [vmem:[%s12008_s26 + $0x268] sm:$0xff]  ;;  %v8088_v61 = vpack.c.bf16 %v6519_v57, %v6516_v56  ;;  %v6526_v0 = vld [vmem:[%s12008_s26 + $0x298] sm:$0xff]  ;;  %v9331_v3 = vld [vmem:[%s12009_s27 + $0x10] sm:$0xff] }
  0x2a   :  { %8067 = vmatpush3.bf16.msra.mxu1 %v8064_v63  ;;  %254 = vmatprep.mubr.f32.mxu0 %v11959_v7  ;;  %v8112_v62 = vpack.c.bf16 %v6520_v59, %v6517_v58  ;;  %v6523_v63 = vld [vmem:[%s12008_s26 + $0x280] sm:$0xff]  ;;  %v9326_v1 = vld [vmem:[%s12009_s27 + $0x8] sm:$0xff]  ;;  %v6529_v4 = vld [vmem:[%s12008_s26 + $0x2b0] sm:$0xff] }
  0x2b   :  { %8069 = vmatprep.subr.bf16.mxu1 %v8068_v9  ;;  %8045 = vmatprep.subr.bf16.mxu0 %v8044_v10  ;;  %v8116_v2 = vpack.c.bf16 %v6526_v0, %v6523_v63  ;;  %v6532_v6 = vld [vmem:[%s12008_s26 + $0x2c8] sm:$0xff]  ;;  %v6515_v8 = vld [vmem:[%s12008_s26 + $0x240] sm:$0xff]  ;;  %v9355_v10 = vld [vmem:[%s12009_s27 + $0x18] sm:$0xff] }
  0x2c   :  { %6476 = vmatmul.mubr.msk.f32.gmra.mrb[2].mxu0 %vm159_vm0, %v9156_v5  ;;  %7362 = vmatprep.mubr.msk.f32.mxu1 %vm159_vm0, %v9190_v20  ;;  %v8120_v11 = vpack.c.bf16 %v6532_v6, %v6529_v4  ;;  %v6522_v12 = vld [vmem:[%s12008_s26 + $0x278] sm:$0xff]  ;;  %v6525_v13 = vld [vmem:[%s12008_s26 + $0x290] sm:$0xff]  ;;  %v9366_v14 = vld [vmem:[%s12009_s27 + $0x20] sm:$0xff] }
  0x2d   :  { %260 = vmatprep.mubr.f32.mxu0 %v11959_v7  ;;  %8047 = vmatpush1.bf16.msra.mxu0 %v8046_v16  ;;  %v6535_v15 = vld [vmem:[%s12008_s26 + $0x2e0] sm:$0xff]  ;;  %v6538_v16 = vld [vmem:[%s12008_s26 + $0x2f8] sm:$0xff]  ;;  %v8092_v18 = vpack.c.bf16 %v6525_v13, %v6522_v12  ;;  %v6521_v19 = vld [vmem:[%s12008_s26 + $0x270] sm:$0xff] }
  0x2e   :  { %8071 = vmatpush3.bf16.msra.mxu1 %v8068_v9  ;;  %8049 = vmatprep.subr.bf16.mxu0 %v8048_v17  ;;  %v6518_v9 = vld [vmem:[%s12008_s26 + $0x258] sm:$0xff]  ;;  %v8124_v22 = vpack.c.bf16 %v6538_v16, %v6535_v15  ;;  %v6528_v23 = vld [vmem:[%s12008_s26 + $0x2a8] sm:$0xff]  ;;  %v6531_v25 = vld [vmem:[%s12008_s26 + $0x2c0] sm:$0xff] }
  0x2f   :  { %8073 = vmatprep.subr.bf16.mxu1 %v8072_v21  ;;  %7363 = vmatmul.mubr.msk.f32.gmra.mrb[2].mxu1 %vm159_vm0, %v9203_v24  ;;  %v8090_v17 = vpack.c.bf16 %v6518_v9, %v6515_v8  ;;  %v9398_v26 = vld [vmem:[%s12009_s27 + $0x28] sm:$0xff]  ;;  %v9410_v31 = vld [vmem:[%s12009_s27 + $0x30] sm:$0xff]  ;;  %v6527_v33 = vld [vmem:[%s12008_s26 + $0x2a0] sm:$0xff] }
  0x30   :  { %6477 = vmatmul.mubr.msk.f32.gmra.mrb[4].mxu0 %vm159_vm0, %v9190_v20  ;;  %7365 = vmatprep.mubr.msk.f32.mxu1 %vm159_vm0, %v9217_v28  ;;  %v6530_v34 = vld [vmem:[%s12008_s26 + $0x2b8] sm:$0xff]  ;;  %v6547_v42 = vld [vmem:[%s12008_s26 + $0x340] sm:$0xff]  ;;  %v6533_v47 = vld [vmem:[%s12008_s26 + $0x2d0] sm:$0xff] }
  0x31   :  { %266 = vmatprep.mubr.f32.mxu0 %v11959_v7  ;;  %8051 = vmatpush1.bf16.msra.mxu0 %v8050_v27  ;;  %v6541_v27 = vld [vmem:[%s12008_s26 + $0x310] sm:$0xff]  ;;  %v6534_v36 = vld [vmem:[%s12008_s26 + $0x2d8] sm:$0xff]  ;;  %v9445_v45 = vld [vmem:[%s12009_s27 + $0x80] sm:$0xff] }
  0x32   :  { %8075 = vmatpush3.bf16.msra.mxu1 %v8072_v21  ;;  %8053 = vmatprep.subr.bf16.mxu0 %v8052_v29  ;;  %v6524_v21 = vld [vmem:[%s12008_s26 + $0x288] sm:$0xff]  ;;  %v6550_v43 = vld [vmem:[%s12008_s26 + $0x358] sm:$0xff]  ;;  %v6543_v53 = vld [vmem:[%s12008_s26 + $0x320] sm:$0xff] }
  0x33   :  { %8077 = vmatprep.subr.bf16.mxu1 %v8076_v32  ;;  %7366 = vmatmul.mubr.msk.f32.gmra.mrb[4].mxu1 %vm159_vm0, %v9246_v37  ;;  %v6544_v29 = vld [vmem:[%s12008_s26 + $0x328] sm:$0xff]  ;;  %v8094_v30 = vpack.c.bf16 %v6524_v21, %v6521_v19  ;;  %v6567_v59 = vld [vmem:[%s12010_s3 + $0x120] sm:$0xff]  ;;  %v6542_v0 = vld [vmem:[%s12008_s26 + $0x318] sm:$0xff] }
  0x34   :  { %6478 = vmatmul.mubr.msk.f32.gmra.mrb[6].mxu0 %vm159_vm0, %v9203_v24  ;;  %7368 = vmatprep.mubr.msk.f32.mxu1 %vm159_vm0, %v9252_v39  ;;  %v8128_v35 = vpack.c.bf16 %v6544_v29, %v6541_v27  ;;  %v6536_v48 = vld [vmem:[%s12008_s26 + $0x2e8] sm:$0xff]  ;;  %v6539_v63 = vld [vmem:[%s12008_s26 + $0x300] sm:$0xff]  ;;  %v6549_v4 = vld [vmem:[%s12008_s26 + $0x350] sm:$0xff] }
  0x35   :  { %272 = vmatprep.mubr.f32.mxu0 %v11959_v7  ;;  %8055 = vmatpush1.bf16.msra.mxu0 %v8054_v38  ;;  %v6537_v38 = vld [vmem:[%s12008_s26 + $0x2f0] sm:$0xff]  ;;  %v6568_v54 = vld [vmem:[%s12010_s3 + $0x128] sm:$0xff]  ;;  %v8102_v56 = vpack.c.bf16 %v6536_v48, %v6533_v47  ;;  %v8106_v15 = vpack.c.bf16 %v6542_v0, %v6539_v63  ;;  %v9548_v29 = vld [vmem:[%s12009_s27 + $0xa0] sm:$0xff] }
  0x36   :  { %8079 = vmatpush3.bf16.msra.mxu1 %v8076_v32  ;;  %8057 = vmatprep.subr.bf16.mxu0 %v8056_v40  ;;  %v8096_v32 = vpack.c.bf16 %v6531_v25, %v6528_v23  ;;  %v9433_v40 = vld [vmem:[%s12009_s27 + $0x38] sm:$0xff]  ;;  %v8100_v46 = vpack.c.bf16 %v6537_v38, %v6534_v36  ;;  %v9502_v6 = vld [vmem:[%s12009_s27 + $0x88] sm:$0xff]  ;;  %v9507_v9 = vld [vmem:[%s12009_s27 + $0x90] sm:$0xff] }
  0x37   :  { %8081 = vmatprep.subr.bf16.mxu1 %v8080_v44  ;;  %7369 = vmatmul.mubr.msk.f32.gmra.mrb[6].mxu1 %vm159_vm0, %v9281_v49  ;;  %v6573_v12 = vld [vmem:[%s12010_s3 + $0x150] sm:$0xff]  ;;  %v6576_v13 = vld [vmem:[%s12010_s3 + $0x168] sm:$0xff]  ;;  %v9543_v25 = vld [vmem:[%s12009_s27 + $0x98] sm:$0xff] }
  0x38   :  { %6479 = vmatmul.mubr.msk.f32.gmra.mrb[8].mxu0 %vm159_vm0, %v9217_v28  ;;  %7395 = vmatprep.mubr.msk.f32.mxu1 %vm159_vm0, %v9287_v51  ;;  %v6580_v16 = vld [vmem:[%s12010_s3 + $0x188] sm:$0xff]  ;;  %v6545_v19 = vld [vmem:[%s12008_s26 + $0x330] sm:$0xff]  ;;  %v8142_v27 = vpack.c.bf16 %v6576_v13, %v6573_v12 }
  0x39   :  { %278 = vmatprep.mubr.f32.mxu0 %v11959_v7  ;;  %8059 = vmatpush1.bf16.msra.mxu0 %v8058_v50  ;;  %v8132_v50 = vpack.c.bf16 %v6550_v43, %v6547_v42  ;;  %v6548_v21 = vld [vmem:[%s12008_s26 + $0x348] sm:$0xff]  ;;  %v6589_v36 = vld [vmem:[%s12010_s3 + $0x1d0] sm:$0xff] }
  0x3a   :  { %8083 = vmatpush3.bf16.msra.mxu1 %v8080_v44  ;;  %8061 = vmatprep.subr.bf16.mxu0 %v8060_v52  ;;  %v8098_v44 = vpack.c.bf16 %v6530_v34, %v6527_v33  ;;  %v6540_v52 = vld [vmem:[%s12008_s26 + $0x308] sm:$0xff]  ;;  %v6582_v33 = vld [vmem:[%s12010_s3 + $0x198] sm:$0xff]  ;;  %v8110_v34 = vpack.c.bf16 %v6548_v21, %v6545_v19  ;;  %v6585_v47 = vld [vmem:[%s12010_s3 + $0x1b0] sm:$0xff] }
  0x3b   :  { %8085 = vmatprep.subr.bf16.mxu1 %v8084_v55  ;;  %v8104_v57 = vpack.c.bf16 %v6543_v53, %v6540_v52  ;;  %v6572_v23 = vld [vmem:[%s12010_s3 + $0x148] sm:$0xff] }
  0x3c   :  { %6480 = vmatmul.mubr.msk.f32.gmra.mrb[10].mxu0 %vm159_vm0, %v9246_v37  ;;  %v9572_v42 = vld [vmem:[%s12009_s27 + $0xa8] sm:$0xff] }
  0x3d   :  { %284 = vmatprep.mubr.f32.mxu0 %v11959_v7  ;;  %8063 = vmatpush1.bf16.msra.mxu0 %v8062_v60  ;;  %v6570_v60 = vld [vmem:[%s12010_s3 + $0x138] sm:$0xff]  ;;  %v6588_v48 = vld [vmem:[%s12010_s3 + $0x1c8] sm:$0xff] }
  0x3e   :  { %8087 = vmatpush3.bf16.msra.mxu1 %v8084_v55  ;;  %8089 = vmatprep.subr.bf16.mxu0 %v8088_v61  ;;  %v6571_v55 = vld [vmem:[%s12010_s3 + $0x140] sm:$0xff]  ;;  %v6574_v61 = vld [vmem:[%s12010_s3 + $0x158] sm:$0xff]  ;;  %v8138_v8 = vpack.c.bf16 %v6570_v60, %v6567_v59 }
  0x3f   :  { %8113 = vmatprep.subr.bf16.mxu1 %v8112_v62  ;;  %v8136_v58 = vpack.c.bf16 %v6571_v55, %v6568_v54 }
  0x40   :  { %6481 = vmatmul.mubr.msk.f32.gmra.mrb[12].mxu0 %vm159_vm0, %v9252_v39 }
  0x41   :  { %7396 = vmatmul.mubr.msk.f32.vlgmr.msra.gmra.mrb[0].mxu1 %vm159_vm0, %v9326_v1  ;;  %290 = vmatprep.mubr.f32.mxu0 %v11959_v7 }
  0x42   :  { %8115 = vmatpush3.bf16.msra.mxu1 %v8112_v62  ;;  %7398 = vmatprep.mubr.msk.f32.mxu1 %vm159_vm0, %v9331_v3  ;;  %v6577_v62 = vld [vmem:[%s12010_s3 + $0x170] sm:$0xff] }
  0x43   :  { %8117 = vmatprep.subr.bf16.mxu1 %v8116_v2 }
  0x44   :  { %6482 = vmatmul.mubr.msk.f32.gmra.mrb[14].mxu0 %vm159_vm0, %v9281_v49 }
  0x45   :  { %490 = vmatprep.mubr.f32.mxu0 %v11959_v7  ;;  %7399 = vmatmul.mubr.msk.f32.gmra.mrb[2].mxu1 %vm159_vm0, %v9355_v10 }
  0x46   :  { %8119 = vmatpush3.bf16.msra.mxu1 %v8116_v2  ;;  %7401 = vmatprep.mubr.msk.f32.mxu1 %vm159_vm0, %v9366_v14  ;;  %v6546_v2 = vld [vmem:[%s12008_s26 + $0x338] sm:$0xff] }
  0x47   :  { %8121 = vmatprep.subr.bf16.mxu1 %v8120_v11 }
  0x48   :  { %6491 = vmatmul.mubr.msk.f32.vlgmr.msra.gmra.mrb[0].mxu0 %vm159_vm0, %v9287_v51 }
  0x49   :  { %8091 = vmatpush1.bf16.msra.mxu0 %v8090_v17  ;;  %496 = vmatprep.mubr.f32.mxu0 %v11959_v7  ;;  %v6583_v17 = vld [vmem:[%s12010_s3 + $0x1a0] sm:$0xff] }
  0x4a   :  { %8123 = vmatpush3.bf16.msra.mxu1 %v8120_v11  ;;  %8093 = vmatprep.subr.bf16.mxu0 %v8092_v18  ;;  %v8140_v11 = vpack.c.bf16 %v6577_v62, %v6574_v61  ;;  %v8108_v18 = vpack.c.bf16 %v6549_v4, %v6546_v2 }
  0x4b   :  { %8125 = vmatprep.subr.bf16.mxu1 %v8124_v22  ;;  %7402 = vmatmul.mubr.msk.f32.gmra.mrb[4].mxu1 %vm159_vm0, %v9398_v26 }
  0x4c   :  { %6492 = vmatmul.mubr.msk.f32.gmra.mrb[2].mxu0 %vm159_vm0, %v9326_v1  ;;  %7404 = vmatprep.mubr.msk.f32.mxu1 %vm159_vm0, %v9410_v31 }
  0x4d   :  { %502 = vmatprep.mubr.f32.mxu0 %v11959_v7  ;;  %8095 = vmatpush1.bf16.msra.mxu0 %v8094_v30  ;;  %v8144_v30 = vpack.c.bf16 %v6583_v17, %v6580_v16 }
  0x4e   :  { %8127 = vmatpush3.bf16.msra.mxu1 %v8124_v22  ;;  %8097 = vmatprep.subr.bf16.mxu0 %v8096_v32  ;;  %v6569_v22 = vld [vmem:[%s12010_s3 + $0x130] sm:$0xff]  ;;  %v6579_v32 = vld [vmem:[%s12010_s3 + $0x180] sm:$0xff] }
  0x4f   :  { %8129 = vmatprep.subr.bf16.mxu1 %v8128_v35  ;;  %7405 = vmatmul.mubr.msk.f32.gmra.mrb[6].mxu1 %vm159_vm0, %v9433_v40  ;;  %v8160_v38 = vpack.c.bf16 %v6572_v23, %v6569_v22  ;;  %v8146_v43 = vpack.c.bf16 %v6582_v33, %v6579_v32 }
  0x50   :  { %6493 = vmatmul.mubr.msk.f32.gmra.mrb[4].mxu0 %vm159_vm0, %v9331_v3  ;;  %7431 = vmatprep.mubr.msk.f32.mxu1 %vm159_vm0, %v9445_v45 }
  0x51   :  { %508 = vmatprep.mubr.f32.mxu0 %v11959_v7  ;;  %8099 = vmatpush1.bf16.msra.mxu0 %v8098_v44  ;;  %v9577_v44 = vld [vmem:[%s12009_s27 + $0xb0] sm:$0xff] }
  0x52   :  { %8131 = vmatpush3.bf16.msra.mxu1 %v8128_v35  ;;  %8101 = vmatprep.subr.bf16.mxu0 %v8100_v46  ;;  %v6586_v35 = vld [vmem:[%s12010_s3 + $0x1b8] sm:$0xff] }
  0x53   :  { %8133 = vmatprep.subr.bf16.mxu1 %v8132_v50  ;;  %v8148_v46 = vpack.c.bf16 %v6589_v36, %v6586_v35 }
  0x54   :  { %6494 = vmatmul.mubr.msk.f32.gmra.mrb[6].mxu0 %vm159_vm0, %v9355_v10 }
  0x55   :  { %514 = vmatprep.mubr.f32.mxu0 %v11959_v7  ;;  %8103 = vmatpush1.bf16.msra.mxu0 %v8102_v56 }
  0x56   :  { %8135 = vmatpush3.bf16.msra.mxu1 %v8132_v50  ;;  %8105 = vmatprep.subr.bf16.mxu0 %v8104_v57 }
  0x57   :  { %8137 = vmatprep.subr.bf16.mxu1 %v8136_v58 }
  0x58   :  { %6495 = vmatmul.mubr.msk.f32.gmra.mrb[8].mxu0 %vm159_vm0, %v9366_v14 }
  0x59   :  { %7432 = vmatmul.mubr.msk.f32.vlgmr.msra.gmra.mrb[0].mxu1 %vm159_vm0, %v9502_v6  ;;  %520 = vmatprep.mubr.f32.mxu0 %v11959_v7 }
  0x5a   :  { %8139 = vmatpush1.bf16.msra.mxu1 %v8138_v8  ;;  %7434 = vmatprep.mubr.msk.f32.mxu1 %vm159_vm0, %v9507_v9 }
  0x5b   :  { %8141 = vmatprep.subr.bf16.mxu1 %v8140_v11  ;;  %8107 = vmatpush1.bf16.msra.mxu0 %v8106_v15 }
  0x5c   :  { %6496 = vmatmul.mubr.msk.f32.gmra.mrb[10].mxu0 %vm159_vm0, %v9398_v26  ;;  %8109 = vmatprep.subr.bf16.mxu0 %v8108_v18 }
  0x5d   :  { %7435 = vmatmul.mubr.msk.f32.gmra.mrb[2].mxu1 %vm159_vm0, %v9543_v25  ;;  %526 = vmatprep.mubr.f32.mxu0 %v11959_v7 }
  0x5e   :  { %8143 = vmatpush1.bf16.msra.mxu1 %v8142_v27  ;;  %7437 = vmatprep.mubr.msk.f32.mxu1 %vm159_vm0, %v9548_v29 }
  0x5f   :  { %8145 = vmatprep.subr.bf16.mxu1 %v8144_v30  ;;  %8111 = vmatpush1.bf16.msra.mxu0 %v8110_v34 }
  0x60   :  { %26 = vsyncpa [#allocation3], 0  ;;  %6497 = vmatmul.mubr.msk.f32.gmra.mrb[12].mxu0 %vm159_vm0, %v9410_v31  ;;  %v6592_v50 = vld [vmem:[%s12010_s3 + $0x1e8] sm:$0xff]  ;;  %v6595_v52 = vld [vmem:[%s12010_s3 + $0x200] sm:$0xff]  ;;  %8161 = vmatprep.subr.bf16.mxu0 %v8160_v38  ;;  %s12011_s0 = sld [smem:[#allocation47_spill]]  ;;  %v8150_v56 = vpack.c.bf16 %v6588_v48, %v6585_v47  ;;  %s12012_s26 = sld [smem:[#allocation48_spill]] }
  0x61   :  { %7438 = vmatmul.mubr.msk.f32.gmra.mrb[4].mxu1 %vm159_vm0, %v9572_v42  ;;  %532 = vmatprep.mubr.f32.mxu0 %v11959_v7  ;;  %v9607_v55 = vld [vmem:[%s12009_s27 + $0xb8] sm:$0xff]  ;;  %v6591_v57 = vld [vmem:[%s12010_s3 + $0x1e0] sm:$0xff]  ;;  %v8152_v58 = vpack.c.bf16 %v6595_v52, %v6592_v50  ;;  %v6601_v63 = vld [vmem:[%s12010_s3 + $0x230] sm:$0xff]  ;;  %vm1842_vm1 = vcmask 359424   ;;  %vm1979_vm2 = vcmask 1043456   ;;  %vm8894_vm3 = vmmov 1  }
  0x62   :  { %8147 = vmatpush1.bf16.msra.mxu1 %v8146_v43  ;;  %7440 = vmatprep.mubr.msk.f32.mxu1 %vm159_vm0, %v9577_v44  ;;  %v6594_v59 = vld [vmem:[%s12010_s3 + $0x1f8] sm:$0xff]  ;;  %v6575_v60 = vld [vmem:[%s12010_s3 + $0x160] sm:$0xff]  ;;  %v6597_v8 = vld [vmem:[%s12010_s3 + $0x210] sm:$0xff]  ;;  %vm8895_vm5 = vmmov 0   ;;  %s12057_s1 = sld [smem:[#allocation49_spill]]  ;;  %vm2482_vm6 = vcmask 162816  }
  0x63   :  { %8149 = vmatprep.subr.bf16.mxu1 %v8148_v46  ;;  %v6578_v61 = vld [vmem:[%s12010_s3 + $0x178] sm:$0xff]  ;;  %v8154_v4 = vpack.c.bf16 %v6594_v59, %v6591_v57  ;;  %v6600_v13 = vld [vmem:[%s12010_s3 + $0x228] sm:$0xff]  ;;  %v6581_v15 = vld [vmem:[%s12010_s3 + $0x190] sm:$0xff]  ;;  %vm2958_vm7 = vcmask 523264   ;;  %vm4192_vm8 = vcmask 1042432   ;;  %vm4149_vm9 = vcmask 326656  }
  0x64   :  { %6498 = vmatmul.mubr.msk.f32.gmra.mrb[14].mxu0 %vm159_vm0, %v9433_v40  ;;  %v6598_v62 = vld [vmem:[%s12010_s3 + $0x218] sm:$0xff]  ;;  %v8164_v11 = vpack.c.bf16 %v6578_v61, %v6575_v60  ;;  %v6584_v16 = vld [vmem:[%s12010_s3 + $0x1a8] sm:$0xff]  ;;  %v960_v18 = vld [vmem:[%s12010_s3 + $0x20] sm:$0xff]  ;;  %v8158_v22 = vpack.c.bf16 %v6600_v13, %v6597_v8  ;;  %vm4169_vm10 = vcmask 285696   ;;  %vm4155_vm11 = vcmask 324608  }
  0x65   :  { %7441 = vmatmul.mubr.msk.f32.gmra.mrb[6].mxu1 %vm159_vm0, %v9607_v55  ;;  %778 = vmatprep.mubr.f32.mxu0 %v11959_v7  ;;  %v8156_v12 = vpack.c.bf16 %v6601_v63, %v6598_v62  ;;  %v957_v17 = vld [vmem:[%s12010_s3 + $0x8] sm:$0xff]  ;;  %v8168_v23 = vpack.c.bf16 %v6584_v16, %v6581_v15  ;;  %v6587_v27 = vld [vmem:[%s12010_s3 + $0x1c0] sm:$0xff]  ;;  %v6590_v30 = vld [vmem:[%s12010_s3 + $0x1d8] sm:$0xff]  ;;  %vm4175_vm12 = vcmask 283648   ;;  %vm4538_vm13 = vcmask 1044480  }
  0x66   :  { %v1744_v53 = vld [vmem:[%s12011_s0] sm:$0xff]  ;;  %v1746_v54 = vld [vmem:[%s12011_s0 + $0x10] sm:$0xff]  ;;  %v1745_v0 = vld [vmem:[%s12011_s0 + $0x8] sm:$0xff]  ;;  %8151 = vmatpush1.bf16.msra.mxu1 %v8150_v56  ;;  %1093 = vmatprep.mubr.f32.mxu1 %v11959_v7  ;;  %v8184_v32 = vpack.c.bf16 %v960_v18, %v957_v17  ;;  %v8172_v46 = vpack.c.bf16 %v6590_v30, %v6587_v27  ;;  %vm4534_vm14 = vcmask 39936   ;;  %vm4875_vm15 = vcmask 244736  }
  0x67   :  { %1754 = vperm.xlu0 %8857, %v1744_v53   ;;  %1764 = vperm.xlu1 %8858, %v1746_v54   ;;  %v1747_v2 = vld [vmem:[%s12011_s0 + $0x18] sm:$0xff]  ;;  %v1748_v19 = vld [vmem:[%s12011_s0 + $0x20] sm:$0xff]  ;;  %v1749_v21 = vld [vmem:[%s12011_s0 + $0x28] sm:$0xff] }
  0x68   :  { %8153 = vmatprep.subr.bf16.mxu1 %v8152_v58  ;;  %6551 = vmatmul.mubr.msk.f32.vlgmr.msra.gmra.mrb[0].mxu0 %vm159_vm0, %v9445_v45  ;;  %v956_v33 = vld [vmem:[%s12010_s3] sm:$0xff]  ;;  %v959_v34 = vld [vmem:[%s12010_s3 + $0x18] sm:$0xff]  ;;  %v1750_v35 = vld [vmem:[%s12011_s0 + $0x30] sm:$0xff] }
  0x69   :  { %8163 = vmatpush3.bf16.msra.mxu0 %v8160_v38  ;;  %784 = vmatprep.mubr.f32.mxu0 %v11959_v7  ;;  %v963_v36 = vld [vmem:[%s12010_s3 + $0x38] sm:$0xff]  ;;  %v966_v38 = vld [vmem:[%s12010_s3 + $0x50] sm:$0xff]  ;;  %v8186_v47 = vpack.c.bf16 %v959_v34, %v956_v33  ;;  %v965_v52 = vld [vmem:[%s12010_s3 + $0x48] sm:$0xff] }
  0x6a   :  { %8155 = vmatpush1.bf16.msra.mxu1 %v8154_v4  ;;  %8165 = vmatprep.subr.bf16.mxu0 %v8164_v11  ;;  %v1751_v43 = vld [vmem:[%s12011_s0 + $0x38] sm:$0xff]  ;;  %v962_v48 = vld [vmem:[%s12010_s3 + $0x30] sm:$0xff]  ;;  %v8188_v50 = vpack.c.bf16 %v966_v38, %v963_v36  ;;  %v6596_v54 = vld [vmem:[%s12010_s3 + $0x208] sm:$0xff] }
  0x6b   :  { %1759 = vperm.xlu0 %8857, %v1745_v0   ;;  %1769 = vperm.xlu1 %8858, %v1747_v2   ;;  %v6593_v53 = vld [vmem:[%s12010_s3 + $0x1f0] sm:$0xff]  ;;  %v969_v56 = vld [vmem:[%s12010_s3 + $0x68] sm:$0xff]  ;;  %v972_v57 = vld [vmem:[%s12010_s3 + $0x80] sm:$0xff]  ;;  %v8190_v58 = vpack.c.bf16 %v965_v52, %v962_v48 }
  0x6c   :  { %8157 = vmatprep.subr.bf16.mxu1 %v8156_v12  ;;  %6552 = vmatmul.mubr.msk.f32.gmra.mrb[2].mxu0 %vm159_vm0, %v9502_v6  ;;  %v8176_v59 = vpack.c.bf16 %v6596_v54, %v6593_v53  ;;  %v968_v60 = vld [vmem:[%s12010_s3 + $0x60] sm:$0xff]  ;;  %v8192_v61 = vpack.c.bf16 %v972_v57, %v969_v56  ;;  %v971_v62 = vld [vmem:[%s12010_s3 + $0x78] sm:$0xff]  ;;  %v978_v4 = vld [vmem:[%s12010_s3 + $0xb0] sm:$0xff] }
  0x6d   :  { %790 = vmatprep.mubr.f32.mxu0 %v11959_v7  ;;  %8167 = vmatpush3.bf16.msra.mxu0 %v8164_v11  ;;  %v6599_v63 = vld [vmem:[%s12010_s3 + $0x220] sm:$0xff]  ;;  %v6602_v0 = vld [vmem:[%s12010_s3 + $0x238] sm:$0xff]  ;;  %v8194_v8 = vpack.c.bf16 %v971_v62, %v968_v60  ;;  %v974_v12 = vld [vmem:[%s12010_s3 + $0x90] sm:$0xff] }
  0x6e   :  { %8159 = vmatpush1.bf16.msra.mxu1 %v8158_v22  ;;  %8169 = vmatprep.subr.bf16.mxu0 %v8168_v23  ;;  %v975_v2 = vld [vmem:[%s12010_s3 + $0x98] sm:$0xff]  ;;  %v8180_v11 = vpack.c.bf16 %v6602_v0, %v6599_v63  ;;  %v977_v15 = vld [vmem:[%s12010_s3 + $0xa8] sm:$0xff]  ;;  %v958_v16 = vld [vmem:[%s12010_s3 + $0x10] sm:$0xff] }
  0x6f   :  { %1774 = vperm.xlu0 %8857, %v1748_v19   ;;  %1779 = vperm.xlu1 %8858, %v1749_v21   ;;  %v8196_v13 = vpack.c.bf16 %v978_v4, %v975_v2  ;;  %v961_v17 = vld [vmem:[%s12010_s3 + $0x28] sm:$0xff]  ;;  %v984_v19 = vld [vmem:[%s12010_s3 + $0xe0] sm:$0xff]  ;;  %v8198_v21 = vpack.c.bf16 %v977_v15, %v974_v12  ;;  %v983_v30 = vld [vmem:[%s12010_s3 + $0xd8] sm:$0xff] }
  0x70   :  { %8185 = vmatprep.subr.bf16.mxu1 %v8184_v32  ;;  %6553 = vmatmul.mubr.msk.f32.gmra.mrb[4].mxu0 %vm159_vm0, %v9507_v9  ;;  %v981_v18 = vld [vmem:[%s12010_s3 + $0xc8] sm:$0xff]  ;;  %v8208_v22 = vpack.c.bf16 %v961_v17, %v958_v16  ;;  %v980_v27 = vld [vmem:[%s12010_s3 + $0xc0] sm:$0xff]  ;;  %v987_v32 = vld [vmem:[%s12010_s3 + $0xf8] sm:$0xff] }
  0x71   :  { %6603 = vmatmul.mubr.msk.f32.vlgmr.msra.gmra.mrb[8].mxu1 %vm159_vm0, %v9095_v41  ;;  %796 = vmatprep.mubr.f32.mxu0 %v11959_v7  ;;  %v990_v33 = vld [vmem:[%s12010_s3 + $0x110] sm:$0xff]  ;;  %v8202_v34 = vpack.c.bf16 %v983_v30, %v980_v27  ;;  %v989_v38 = vld [vmem:[%s12010_s3 + $0x108] sm:$0xff]  ;;  %v967_v48 = vld [vmem:[%s12010_s3 + $0x58] sm:$0xff] }
  0x72   :  { %1099 = vmatprep.mubr.f32.mxu1 %v11959_v7  ;;  %8171 = vmatpush3.bf16.msra.mxu0 %v8168_v23  ;;  %v8200_v23 = vpack.c.bf16 %v984_v19, %v981_v18  ;;  %v986_v36 = vld [vmem:[%s12010_s3 + $0xf0] sm:$0xff]  ;;  %v973_v56 = vld [vmem:[%s12010_s3 + $0x88] sm:$0xff]  ;;  %v976_v57 = vld [vmem:[%s12010_s3 + $0xa0] sm:$0xff] }
  0x73   :  { %1784 = vperm.xlu0 %8857, %v1750_v35   ;;  %1789 = vperm.xlu1 %8858, %v1751_v43   ;;  %v8204_v35 = vpack.c.bf16 %v990_v33, %v987_v32  ;;  %v6636_v43 = vld [vmem:[%s12010_s3 + $0x248] sm:$0xff]  ;;  %v970_v54 = vld [vmem:[%s12010_s3 + $0x70] sm:$0xff]  ;;  %v991_v12 = vld [vmem:[%s12010_s3 + $0x118] sm:$0xff] }
  0x74   :  { %8173 = vmatprep.subr.bf16.mxu0 %v8172_v46  ;;  %8187 = vmatpush1.bf16.msra.mxu1 %v8186_v47  ;;  %v964_v47 = vld [vmem:[%s12010_s3 + $0x40] sm:$0xff]  ;;  %v985_v62 = vld [vmem:[%s12010_s3 + $0xe8] sm:$0xff]  ;;  %v6641_v2 = vld [vmem:[%s12010_s3 + $0x270] sm:$0xff] }
  0x75   :  { %6554 = vmatmul.mubr.msk.f32.gmra.mrb[6].mxu0 %vm159_vm0, %v9543_v25  ;;  %8189 = vmatprep.subr.bf16.mxu1 %v8188_v50  ;;  %v8206_v50 = vpack.c.bf16 %v989_v38, %v986_v36  ;;  %v8212_v53 = vpack.c.bf16 %v967_v48, %v964_v47  ;;  %v6648_v4 = vld [vmem:[%s12010_s3 + $0x2a8] sm:$0xff]  ;;  %v6647_v16 = vld [vmem:[%s12010_s3 + $0x2a0] sm:$0xff]  ;;  %v6654_v17 = vld [vmem:[%s12010_s3 + $0x2d8] sm:$0xff] }
  0x76   :  { %6604 = vmatmul.mubr.msk.f32.gmra.mrb[10].mxu1 %vm159_vm0, %v9156_v5  ;;  %802 = vmatprep.mubr.f32.mxu0 %v11959_v7  ;;  %v6637_v19 = vld [vmem:[%s12010_s3 + $0x250] sm:$0xff]  ;;  %v6656_v30 = vld [vmem:[%s12010_s3 + $0x2e8] sm:$0xff]  ;;  %v6663_v32 = vld [vmem:[%s12010_s3 + $0x320] sm:$0xff] }
  0x77   :  { %1105 = vmatprep.mubr.f32.mxu1 %v11959_v7  ;;  %8175 = vmatpush3.bf16.msra.mxu0 %v8172_v46  ;;  %v6639_v46 = vld [vmem:[%s12010_s3 + $0x260] sm:$0xff]  ;;  %v6653_v27 = vld [vmem:[%s12010_s3 + $0x2d0] sm:$0xff]  ;;  %v6666_v47 = vld [vmem:[%s12010_s3 + $0x338] sm:$0xff] }
  0x78   :  { %8191 = vmatpush1.bf16.msra.mxu1 %v8190_v58  ;;  %8177 = vmatprep.subr.bf16.mxu0 %v8176_v59  ;;  %v8232_v52 = vpack.c.bf16 %v6639_v46, %v6636_v43  ;;  %v6635_v58 = vld [vmem:[%s12010_s3 + $0x240] sm:$0xff]  ;;  %v8246_v36 = vpack.c.bf16 %v6656_v30, %v6653_v27  ;;  %v6662_v46 = vld [vmem:[%s12010_s3 + $0x318] sm:$0xff]  ;;  %v6669_v48 = vld [vmem:[%s12010_s3 + $0x350] sm:$0xff] }
  0x79   :  { %6555 = vmatmul.mubr.msk.f32.gmra.mrb[8].mxu0 %vm159_vm0, %v9548_v29  ;;  %8193 = vmatprep.subr.bf16.mxu1 %v8192_v61  ;;  %v982_v61 = vld [vmem:[%s12010_s3 + $0xd0] sm:$0xff]  ;;  %v6659_v43 = vld [vmem:[%s12010_s3 + $0x300] sm:$0xff]  ;;  %vm10221_vm4 = vmpackc.low %vm1979_vm2, %vm8894_vm3 }
  0x7a   :  { %6605 = vmatmul.mubr.msk.f32.gmra.mrb[12].mxu1 %vm159_vm0, %v9190_v20  ;;  %808 = vmatprep.mubr.f32.mxu0 %v11959_v7  ;;  %v1946_v30 = vld [vmem:[%s12012_s26 + $0x40] sm:$0xff] }
  0x7b   :  { %1111 = vmatprep.mubr.f32.mxu1 %v11959_v7  ;;  %8179 = vmatpush3.bf16.msra.mxu0 %v8176_v59  ;;  %v6638_v59 = vld [vmem:[%s12010_s3 + $0x258] sm:$0xff] }
  0x7c   :  { %8195 = vmatpush1.bf16.msra.mxu1 %v8194_v8  ;;  %8181 = vmatprep.subr.bf16.mxu0 %v8180_v11  ;;  %v8234_v63 = vpack.c.bf16 %v6638_v59, %v6635_v58  ;;  %v8224_v8 = vpack.c.bf16 %v985_v62, %v982_v61  ;;  %v6658_v58 = vld [vmem:[%s12010_s3 + $0x2f8] sm:$0xff] }
  0x7d   :  { %6556 = vmatmul.mubr.msk.f32.gmra.mrb[10].mxu0 %vm159_vm0, %v9572_v42  ;;  %8197 = vmatprep.subr.bf16.mxu1 %v8196_v13  ;;  %v1941_v61 = vld [vmem:[%s12012_s26 + $0x18] sm:$0xff] }
  0x7e   :  { %6606 = vmatmul.mubr.msk.f32.gmra.mrb[14].mxu1 %vm159_vm0, %v9203_v24  ;;  %814 = vmatprep.mubr.f32.mxu0 %v11959_v7 }
  0x7f   :  { %1117 = vmatprep.mubr.f32.mxu1 %v11959_v7  ;;  %8183 = vmatpush3.bf16.msra.mxu0 %v8180_v11  ;;  %v988_v11 = vld [vmem:[%s12010_s3 + $0x100] sm:$0xff] }
  0x80   :  { %8199 = vmatpush1.bf16.msra.mxu1 %v8198_v21  ;;  %8209 = vmatprep.subr.bf16.mxu0 %v8208_v22  ;;  %v8228_v18 = vpack.c.bf16 %v991_v12, %v988_v11  ;;  %v6640_v21 = vld [vmem:[%s12010_s3 + $0x268] sm:$0xff]  ;;  %v1960_v12 = vld [vmem:[%s12012_s26 + $0xb0] sm:$0xff] }
  0x81   :  { %6557 = vmatmul.mubr.msk.f32.gmra.mrb[12].mxu0 %vm159_vm0, %v9577_v44  ;;  %8201 = vmatprep.subr.bf16.mxu1 %v8200_v23  ;;  %v8256_v33 = vpack.c.bf16 %v6640_v21, %v6637_v19  ;;  %v11961_v21 = vmov 0.0|0.0  }
  0x82   :  { %6607 = vmatmul.mubr.msk.f32.gmra.mrb[16].mxu1 %vm159_vm0, %v9217_v28  ;;  %820 = vmatprep.mubr.f32.mxu0 %v11959_v7 }
  0x83   :  { %1123 = vmatprep.mubr.f32.mxu1 %v11959_v7 }
  0x84   :  { %8203 = vmatpush1.bf16.msra.mxu1 %v8202_v34  ;;  %v6643_v34 = vld [vmem:[%s12010_s3 + $0x280] sm:$0xff] }
  0x85   :  { %6558 = vmatmul.mubr.msk.f32.gmra.mrb[14].mxu0 %vm159_vm0, %v9607_v55  ;;  %8205 = vmatprep.subr.bf16.mxu1 %v8204_v35  ;;  %v6646_v35 = vld [vmem:[%s12010_s3 + $0x298] sm:$0xff] }
  0x86   :  { %6608 = vmatmul.mubr.msk.f32.gmra.mrb[18].mxu1 %vm159_vm0, %v9246_v37  ;;  %7467 = vmatprep.mubr.msk.f32.mxu0 %vm159_vm0, %v9095_v41  ;;  %v8216_v41 = vpack.c.bf16 %v973_v56, %v970_v54  ;;  %v8250_v54 = vpack.c.bf16 %v6662_v46, %v6659_v43  ;;  %v8252_v56 = vpack.c.bf16 %v6669_v48, %v6666_v47  ;;  %v1964_v46 = vld [vmem:[%s12012_s26 + $0xd0] sm:$0xff]  ;;  %v1965_v47 = vld [vmem:[%s12012_s26 + $0xd8] sm:$0xff] }
  0x87   :  { %1129 = vmatprep.mubr.f32.mxu1 %v11959_v7 }
  0x88   :  { %8207 = vmatpush1.bf16.msra.mxu1 %v8206_v50  ;;  %v8260_v50 = vpack.c.bf16 %v6646_v35, %v6643_v34  ;;  %v1972_v35 = vld [vmem:[%s12012_s26 + $0x110] sm:$0xff] }
  0x89   :  { %7468 = vmatmul.mubr.msk.f32.vlgmr.msra.gmra.mrb[16].mxu0 %vm159_vm0, %v9156_v5  ;;  %8233 = vmatprep.subr.bf16.mxu1 %v8232_v52  ;;  %v979_v5 = vld [vmem:[%s12010_s3 + $0xb8] sm:$0xff]  ;;  %v6649_v52 = vld [vmem:[%s12010_s3 + $0x2b0] sm:$0xff] }
  0x8a   :  { %6609 = vmatmul.mubr.msk.f32.gmra.mrb[20].mxu1 %vm159_vm0, %v9252_v39  ;;  %8211 = vmatpush3.bf16.msra.mxu0 %v8208_v22  ;;  %v8220_v60 = vpack.c.bf16 %v979_v5, %v976_v57  ;;  %v6668_v57 = vld [vmem:[%s12010_s3 + $0x348] sm:$0xff] }
  0x8b   :  { %1135 = vmatprep.mubr.f32.mxu1 %v11959_v7  ;;  %8213 = vmatprep.subr.bf16.mxu0 %v8212_v53 }
  0x8c   :  { %7470 = vmatprep.mubr.msk.f32.mxu0 %vm159_vm0, %v9190_v20  ;;  %v6642_v20 = vld [vmem:[%s12010_s3 + $0x278] sm:$0xff] }
  0x8d   :  { %7471 = vmatmul.mubr.msk.f32.gmra.mrb[18].mxu0 %vm159_vm0, %v9203_v24  ;;  %v6645_v24 = vld [vmem:[%s12010_s3 + $0x290] sm:$0xff] }
  0x8e   :  { %6610 = vmatmul.mubr.msk.f32.gmra.mrb[22].mxu1 %vm159_vm0, %v9281_v49  ;;  %8215 = vmatpush3.bf16.msra.mxu0 %v8212_v53  ;;  %v8236_v0 = vpack.c.bf16 %v6645_v24, %v6642_v20  ;;  %v6652_v53 = vld [vmem:[%s12010_s3 + $0x2c8] sm:$0xff]  ;;  %v6661_v20 = vld [vmem:[%s12010_s3 + $0x310] sm:$0xff] }
  0x8f   :  { %1311 = vmatprep.mubr.f32.mxu1 %v11959_v7  ;;  %8217 = vmatprep.subr.bf16.mxu0 %v8216_v41  ;;  %v8264_v5 = vpack.c.bf16 %v6652_v53, %v6649_v52  ;;  %v10171_v53 = vpack.c.bf16 %v1965_v47, %v1964_v46 }
  0x90   :  { %7473 = vmatprep.mubr.msk.f32.mxu0 %vm159_vm0, %v9217_v28  ;;  %v6644_v28 = vld [vmem:[%s12010_s3 + $0x288] sm:$0xff] }
  0x91   :  { %7474 = vmatmul.mubr.msk.f32.gmra.mrb[20].mxu0 %vm159_vm0, %v9246_v37  ;;  %v6651_v37 = vld [vmem:[%s12010_s3 + $0x2c0] sm:$0xff]  ;;  %v8238_v13 = vpack.c.bf16 %v6644_v28, %v6641_v2 }
  0x92   :  { %6619 = vmatmul.mubr.msk.f32.vlgmr.msra.gmra.mrb[8].mxu1 %vm159_vm0, %v9287_v51  ;;  %8219 = vmatpush3.bf16.msra.mxu0 %v8216_v41  ;;  %v8240_v15 = vpack.c.bf16 %v6651_v37, %v6648_v4  ;;  %v6665_v41 = vld [vmem:[%s12010_s3 + $0x330] sm:$0xff]  ;;  %v1942_v28 = vld [vmem:[%s12012_s26 + $0x20] sm:$0xff]  ;;  %v1943_v4 = vld [vmem:[%s12012_s26 + $0x28] sm:$0xff] }
  0x93   :  { %1317 = vmatprep.mubr.f32.mxu1 %v11959_v7  ;;  %8221 = vmatprep.subr.bf16.mxu0 %v8220_v60  ;;  %v8254_v59 = vpack.c.bf16 %v6668_v57, %v6665_v41  ;;  %v10089_v37 = vpack.c.bf16 %v1943_v4, %v1942_v28 }
  0x94   :  { %8235 = vmatpush1.bf16.msra.mxu1 %v8234_v63  ;;  %7476 = vmatprep.mubr.msk.f32.mxu0 %vm159_vm0, %v9252_v39  ;;  %v6650_v39 = vld [vmem:[%s12010_s3 + $0x2b8] sm:$0xff]  ;;  %v1958_v63 = vld [vmem:[%s12012_s26 + $0xa0] sm:$0xff] }
  0x95   :  { %7477 = vmatmul.mubr.msk.f32.gmra.mrb[22].mxu0 %vm159_vm0, %v9281_v49  ;;  %8237 = vmatprep.subr.bf16.mxu1 %v8236_v0  ;;  %v6657_v49 = vld [vmem:[%s12010_s3 + $0x2f0] sm:$0xff]  ;;  %v8242_v22 = vpack.c.bf16 %v6650_v39, %v6647_v16  ;;  %v1959_v0 = vld [vmem:[%s12012_s26 + $0xa8] sm:$0xff]  ;;  %v1945_v39 = vld [vmem:[%s12012_s26 + $0x38] sm:$0xff] }
  0x96   :  { %6620 = vmatmul.mubr.msk.f32.gmra.mrb[10].mxu1 %vm159_vm0, %v9326_v1  ;;  %8223 = vmatpush3.bf16.msra.mxu0 %v8220_v60  ;;  %v8244_v23 = vpack.c.bf16 %v6657_v49, %v6654_v17  ;;  %v6670_v60 = vld [vmem:[%s12010_s3 + $0x358] sm:$0xff]  ;;  %v10081_v2 = vpack.c.bf16 %v1959_v0, %v1958_v63  ;;  %v1944_v16 = vld [vmem:[%s12012_s26 + $0x30] sm:$0xff]  ;;  %v1970_v17 = vld [vmem:[%s12012_s26 + $0x100] sm:$0xff] }
  0x97   :  { %1323 = vmatprep.mubr.f32.mxu1 %v11959_v7  ;;  %8225 = vmatprep.subr.bf16.mxu0 %v8224_v8  ;;  %v1971_v49 = vld [vmem:[%s12012_s26 + $0x108] sm:$0xff]  ;;  %v1950_v63 = vld [vmem:[%s12012_s26 + $0x60] sm:$0xff] }
  0x98   :  { %8239 = vmatpush1.bf16.msra.mxu1 %v8238_v13  ;;  %7503 = vmatprep.mubr.msk.f32.mxu0 %vm159_vm0, %v9287_v51  ;;  %v6660_v51 = vld [vmem:[%s12010_s3 + $0x308] sm:$0xff]  ;;  %v1961_v13 = vld [vmem:[%s12012_s26 + $0xb8] sm:$0xff]  ;;  %v10119_v19 = vpack.c.bf16 %v1971_v49, %v1970_v17 }
  0x99   :  { %8241 = vmatprep.subr.bf16.mxu1 %v8240_v15  ;;  %v8248_v38 = vpack.c.bf16 %v6663_v32, %v6660_v51  ;;  %v10103_v15 = vpack.c.bf16 %v1961_v13, %v1960_v12  ;;  %v1947_v51 = vld [vmem:[%s12012_s26 + $0x48] sm:$0xff] }
  0x9a   :  { %6621 = vmatmul.mubr.msk.f32.gmra.mrb[12].mxu1 %vm159_vm0, %v9331_v3  ;;  %8227 = vmatpush3.bf16.msra.mxu0 %v8224_v8  ;;  %v10144_v34 = vpack.c.bf16 %v1947_v51, %v1946_v30  ;;  %v1951_v0 = vld [vmem:[%s12012_s26 + $0x68] sm:$0xff]  ;;  %v1968_v30 = vld [vmem:[%s12012_s26 + $0xf0] sm:$0xff]  ;;  %v1969_v51 = vld [vmem:[%s12012_s26 + $0xf8] sm:$0xff] }
  0x9b   :  { %1329 = vmatprep.mubr.f32.mxu1 %v11959_v7  ;;  %8229 = vmatprep.subr.bf16.mxu0 %v8228_v18  ;;  %v10242_v17 = vpack.c.bf16 %v1951_v0, %v1950_v63 }
  0x9c   :  { %8243 = vmatpush1.bf16.msra.mxu1 %v8242_v22  ;;  %v1962_v22 = vld [vmem:[%s12012_s26 + $0xc0] sm:$0xff] }
  0x9d   :  { %8245 = vmatprep.subr.bf16.mxu1 %v8244_v23  ;;  %v1963_v23 = vld [vmem:[%s12012_s26 + $0xc8] sm:$0xff] }
  0x9e   :  { %6622 = vmatmul.mubr.msk.f32.gmra.mrb[14].mxu1 %vm159_vm0, %v9355_v10  ;;  %8231 = vmatpush3.bf16.msra.mxu0 %v8228_v18  ;;  %v10117_v18 = vpack.c.bf16 %v1945_v39, %v1944_v16  ;;  %v10131_v27 = vpack.c.bf16 %v1963_v23, %v1962_v22 }
  0x9f   :  { %1335 = vmatprep.mubr.f32.mxu1 %v11959_v7  ;;  %8257 = vmatprep.subr.bf16.mxu0 %v8256_v33 }
  0xa0   :  { %8247 = vmatpush1.bf16.msra.mxu1 %v8246_v36  ;;  %v1973_v36 = vld [vmem:[%s12012_s26 + $0x118] sm:$0xff] }
  0xa1   :  { %7504 = vmatmul.mubr.msk.f32.vlgmr.msra.gmra.mrb[16].mxu0 %vm159_vm0, %v9326_v1  ;;  %8249 = vmatprep.subr.bf16.mxu1 %v8248_v38  ;;  %v6655_v1 = vld [vmem:[%s12010_s3 + $0x2e0] sm:$0xff]  ;;  %v10153_v38 = vpack.c.bf16 %v1973_v36, %v1972_v35 }
  0xa2   :  { %6623 = vmatmul.mubr.msk.f32.gmra.mrb[16].mxu1 %vm159_vm0, %v9366_v14  ;;  %8259 = vmatpush3.bf16.msra.mxu0 %v8256_v33 }
  0xa3   :  { %1341 = vmatprep.mubr.f32.mxu1 %v11959_v7  ;;  %8261 = vmatprep.subr.bf16.mxu0 %v8260_v50 }
  0xa4   :  { %8251 = vmatpush1.bf16.msra.mxu1 %v8250_v54  ;;  %7506 = vmatprep.mubr.msk.f32.mxu0 %vm159_vm0, %v9331_v3  ;;  %v8268_v3 = vpack.c.bf16 %v6658_v58, %v6655_v1  ;;  %v1948_v54 = vld [vmem:[%s12012_s26 + $0x50] sm:$0xff]  ;;  %v1974_v1 = vld [vmem:[%s12012_s26 + $0x120] sm:$0xff]  ;;  %v1975_v58 = vld [vmem:[%s12012_s26 + $0x128] sm:$0xf] }
  0xa5   :  { %7507 = vmatmul.mubr.msk.f32.gmra.mrb[18].mxu0 %vm159_vm0, %v9355_v10  ;;  %8253 = vmatprep.subr.bf16.mxu1 %v8252_v56  ;;  %v6664_v10 = vld [vmem:[%s12010_s3 + $0x328] sm:$0xff]  ;;  %v1949_v56 = vld [vmem:[%s12012_s26 + $0x58] sm:$0xff] }
  0xa6   :  { %6624 = vmatmul.mubr.msk.f32.gmra.mrb[18].mxu1 %vm159_vm0, %v9398_v26  ;;  %8263 = vmatpush3.bf16.msra.mxu0 %v8260_v50  ;;  %v8272_v24 = vpack.c.bf16 %v6664_v10, %v6661_v20  ;;  %v10195_v20 = vpack.c.bf16 %v1975_v58, %v1974_v1  ;;  %v10279_v1 = vpack.c.bf16 %v1969_v51, %v1968_v30 }
  0xa7   :  { %1347 = vmatprep.mubr.f32.mxu1 %v11959_v7  ;;  %8265 = vmatprep.subr.bf16.mxu0 %v8264_v5 }
  0xa8   :  { %8255 = vmatpush1.bf16.msra.mxu1 %v8254_v59  ;;  %7509 = vmatprep.mubr.msk.f32.mxu0 %vm159_vm0, %v9366_v14  ;;  %v6667_v14 = vld [vmem:[%s12010_s3 + $0x340] sm:$0xff] }
  0xa9   :  { %7510 = vmatmul.mubr.msk.f32.gmra.mrb[20].mxu0 %vm159_vm0, %v9398_v26  ;;  %v8276_v26 = vpack.c.bf16 %v6670_v60, %v6667_v14 }
  0xaa   :  { %6625 = vmatmul.mubr.msk.f32.gmra.mrb[20].mxu1 %vm159_vm0, %v9410_v31  ;;  %8267 = vmatpush3.bf16.msra.mxu0 %v8264_v5  ;;  %v10183_v5 = vpack.c.bf16 %v1949_v56, %v1948_v54 }
  0xab   :  { %1353 = vmatprep.mubr.f32.mxu1 %v11959_v7  ;;  %8269 = vmatprep.subr.bf16.mxu0 %v8268_v3 }
  0xac   :  { %7512 = vmatprep.mubr.msk.f32.mxu0 %vm159_vm0, %v9410_v31  ;;  %v1954_v31 = vld [vmem:[%s12012_s26 + $0x80] sm:$0xff] }
  0xad   :  { %7513 = vmatmul.mubr.msk.f32.gmra.mrb[22].mxu0 %vm159_vm0, %v9433_v40 }
  0xae   :  { %6626 = vmatmul.mubr.msk.f32.gmra.mrb[22].mxu1 %vm159_vm0, %v9433_v40  ;;  %8271 = vmatpush3.bf16.msra.mxu0 %v8268_v3  ;;  %v1955_v40 = vld [vmem:[%s12012_s26 + $0x88] sm:$0xff] }
  0xaf   :  { %1566 = vmatprep.mubr.f32.mxu1 %v11959_v7  ;;  %8273 = vmatprep.subr.bf16.mxu0 %v8272_v24 }
  0xb0   :  { %7539 = vmatprep.mubr.msk.f32.mxu0 %vm159_vm0, %v9445_v45 }
  0xb2   :  { %6671 = vmatmul.mubr.msk.f32.vlgmr.msra.gmra.mrb[8].mxu1 %vm159_vm0, %v9445_v45  ;;  %8275 = vmatpush3.bf16.msra.mxu0 %v8272_v24  ;;  %v10045_v45 = vpack.c.bf16 %v1955_v40, %v1954_v31  ;;  %v1967_v31 = vld [vmem:[%s12012_s26 + $0xe8] sm:$0xff] }
  0xb3   :  { %1572 = vmatprep.mubr.f32.mxu1 %v11959_v7  ;;  %8277 = vmatprep.subr.bf16.mxu0 %v8276_v26 }
  0xb4   :  { %8281 = vmatprep.subr.bf16.mxu1 %v10045_v45 }
  0xb6   :  { %6672 = vmatmul.mubr.msk.f32.gmra.mrb[10].mxu1 %vm159_vm0, %v9502_v6  ;;  %8279 = vmatpush3.bf16.msra.mxu0 %v8276_v26  ;;  %v1966_v26 = vld [vmem:[%s12012_s26 + $0xe0] sm:$0xff] }
  0xb7   :  { %1578 = vmatprep.mubr.f32.mxu1 %v11959_v7  ;;  %8312 = vmatprep.subr.bf16.mxu0 %v11961_v21  ;;  %v10239_v13 = vpack.c.bf16 %v1967_v31, %v1966_v26 }
  0xb9   :  { %7540 = vmatmul.mubr.msk.f32.vlgmr.msra.gmra.mrb[16].mxu0 %vm159_vm0, %v9502_v6  ;;  %v1938_v6 = vld [vmem:[%s12012_s26] sm:$0xff] }
  0xba   :  { %6673 = vmatmul.mubr.msk.f32.gmra.mrb[12].mxu1 %vm159_vm0, %v9507_v9  ;;  %7542 = vmatprep.mubr.msk.f32.mxu0 %vm159_vm0, %v9507_v9  ;;  %v1939_v9 = vld [vmem:[%s12012_s26 + $0x8] sm:$0xff] }
  0xbb   :  { %1584 = vmatprep.mubr.f32.mxu1 %v11959_v7  ;;  %8314 = vmatpush3.bf16.msra.mxu0 %v10119_v19 }
  0xbc   :  { %8315 = vmatprep.subr.bf16.mxu0 %v11961_v21 }
  0xbd   :  { %7543 = vmatmul.mubr.msk.f32.gmra.mrb[18].mxu0 %vm159_vm0, %v9543_v25 }
  0xbe   :  { %6674 = vmatmul.mubr.msk.f32.gmra.mrb[14].mxu1 %vm159_vm0, %v9543_v25  ;;  %7545 = vmatprep.mubr.msk.f32.mxu0 %vm159_vm0, %v9548_v29  ;;  %v10053_v25 = vpack.c.bf16 %v1939_v9, %v1938_v6 }
  0xbf   :  { %1590 = vmatprep.mubr.f32.mxu1 %v11959_v7  ;;  %8317 = vmatpush3.bf16.msra.mxu0 %v10153_v38 }
  0xc0   :  { %8283 = vmatpush3.bf16.msra.mxu1 %v10053_v25  ;;  %8318 = vmatprep.subr.bf16.mxu0 %v11961_v21 }
  0xc1   :  { %7546 = vmatmul.mubr.msk.f32.gmra.mrb[20].mxu0 %vm159_vm0, %v9572_v42 }
  0xc2   :  { %6675 = vmatmul.mubr.msk.f32.gmra.mrb[16].mxu1 %vm159_vm0, %v9548_v29  ;;  %7548 = vmatprep.mubr.msk.f32.mxu0 %vm159_vm0, %v9577_v44  ;;  %v1956_v29 = vld [vmem:[%s12012_s26 + $0x90] sm:$0xff] }
  0xc3   :  { %1596 = vmatprep.mubr.f32.mxu1 %v11959_v7  ;;  %8321 = vmatpush3.bf16.msk.msra.mxu0 %vm10221_vm4, %v10195_v20 }
  0xc4   :  { %8323 = vmatprep.subr.bf16.mxu0 %v10045_v45 }
  0xc5   :  { %7549 = vmatmul.mubr.msk.f32.gmra.mrb[22].mxu0 %vm159_vm0, %v9607_v55 }
  0xc6   :  { %6676 = vmatmul.mubr.msk.f32.gmra.mrb[18].mxu1 %vm159_vm0, %v9572_v42  ;;  %v1957_v42 = vld [vmem:[%s12012_s26 + $0x98] sm:$0xff]  ;;  %7563 = vmatprep.mubr.msk.f32.mxu0 %vm8895_vm5, %v11959_v7 }
  0xc7   :  { %1602 = vmatprep.mubr.f32.mxu1 %v11959_v7 }
  0xca   :  { %6677 = vmatmul.mubr.msk.f32.gmra.mrb[20].mxu1 %vm159_vm0, %v9577_v44  ;;  %v10063_v44 = vpack.c.bf16 %v1957_v42, %v1956_v29 }
  0xcb   :  { %1608 = vmatprep.mubr.f32.mxu1 %v11959_v7 }
  0xcc   :  { %8285 = vmatprep.subr.bf16.mxu1 %v10063_v44 }
  0xce   :  { %6678 = vmatmul.mubr.msk.f32.gmra.mrb[22].mxu1 %vm159_vm0, %v9607_v55  ;;  %v1940_v55 = vld [vmem:[%s12012_s26 + $0x10] sm:$0xff]  ;;  %vm4882_vm0 = vcmask 1045504  }
  0xcf   :  { %v10071_v62 = vpack.c.bf16 %v1941_v61, %v1940_v55  ;;  %v4184_v61 = vld [vmem:[%s11943_s12] sm:$0xff] }
  0xd1   :  { %8287 = vmatpush3.bf16.msra.mxu1 %v10071_v62 }
  0xd2   :  { %8289 = vmatprep.subr.bf16.mxu1 %v10081_v2 }
  0xd5   :  { %8291 = vmatpush3.bf16.msra.mxu1 %v10089_v37 }
  0xd6   :  { %8293 = vmatprep.subr.bf16.mxu1 %v10103_v15 }
  0xd9   :  { %8295 = vmatpush3.bf16.msra.mxu1 %v10117_v18 }
  0xda   :  { %8297 = vmatprep.subr.bf16.mxu1 %v10131_v27 }
  0xdd   :  { %8299 = vmatpush3.bf16.msra.mxu1 %v10144_v34 }
  0xde   :  { %8301 = vmatprep.subr.bf16.mxu1 %v10171_v53 }
  0xe1   :  { %8303 = vmatpush3.bf16.msra.mxu1 %v10183_v5 }
  0xe2   :  { %8305 = vmatprep.subr.bf16.mxu1 %v10239_v13 }
  0xe5   :  { %8307 = vmatpush3.bf16.msra.mxu1 %v10242_v17 }
  0xe6   :  { %v10092_v8 = vpop.permute.xlu0 %1754  ;;  %v10094_v11 = vpop.permute.xlu1 %1764  ;;  %8309 = vmatprep.subr.bf16.mxu1 %v10279_v1 }
  0xea   :  { %v10139_v32 = vpop.permute.xlu0 %1759  ;;  %v10141_v33 = vpop.permute.xlu1 %1769 }
  0xee   :  { %v10201_v60 = vpop.permute.xlu1 %1779  ;;  %v10217_v55 = vpop.permute.xlu0 %1774 }
 0x12c   :  { %v10155_v43 = vpop.f32.mrb[0].mxu1 }
 0x12d   :  { %12013 = vst [vmem:[#allocation5_spill] sm:$0xff] %v10155_v43  ;;  %v1797_v48 = vmul.f32 %v10155_v43, %v10139_v32  ;;  %v2128_v50 = vmul.f32 %v10155_v43, %v10155_v43  ;;  %v10168_v52 = vpop.f32.mrb[1].mxu1 }
 0x12e   :  { %12014 = vst [vmem:[#allocation6_spill] sm:$0xff] %v10168_v52  ;;  %v1794_v41 = vmul.f32 %v10092_v8, %v10168_v52  ;;  %v2125_v57 = vmul.f32 %v10168_v52, %v10168_v52 }
 0x12f   :  { %v1844_v59 = vsel %vm1842_vm1, %v1797_v48, 0.0  ;;  %v2152_v3 = vmul.f32 %v2128_v50, %v10139_v32  ;;  %v1952_v48 = vld [vmem:[%s12012_s26 + $0x70] sm:$0xff]  ;;  %v1953_v50 = vld [vmem:[%s12012_s26 + $0x78] sm:$0xff] }
 0x130   :  { %v1843_v10 = vsel %vm1842_vm1, %v1794_v41, 0.0  ;;  %v2149_v24 = vmul.f32 %v2125_v57, %v10092_v8  ;;  %v10199_v14 = vpop.f32.mrb[2].mxu1  ;;  %v10277_v57 = vpop.permute.xlu1 %1789 }
 0x131   :  { %12015 = vst [vmem:[#allocation7_spill] sm:$0xff] %v10199_v14  ;;  %v2198_v40 = vsel %vm1842_vm1, %v2152_v3, 0.0  ;;  %v1845_v6 = vadd.f32 %v1844_v59, %v1843_v10  ;;  %v1803_v9 = vmul.f32 %v10199_v14, %v10141_v33  ;;  %v2134_v29 = vmul.f32 %v10199_v14, %v10199_v14  ;;  %v10215_v42 = vpop.f32.mrb[3].mxu1  ;;  %v10282_v10 = vpop.permute.xlu0 %1784 }
 0x132   :  { %12016 = vst [vmem:[#allocation8_spill] sm:$0xff] %v10215_v42  ;;  %v2197_v28 = vsel %vm1842_vm1, %v2149_v24, 0.0  ;;  %v1800_v4 = vmul.f32 %v10094_v11, %v10215_v42  ;;  %v2131_v12 = vmul.f32 %v10215_v42, %v10215_v42 }
 0x133   :  { %v2199_v16 = vadd.f32 %v2198_v40, %v2197_v28  ;;  %v2158_v39 = vmul.f32 %v2134_v29, %v10141_v33  ;;  %v1848_v35 = vsel %vm1842_vm1, %v1803_v9, 0.0 }
 0x134   :  { %v1846_v49 = vsel %vm1842_vm1, %v1800_v4, 0.0  ;;  %v2155_v22 = vmul.f32 %v2131_v12, %v10094_v11  ;;  %v10247_v23 = vpop.f32.mrb[4].mxu1 }
 0x135   :  { %12019 = vst [vmem:[#allocation9_spill] sm:$0xff] %v10247_v23  ;;  %v1847_v36 = vadd.f32 %v1846_v49, %v1845_v6  ;;  %v1809_v45 = vmul.f32 %v10247_v23, %v10201_v60  ;;  %v2140_v46 = vmul.f32 %v10247_v23, %v10247_v23  ;;  %v10261_v47 = vpop.f32.mrb[5].mxu1  ;;  %v2202_v58 = vsel %vm1842_vm1, %v2158_v39, 0.0 }
 0x136   :  { %12020 = vst [vmem:[#allocation10_spill] sm:$0xff] %v10261_v47  ;;  %v2200_v54 = vsel %vm1842_vm1, %v2155_v22, 0.0  ;;  %v1806_v56 = vmul.f32 %v10217_v55, %v10261_v47  ;;  %v2137_v41 = vmul.f32 %v10261_v47, %v10261_v47  ;;  %v10290_v6 = vpack.c.bf16 %v1953_v50, %v1952_v48 }
 0x137   :  { %v2201_v59 = vadd.f32 %v2200_v54, %v2199_v16  ;;  %v1849_v3 = vadd.f32 %v1848_v35, %v1847_v36  ;;  %v2164_v24 = vmul.f32 %v2140_v46, %v10201_v60  ;;  %v1852_v9 = vsel %vm1842_vm1, %v1809_v45, 0.0 }
 0x138   :  { %v1850_v26 = vsel %vm1842_vm1, %v1806_v56, 0.0  ;;  %v2161_v31 = vmul.f32 %v2137_v41, %v10217_v55  ;;  %v10287_v40 = vpop.f32.mrb[6].mxu1  ;;  %8311 = vmatpush3.bf16.msra.mxu1 %v10290_v6 }
 0x139   :  { %12021 = vst [vmem:[#allocation11_spill] sm:$0xff] %v10287_v40  ;;  %v1851_v29 = vadd.f32 %v1850_v26, %v1849_v3  ;;  %v2203_v63 = vadd.f32 %v2202_v58, %v2201_v59  ;;  %v1815_v0 = vmul.f32 %v10287_v40, %v10277_v57  ;;  %v10295_v28 = vpop.f32.mrb[7].mxu1  ;;  %v2146_v12 = vmul.f32 %v10287_v40, %v10287_v40 }
 0x13a   :  { %12022 = vst [vmem:[#allocation12_spill] sm:$0xff] %v10295_v28  ;;  %v2204_v4 = vsel %vm1842_vm1, %v2161_v31, 0.0  ;;  %v1812_v16 = vmul.f32 %v10282_v10, %v10295_v28  ;;  %v2143_v39 = vmul.f32 %v10295_v28, %v10295_v28  ;;  %8354 = vmatprep.subr.bf16.mxu1 %v11961_v21  ;;  %v2206_v51 = vsel %vm1842_vm1, %v2164_v24, 0.0 }
 0x13b   :  { %v2205_v49 = vadd.f32 %v2204_v4, %v2203_v63  ;;  %v1853_v22 = vadd.f32 %v1852_v9, %v1851_v29  ;;  %v10305_v30 = vpop.f32.mrb[0].mxu0  ;;  %v2170_v35 = vmul.f32 %v2146_v12, %v10277_v57  ;;  %v1856_v54 = vsel %vm1842_vm1, %v1815_v0, 0.0 }
 0x13c   :  { %v1854_v36 = vsel %vm1842_vm1, %v1812_v16, 0.0  ;;  %v2167_v45 = vmul.f32 %v2143_v39, %v10282_v10  ;;  %v10312_v46 = vpop.f32.mrb[1].mxu0  ;;  %v2123_v41 = vmul.f32 %v10305_v30, %v10305_v30  ;;  %v1792_v31 = vmul.f32 %v10092_v8, %v10305_v30 }
 0x13d   :  { %12023 = vst [vmem:[#allocation13_spill] sm:$0xff] %v10312_v46  ;;  %v1855_v48 = vadd.f32 %v1854_v36, %v1853_v22  ;;  %v2207_v50 = vadd.f32 %v2206_v51, %v2205_v49  ;;  %v2124_v3 = vmul.f32 %v10312_v46, %v10312_v46  ;;  %v2210_v26 = vsel %vm1842_vm1, %v2170_v35, 0.0 }
 0x13e   :  { %v2208_v56 = vsel %vm1842_vm1, %v2167_v45, 0.0  ;;  %v1793_v4 = vmul.f32 %v10092_v8, %v10312_v46  ;;  %v2147_v39 = vmul.f32 %v2123_v41, %v10092_v8 }
 0x13f   :  { %v10318_v58 = vadd.f32 %v1856_v54, %v1855_v48  ;;  %v2209_v59 = vadd.f32 %v2208_v56, %v2207_v50  ;;  %v10322_v24 = vpop.f32.mrb[2].mxu0  ;;  %v2148_v51 = vmul.f32 %v2124_v3, %v10092_v8 }
 0x140   :  { %v1795_v9 = vmul.f32 %v10139_v32, %v10322_v24  ;;  %v2126_v29 = vmul.f32 %v10322_v24, %v10322_v24  ;;  %v10331_v63 = vpop.f32.mrb[3].mxu0 }
 0x141   :  { %12024 = vst [vmem:[#allocation14_spill] sm:$0xff] %v10331_v63  ;;  %v10333_v0 = vadd.f32 %v2210_v26, %v2209_v59  ;;  %v1796_v12 = vmul.f32 %v10139_v32, %v10331_v63  ;;  %v2127_v16 = vmul.f32 %v10331_v63, %v10331_v63  ;;  %v1858_v42 = vrot.slane %v10318_v58, 4 }
 0x142   :  { %v1816_v49 = vadd.f32 %v1795_v9, %v1792_v31  ;;  %v2150_v22 = vmul.f32 %v2126_v29, %v10139_v32 }
 0x143   :  { %v1829_v35 = vadd.f32 %v1796_v12, %v1793_v4  ;;  %v2151_v36 = vmul.f32 %v2127_v16, %v10139_v32  ;;  %v10345_v45 = vpop.f32.mrb[4].mxu0  ;;  %v2212_v43 = vrot.slane %v10333_v0, 4 }
 0x144   :  { %v2171_v48 = vadd.f32 %v2150_v22, %v2147_v39  ;;  %v1798_v50 = vmul.f32 %v10094_v11, %v10345_v45  ;;  %v2129_v54 = vmul.f32 %v10345_v45, %v10345_v45  ;;  %v10351_v56 = vpop.f32.mrb[5].mxu0 }
 0x145   :  { %12025 = vst [vmem:[#allocation15_spill] sm:$0xff] %v10351_v56  ;;  %v2184_v41 = vadd.f32 %v2151_v36, %v2148_v51  ;;  %v1799_v59 = vmul.f32 %v10094_v11, %v10351_v56  ;;  %v2130_v31 = vmul.f32 %v10351_v56, %v10351_v56 }
 0x146   :  { %v1817_v26 = vadd.f32 %v1816_v49, %v1798_v50  ;;  %v2153_v3 = vmul.f32 %v2129_v54, %v10094_v11 }
 0x147   :  { %v1830_v9 = vadd.f32 %v1829_v35, %v1799_v59  ;;  %v2154_v12 = vmul.f32 %v2130_v31, %v10094_v11 }
 0x148   :  { %v10358_v29 = vpop.f32.mrb[6].mxu0  ;;  %v2172_v4 = vadd.f32 %v2171_v48, %v2153_v3 }
 0x149   :  { %v1801_v16 = vmul.f32 %v10141_v33, %v10358_v29  ;;  %v2132_v39 = vmul.f32 %v10358_v29, %v10358_v29  ;;  %v10365_v22 = vpop.f32.mrb[7].mxu0  ;;  %v2185_v35 = vadd.f32 %v2184_v41, %v2154_v12 }
 0x14a   :  { %12026 = vst [vmem:[#allocation16_spill] sm:$0xff] %v10365_v22  ;;  %v1802_v49 = vmul.f32 %v10141_v33, %v10365_v22  ;;  %v2133_v51 = vmul.f32 %v10365_v22, %v10365_v22 }
 0x14b   :  { %v1818_v36 = vadd.f32 %v1817_v26, %v1801_v16  ;;  %v2156_v48 = vmul.f32 %v2132_v39, %v10141_v33 }
 0x14c   :  { %v1831_v50 = vadd.f32 %v1830_v9, %v1802_v49  ;;  %v2157_v54 = vmul.f32 %v2133_v51, %v10141_v33  ;;  %v10373_v59 = vpop.f32.mrb[8].mxu0 }
 0x14d   :  { %12027 = vst [vmem:[#allocation17_spill] sm:$0xff] %v10373_v59  ;;  %v2173_v3 = vadd.f32 %v2172_v4, %v2156_v48  ;;  %v1804_v31 = vmul.f32 %v10217_v55, %v10373_v59  ;;  %v2135_v7 = vmul.f32 %v10373_v59, %v10373_v59  ;;  %v10379_v21 = vpop.f32.mrb[9].mxu0 }
 0x14e   :  { %12028 = vst [vmem:[#allocation18_spill] sm:$0xff] %v10379_v21  ;;  %v2186_v40 = vadd.f32 %v2185_v35, %v2157_v54  ;;  %v1805_v41 = vmul.f32 %v10217_v55, %v10379_v21  ;;  %v2136_v26 = vmul.f32 %v10379_v21, %v10379_v21 }
 0x14f   :  { %v1819_v9 = vadd.f32 %v1818_v36, %v1804_v31  ;;  %v2159_v12 = vmul.f32 %v2135_v7, %v10217_v55 }
 0x150   :  { %v1832_v16 = vadd.f32 %v1831_v50, %v1805_v41  ;;  %v2160_v4 = vmul.f32 %v2136_v26, %v10217_v55  ;;  %v10387_v39 = vpop.f32.mrb[10].mxu0 }
 0x151   :  { %12029 = vst [vmem:[#allocation19_spill] sm:$0xff] %v10387_v39  ;;  %v2174_v49 = vadd.f32 %v2173_v3, %v2159_v12  ;;  %v1807_v51 = vmul.f32 %v10201_v60, %v10387_v39  ;;  %v2138_v35 = vmul.f32 %v10387_v39, %v10387_v39  ;;  %v10393_v48 = vpop.f32.mrb[11].mxu0 }
 0x152   :  { %12030 = vst [vmem:[#allocation20_spill] sm:$0xff] %v10393_v48  ;;  %v2187_v54 = vadd.f32 %v2186_v40, %v2160_v4  ;;  %v1808_v36 = vmul.f32 %v10201_v60, %v10393_v48  ;;  %v2139_v7 = vmul.f32 %v10393_v48, %v10393_v48 }
 0x153   :  { %v1820_v50 = vadd.f32 %v1819_v9, %v1807_v51  ;;  %v2162_v31 = vmul.f32 %v2138_v35, %v10201_v60 }
 0x154   :  { %v1833_v41 = vadd.f32 %v1832_v16, %v1808_v36  ;;  %v2163_v3 = vmul.f32 %v2139_v7, %v10201_v60  ;;  %v10401_v26 = vpop.f32.mrb[12].mxu0 }
 0x155   :  { %12031 = vst [vmem:[#allocation21_spill] sm:$0xff] %v10401_v26  ;;  %v2175_v12 = vadd.f32 %v2174_v49, %v2162_v31  ;;  %v1810_v28 = vmul.f32 %v10282_v10, %v10401_v26  ;;  %v2141_v40 = vmul.f32 %v10401_v26, %v10401_v26  ;;  %v10407_v4 = vpop.f32.mrb[13].mxu0 }
 0x156   :  { %12032 = vst [vmem:[#allocation22_spill] sm:$0xff] %v10407_v4  ;;  %v2188_v23 = vadd.f32 %v2187_v54, %v2163_v3  ;;  %v1811_v9 = vmul.f32 %v10282_v10, %v10407_v4  ;;  %v2142_v16 = vmul.f32 %v10407_v4, %v10407_v4 }
 0x157   :  { %v1821_v51 = vadd.f32 %v1820_v50, %v1810_v28  ;;  %v2165_v35 = vmul.f32 %v2141_v40, %v10282_v10 }
 0x158   :  { %v1834_v36 = vadd.f32 %v1833_v41, %v1811_v9  ;;  %v2166_v49 = vmul.f32 %v2142_v16, %v10282_v10  ;;  %v10415_v7 = vpop.f32.mrb[14].mxu0 }
 0x159   :  { %12033 = vst [vmem:[#allocation23_spill] sm:$0xff] %v10415_v7  ;;  %v2176_v31 = vadd.f32 %v2175_v12, %v2165_v35  ;;  %v1813_v47 = vmul.f32 %v10277_v57, %v10415_v7  ;;  %v2144_v54 = vmul.f32 %v10415_v7, %v10415_v7  ;;  %v10421_v3 = vpop.f32.mrb[15].mxu0 }
 0x15a   :  { %12034 = vst [vmem:[#allocation24_spill] sm:$0xff] %v10421_v3  ;;  %v2189_v14 = vadd.f32 %v2188_v23, %v2166_v49  ;;  %v1814_v28 = vmul.f32 %v10277_v57, %v10421_v3  ;;  %v2145_v50 = vmul.f32 %v10421_v3, %v10421_v3  ;;  %v1859_v23 = vadd.f32 %v1858_v42, %v10318_v58 }
 0x15b   :  { %v1822_v41 = vadd.f32 %v1821_v51, %v1813_v47  ;;  %v2168_v40 = vmul.f32 %v2144_v54, %v10277_v57  ;;  %v2213_v49 = vadd.f32 %v2212_v43, %v10333_v0 }
 0x15c   :  { %v1835_v9 = vadd.f32 %v1834_v36, %v1814_v28  ;;  %v2169_v12 = vmul.f32 %v2145_v50, %v10277_v57  ;;  %v1860_v52 = vrot.slane %v1859_v23, 2 }
 0x15d   :  { %v2177_v16 = vadd.f32 %v2176_v31, %v2168_v40  ;;  %v2214_v7 = vrot.slane %v2213_v49, 2  ;;  %v1823_v47 = vrot.slane %v1822_v41, 4 }
 0x15e   :  { %v2190_v35 = vadd.f32 %v2189_v14, %v2169_v12  ;;  %v1861_v26 = vadd.f32 %v1860_v52, %v1859_v23  ;;  %v1836_v36 = vrot.slane %v1835_v9, 4 }
 0x15f   :  { %v2215_v3 = vadd.f32 %v2214_v7, %v2213_v49  ;;  %v10433_v54 = vadd.f32 %v1823_v47, %v1822_v41  ;;  %v2178_v31 = vrot.slane %v2177_v16, 4 }
 0x160   :  { %v1862_v51 = vrot.slane %v1861_v26, 1  ;;  %v2191_v40 = vrot.slane %v2190_v35, 4  ;;  %v10446_v0 = vadd.f32 %v1836_v36, %v1835_v9 }
 0x161   :  { %v2216_v14 = vrot.slane %v2215_v3, 1  ;;  %v10452_v12 = vadd.f32 %v2178_v31, %v2177_v16 }
 0x162   :  { %v10443_v52 = vadd.f32 %v1862_v51, %v1861_v26  ;;  %v10462_v51 = vadd.f32 %v2191_v40, %v2190_v35 }
 0x163   :  { %v10450_v41 = vadd.f32 %v2216_v14, %v2215_v3 }
 0x185   :  { %v10435_v28 = vpop.f32.mrb[8].mxu1 }
 0x186   :  { %12035 = vst [vmem:[#allocation25_spill] sm:$0xff] %v10435_v28  ;;  %v10437_v50 = vpop.f32.mrb[9].mxu1  ;;  %v2218_v42 = vmul.f32 %v10435_v28, %v10435_v28  ;;  %v1864_v23 = vmul.f32 %v10092_v8, %v10435_v28 }
 0x187   :  { %12036 = vst [vmem:[#allocation26_spill] sm:$0xff] %v10437_v50  ;;  %v2219_v43 = vmul.f32 %v10437_v50, %v10437_v50  ;;  %v1865_v9 = vmul.f32 %v10092_v8, %v10437_v50 }
 0x188   :  { %v2242_v36 = vmul.f32 %v2218_v42, %v10092_v8 }
 0x189   :  { %v10448_v7 = vpop.f32.mrb[10].mxu1  ;;  %v2243_v14 = vmul.f32 %v2219_v43, %v10092_v8 }
 0x18a   :  { %12037 = vst [vmem:[#allocation27_spill] sm:$0xff] %v10448_v7  ;;  %v1867_v49 = vmul.f32 %v10139_v32, %v10448_v7  ;;  %v2221_v26 = vmul.f32 %v10448_v7, %v10448_v7  ;;  %v10460_v47 = vpop.f32.mrb[11].mxu1 }
 0x18b   :  { %12038 = vst [vmem:[#allocation28_spill] sm:$0xff] %v10460_v47  ;;  %v1868_v3 = vmul.f32 %v10139_v32, %v10460_v47  ;;  %v2222_v16 = vmul.f32 %v10460_v47, %v10460_v47 }
 0x18c   :  { %v1888_v31 = vadd.f32 %v1867_v49, %v1864_v23  ;;  %v2245_v58 = vmul.f32 %v2221_v26, %v10139_v32  ;;  %v10473_v7 = vpop.f32.mrb[16].mxu0 }
 0x18d   :  { %12039 = vst [vmem:[#allocation29_spill] sm:$0xff] %v10473_v7  ;;  %v1901_v35 = vadd.f32 %v1868_v3, %v1865_v9  ;;  %v2246_v40 = vmul.f32 %v2222_v16, %v10139_v32  ;;  %v1869_v28 = vmul.f32 %v10473_v7, %v10139_v32  ;;  %v2223_v50 = vmul.f32 %v10473_v7, %v10473_v7  ;;  %v10480_v4 = vpop.f32.mrb[12].mxu1  ;;  %v10482_v47 = vpop.f32.mrb[17].mxu0 }
 0x18e   :  { %12040 = vst [vmem:[#allocation30_spill] sm:$0xff] %v10480_v4  ;;  %12041 = vst [vmem:[#allocation31_spill] sm:$0xff] %v10482_v47  ;;  %v2266_v42 = vadd.f32 %v2245_v58, %v2242_v36  ;;  %v1870_v43 = vmul.f32 %v10094_v11, %v10480_v4  ;;  %v2224_v23 = vmul.f32 %v10480_v4, %v10480_v4  ;;  %v10490_v26 = vpop.f32.mrb[13].mxu1 }
 0x18f   :  { %v1866_v49 = vmul.f32 %v10092_v8, %v10482_v47  ;;  %12042 = vst [vmem:[#allocation32_spill] sm:$0xff] %v10490_v26  ;;  %v2279_v9 = vadd.f32 %v2246_v40, %v2243_v14  ;;  %v1915_v3 = vsel %vm1842_vm1, %v1869_v28, 0.0  ;;  %v2247_v16 = vmul.f32 %v2223_v50, %v10139_v32 }
 0x190   :  { %v2220_v7 = vmul.f32 %v10482_v47, %v10482_v47  ;;  %v1889_v58 = vadd.f32 %v1888_v31, %v1870_v43  ;;  %v2248_v36 = vmul.f32 %v2224_v23, %v10094_v11  ;;  %v1871_v4 = vmul.f32 %v10094_v11, %v10490_v26  ;;  %v10500_v59 = vpop.f32.mrb[18].mxu0 }
 0x191   :  { %v1914_v39 = vsel %vm1842_vm1, %v1866_v49, 0.0  ;;  %12043 = vst [vmem:[#allocation33_spill] sm:$0xff] %v10500_v59  ;;  %v2293_v48 = vsel %vm1842_vm1, %v2247_v16, 0.0  ;;  %v2225_v32 = vmul.f32 %v10490_v26, %v10490_v26  ;;  %v10506_v50 = vpop.f32.mrb[14].mxu1  ;;  %v10508_v31 = vpop.f32.mrb[19].mxu0  ;;  %v1875_v23 = vmul.f32 %v10500_v59, %v10141_v33 }
 0x192   :  { %v1916_v14 = vadd.f32 %v1915_v3, %v1914_v39  ;;  %v2244_v28 = vmul.f32 %v2220_v7, %v10092_v8  ;;  %12044 = vst [vmem:[#allocation34_spill] sm:$0xff] %v10506_v50  ;;  %12045 = vst [vmem:[#allocation35_spill] sm:$0xff] %v10508_v31  ;;  %v2267_v40 = vadd.f32 %v2266_v42, %v2248_v36  ;;  %v10514_v47 = vpop.f32.mrb[15].mxu1 }
 0x193   :  { %v1902_v43 = vadd.f32 %v1901_v35, %v1871_v4  ;;  %v2229_v49 = vmul.f32 %v10500_v59, %v10500_v59  ;;  %12046 = vst [vmem:[#allocation36_spill] sm:$0xff] %v10514_v47  ;;  %v2249_v8 = vmul.f32 %v2225_v32, %v10094_v11  ;;  %v1873_v7 = vmul.f32 %v10141_v33, %v10506_v50 }
 0x194   :  { %v2292_v39 = vsel %vm1842_vm1, %v2244_v28, 0.0  ;;  %v2227_v3 = vmul.f32 %v10506_v50, %v10506_v50  ;;  %v1919_v4 = vsel %vm1842_vm1, %v1875_v23, 0.0  ;;  %v1872_v16 = vmul.f32 %v10094_v11, %v10508_v31  ;;  %v10526_v36 = vpop.f32.mrb[20].mxu0 }
 0x195   :  { %v2294_v42 = vadd.f32 %v2293_v48, %v2292_v39  ;;  %v2253_v35 = vmul.f32 %v2229_v49, %v10141_v33  ;;  %12047 = vst [vmem:[#allocation37_spill] sm:$0xff] %v10526_v36  ;;  %v2280_v59 = vadd.f32 %v2279_v9, %v2249_v8  ;;  %v1890_v28 = vadd.f32 %v1889_v58, %v1873_v7  ;;  %v10531_v21 = vpop.f32.mrb[16].mxu1  ;;  %v10533_v50 = vpop.f32.mrb[21].mxu0 }
 0x196   :  { %v2251_v32 = vmul.f32 %v2227_v3, %v10141_v33  ;;  %v2226_v26 = vmul.f32 %v10508_v31, %v10508_v31  ;;  %12048 = vst [vmem:[#allocation38_spill] sm:$0xff] %v10531_v21  ;;  %v1917_v23 = vsel %vm1842_vm1, %v1872_v16, 0.0  ;;  %v1874_v49 = vmul.f32 %v10141_v33, %v10514_v47  ;;  %v10541_v58 = vpop.f32.mrb[17].mxu1 }
 0x197   :  { %v2297_v48 = vsel %vm1842_vm1, %v2253_v35, 0.0  ;;  %v2228_v9 = vmul.f32 %v10514_v47, %v10514_v47  ;;  %12049 = vst [vmem:[#allocation39_spill] sm:$0xff] %v10541_v58  ;;  %v1918_v8 = vadd.f32 %v1917_v23, %v1916_v14  ;;  %v1881_v3 = vmul.f32 %v10526_v36, %v10201_v60 }
 0x198   :  { %v2268_v39 = vadd.f32 %v2267_v40, %v2251_v32  ;;  %v2250_v7 = vmul.f32 %v2226_v26, %v10094_v11  ;;  %v1903_v31 = vadd.f32 %v1902_v43, %v1874_v49  ;;  %v2235_v16 = vmul.f32 %v10526_v36, %v10526_v36  ;;  %v10551_v56 = vpop.f32.mrb[22].mxu0 }
 0x199   :  { %v2252_v35 = vmul.f32 %v2228_v9, %v10141_v33  ;;  %v1876_v22 = vmul.f32 %v10217_v55, %v10531_v21  ;;  %v1923_v14 = vsel %vm1842_vm1, %v1881_v3, 0.0  ;;  %v2230_v11 = vmul.f32 %v10531_v21, %v10531_v21  ;;  %v10559_v40 = vpop.f32.mrb[18].mxu1  ;;  %v10561_v33 = vpop.f32.mrb[23].mxu0 }
 0x19a   :  { %v2295_v47 = vsel %vm1842_vm1, %v2250_v7, 0.0  ;;  %v1878_v26 = vmul.f32 %v10217_v55, %v10533_v50  ;;  %12050 = vst [vmem:[#allocation40_spill] sm:$0xff] %v10559_v40  ;;  %v2259_v23 = vmul.f32 %v2235_v16, %v10201_v60  ;;  %v10564_v9 = vpop.f32.mrb[19].mxu1  ;;  %v1920_v3 = vadd.f32 %v1919_v4, %v1918_v8 }
 0x19b   :  { %v2296_v43 = vadd.f32 %v2295_v47, %v2294_v42  ;;  %v2281_v32 = vadd.f32 %v2280_v59, %v2252_v35  ;;  %v1891_v49 = vadd.f32 %v1890_v28, %v1876_v22  ;;  %v2254_v7 = vmul.f32 %v2230_v11, %v10217_v55 }
 0x19c   :  { %v1921_v36 = vsel %vm1842_vm1, %v1878_v26, 0.0  ;;  %v2232_v21 = vmul.f32 %v10533_v50, %v10533_v50  ;;  %v2301_v63 = vsel %vm1842_vm1, %v2259_v23, 0.0  ;;  %v1877_v47 = vmul.f32 %v10217_v55, %v10541_v58 }
 0x19d   :  { %v2298_v46 = vadd.f32 %v2297_v48, %v2296_v43  ;;  %v2231_v59 = vmul.f32 %v10541_v58, %v10541_v58  ;;  %v2269_v22 = vadd.f32 %v2268_v39, %v2254_v7  ;;  %v1922_v42 = vadd.f32 %v1921_v36, %v1920_v3  ;;  %v10578_v8 = vpop.f32.mrb[20].mxu1 }
 0x19e   :  { %v2256_v28 = vmul.f32 %v2232_v21, %v10217_v55  ;;  %v1887_v4 = vmul.f32 %v10551_v56, %v10277_v57  ;;  %12051 = vst [vmem:[#allocation41_spill] sm:$0xff] %v10578_v8  ;;  %v1904_v35 = vadd.f32 %v1903_v31, %v1877_v47  ;;  %v2241_v48 = vmul.f32 %v10551_v56, %v10551_v56  ;;  %v10585_v26 = vpop.f32.mrb[21].mxu1 }
 0x19f   :  { %v2255_v16 = vmul.f32 %v2231_v59, %v10217_v55  ;;  %v1879_v11 = vmul.f32 %v10201_v60, %v10559_v40  ;;  %v2233_v39 = vmul.f32 %v10559_v40, %v10559_v40  ;;  %v1884_v31 = vmul.f32 %v10282_v10, %v10561_v33 }
 0x1a0   :  { %v2299_v36 = vsel %vm1842_vm1, %v2256_v28, 0.0  ;;  %v1927_v21 = vsel %vm1842_vm1, %v1887_v4, 0.0  ;;  %v2265_v23 = vmul.f32 %v2241_v48, %v10277_v57  ;;  %v1924_v47 = vadd.f32 %v1923_v14, %v1922_v42 }
 0x1a1   :  { %v2300_v43 = vadd.f32 %v2299_v36, %v2298_v46  ;;  %v2282_v55 = vadd.f32 %v2281_v32, %v2255_v16  ;;  %v1892_v7 = vadd.f32 %v1891_v49, %v1879_v11  ;;  %v2257_v3 = vmul.f32 %v2233_v39, %v10201_v60  ;;  %v10598_v4 = vpop.f32.mrb[22].mxu1 }
 0x1a2   :  { %v1925_v59 = vsel %vm1842_vm1, %v1884_v31, 0.0  ;;  %v2238_v28 = vmul.f32 %v10561_v33, %v10561_v33  ;;  %12052 = vst [vmem:[#allocation42_spill] sm:$0xff] %v10598_v4  ;;  %v2305_v40 = vsel %vm1842_vm1, %v2265_v23, 0.0  ;;  %v1880_v46 = vmul.f32 %v10201_v60, %v10564_v9  ;;  %v10605_v49 = vpop.f32.mrb[23].mxu1 }
 0x1a3   :  { %v2302_v58 = vadd.f32 %v2301_v63, %v2300_v43  ;;  %v2234_v32 = vmul.f32 %v10564_v9, %v10564_v9  ;;  %12053 = vst [vmem:[#allocation43_spill] sm:$0xff] %v10605_v49  ;;  %v2270_v16 = vadd.f32 %v2269_v22, %v2257_v3  ;;  %v1926_v14 = vadd.f32 %v1925_v59, %v1924_v47 }
 0x1a4   :  { %v2262_v42 = vmul.f32 %v2238_v28, %v10282_v10  ;;  %v1882_v48 = vmul.f32 %v10282_v10, %v10578_v8  ;;  %v1905_v11 = vadd.f32 %v1904_v35, %v1880_v46  ;;  %v2236_v63 = vmul.f32 %v10578_v8, %v10578_v8 }
 0x1a5   :  { %v2258_v36 = vmul.f32 %v2234_v32, %v10201_v60  ;;  %v1883_v39 = vmul.f32 %v10282_v10, %v10585_v26  ;;  %v1928_v31 = vadd.f32 %v1927_v21, %v1926_v14  ;;  %v2237_v22 = vmul.f32 %v10585_v26, %v10585_v26 }
 0x1a6   :  { %v2303_v43 = vsel %vm1842_vm1, %v2262_v42, 0.0  ;;  %v1893_v23 = vadd.f32 %v1892_v7, %v1882_v48  ;;  %v2260_v59 = vmul.f32 %v2236_v63, %v10282_v10  ;;  %v1885_v46 = vmul.f32 %v10277_v57, %v10598_v4 }
 0x1a7   :  { %v2304_v3 = vadd.f32 %v2303_v43, %v2302_v58  ;;  %v2283_v47 = vadd.f32 %v2282_v55, %v2258_v36  ;;  %v1906_v35 = vadd.f32 %v1905_v11, %v1883_v39  ;;  %v1929_v28 = vrot.slane %v1928_v31, 4 }
 0x1a8   :  { %v2261_v60 = vmul.f32 %v2237_v22, %v10282_v10  ;;  %v2239_v21 = vmul.f32 %v10598_v4, %v10598_v4  ;;  %v2271_v14 = vadd.f32 %v2270_v16, %v2260_v59  ;;  %v1886_v7 = vmul.f32 %v10277_v57, %v10605_v49 }
 0x1a9   :  { %v2306_v32 = vadd.f32 %v2305_v40, %v2304_v3  ;;  %v2240_v58 = vmul.f32 %v10605_v49, %v10605_v49  ;;  %v1930_v55 = vadd.f32 %v1929_v28, %v1928_v31  ;;  %v1894_v48 = vadd.f32 %v1893_v23, %v1885_v46 }
 0x1aa   :  { %v2284_v42 = vadd.f32 %v2283_v47, %v2261_v60  ;;  %v2263_v11 = vmul.f32 %v2239_v21, %v10277_v57  ;;  %v1838_v10 = vrot.slane %v10446_v0, 2  ;;  %v1907_v63 = vadd.f32 %v1906_v35, %v1886_v7 }
 0x1ab   :  { %v2307_v36 = vrot.slane %v2306_v32, 4  ;;  %v2264_v39 = vmul.f32 %v2240_v58, %v10277_v57  ;;  %v2180_v40 = vrot.slane %v10452_v12, 2  ;;  %v1931_v16 = vrot.slane %v1930_v55, 2 }
 0x1ac   :  { %v1895_v43 = vrot.slane %v1894_v48, 4  ;;  %v2272_v22 = vadd.f32 %v2271_v14, %v2263_v11  ;;  %v1908_v59 = vrot.slane %v1907_v63, 4  ;;  %v2193_v31 = vrot.slane %v10462_v51, 2 }
 0x1ad   :  { %v2308_v3 = vadd.f32 %v2307_v36, %v2306_v32  ;;  %v2285_v4 = vadd.f32 %v2284_v42, %v2264_v39  ;;  %v12054_v23 = vrot.slane %v10433_v54, 2  ;;  %v1932_v28 = vadd.f32 %v1931_v16, %v1930_v55 }
 0x1ae   :  { %v1896_v60 = vadd.f32 %v1895_v43, %v1894_v48  ;;  %v2273_v46 = vrot.slane %v2272_v22, 4  ;;  %v1909_v21 = vadd.f32 %v1908_v59, %v1907_v63  ;;  %v1839_v7 = vadd.f32 %v1838_v10, %v10446_v0 }
 0x1af   :  { %v1826_v47 = vadd.f32 %v12054_v23, %v10433_v54  ;;  %v2309_v35 = vrot.slane %v2308_v3, 2  ;;  %v2286_v57 = vrot.slane %v2285_v4, 4  ;;  %v1933_v58 = vrot.slane %v1932_v28, 1 }
 0x1b0   :  { %v1897_v8 = vrot.slane %v1896_v60, 2  ;;  %v2274_v14 = vadd.f32 %v2273_v46, %v2272_v22  ;;  %v2181_v32 = vadd.f32 %v2180_v40, %v10452_v12  ;;  %v1910_v11 = vrot.slane %v1909_v21, 2 }
 0x1b1   :  { %v2310_v42 = vadd.f32 %v2309_v35, %v2308_v3  ;;  %v2287_v36 = vadd.f32 %v2286_v57, %v2285_v4  ;;  %v2194_v39 = vadd.f32 %v2193_v31, %v10462_v51  ;;  %v1827_v49 = vrot.slane %v1826_v47, 1 }
 0x1b2   :  { %v1934_v54 = vadd.f32 %v1933_v58, %v1932_v28  ;;  %v1898_v55 = vadd.f32 %v1897_v8, %v1896_v60  ;;  %v2275_v48 = vrot.slane %v2274_v14, 2  ;;  %v1840_v16 = vrot.slane %v1839_v7, 1 }
 0x1b3   :  { %v1911_v43 = vadd.f32 %v1910_v11, %v1909_v21  ;;  %v2288_v63 = vrot.slane %v2287_v36, 2  ;;  %v2311_v59 = vrot.slane %v2310_v42, 1  ;;  %v2182_v23 = vrot.slane %v2181_v32, 1 }
 0x1b4   :  { %v1937_v0 = vadd.f32 %v1934_v54, %v10443_v52  ;;  %v1899_v10 = vrot.slane %v1898_v55, 1  ;;  %v2276_v22 = vadd.f32 %v2275_v48, %v2274_v14  ;;  %v2195_v12 = vrot.slane %v2194_v39, 1 }
 0x1b5   :  { %v1912_v46 = vrot.slane %v1911_v43, 1  ;;  %v2289_v40 = vadd.f32 %v2288_v63, %v2287_v36  ;;  %v2312_v3 = vadd.f32 %v2311_v59, %v2310_v42  ;;  %v1828_v4 = vadd.f32 %v1827_v49, %v1826_v47  ;;  %v2478_v63 = vld [vmem:[%s12057_s1 + $0x28] sm:$0xff]  ;;  %v2464_v59 = vld [vmem:[%s11937_s6] sm:$0x3] }
 0x1b6   :  { %v1900_v35 = vadd.f32 %v1899_v10, %v1898_v55  ;;  %7564 = vmatmul.mubr.msk.f32.vlgmr.msra.gmra.mrb[24].mxu0 %vm1842_vm1, %v1937_v0  ;;  %v2277_v51 = vrot.slane %v2276_v22, 1  ;;  %v1841_v8 = vadd.f32 %v1840_v16, %v1839_v7  ;;  %v2183_v21 = vadd.f32 %v2182_v23, %v2181_v32 }
 0x1b7   :  { %8325 = vmatpush3.bf16.msra.mxu0 %v10053_v25  ;;  %v1913_v31 = vadd.f32 %v1912_v46, %v1911_v43  ;;  %v2290_v28 = vrot.slane %v2289_v40, 1  ;;  %v2315_v60 = vadd.f32 %v2312_v3, %v10450_v41  ;;  %v2196_v14 = vadd.f32 %v2195_v12, %v2194_v39  ;;  %v2475_v43 = vld [vmem:[%s12057_s1 + $0x10] sm:$0xff]  ;;  %v2481_v46 = vld [vmem:[%s12057_s1 + $0x40] sm:$0xf] }
 0x1b8   :  { %8327 = vmatprep.subr.bf16.mxu0 %v10063_v44  ;;  %v1935_v52 = vadd.f32 %v1900_v35, %v1828_v4  ;;  %v2278_v57 = vadd.f32 %v2277_v51, %v2276_v22  ;;  %v12055_v25 = vmov 0.0|0.0   ;;  %v12056_v44 = vmov 0.0   ;;  %v10721_v4 = vld [vmem:[%s11938_s7 + $0x20] sm:$0xff] }
 0x1b9   :  { %v1936_v58 = vadd.f32 %v1913_v31, %v1841_v8  ;;  %v2291_v42 = vadd.f32 %v2290_v28, %v2289_v40  ;;  %v8369_v10 = vpack.c.bf16 %v2478_v63, %v2475_v43  ;;  %v2781_v35 = vlaneseq  ;;  %v12073_v63 = vld [vmem:[#allocation27_spill] sm:$0xff] }
 0x1ba   :  { %v2313_v49 = vadd.f32 %v2278_v57, %v2183_v21 }
 0x1bb   :  { %8329 = vmatpush3.bf16.msra.mxu0 %v10071_v62  ;;  %2047 = vmatprep.mubr.f32.mxu1 %v1936_v58  ;;  %v2314_v47 = vadd.f32 %v2291_v42, %v2196_v14  ;;  %v2474_v62 = vld [vmem:[%s12057_s1 + $0x8] sm:$0xff]  ;;  %v2782_v51 = vshrl.u32 %v2781_v35, 7 }
 0x1bc   :  { %2048 = vmatmul.mubr.f32.vlgmr.msra.gmra.mrb[24].mxu1 %v1935_v52  ;;  %8331 = vmatprep.subr.bf16.mxu0 %v10081_v2  ;;  %v2477_v2 = vld [vmem:[%s12057_s1 + $0x20] sm:$0xff]  ;;  %v12077_v35 = vld [vmem:[#allocation6_spill] sm:$0xff] }
 0x1bd   :  { %8356 = vmatpush3.bf16.msra.mxu1 %v10119_v19  ;;  %2383 = vmatprep.mubr.f32.mxu0 %v2314_v47  ;;  %v10725_v8 = vsub.s32 0, %v2782_v51  ;;  %v12058_v42 = vld [vmem:[#allocation13_spill] sm:$0xff]  ;;  %v12059_v47 = vld [vmem:[#allocation14_spill] sm:$0xff] }
 0x1be   :  { %8357 = vmatprep.subr.bf16.mxu1 %v12055_v25  ;;  %7578 = vmatprep.mubr.msk.f32.mxu1 %vm8895_vm5, %v12056_v44 }
 0x1bf   :  { %8333 = vmatpush3.bf16.msra.mxu0 %v10089_v37  ;;  %v2473_v37 = vld [vmem:[%s12057_s1] sm:$0xff] }
 0x1c0   :  { %8335 = vmatprep.subr.bf16.mxu0 %v10103_v15  ;;  %v8364_v15 = vpack.c.bf16 %v2477_v2, %v2474_v62  ;;  %v12060_v2 = vld [vmem:[#allocation15_spill] sm:$0xff] }
 0x1c1   :  { %8359 = vmatpush3.bf16.msra.mxu1 %v10153_v38 }
 0x1c2   :  { %8360 = vmatprep.subr.bf16.mxu1 %v12055_v25 }
 0x1c3   :  { %8337 = vmatpush3.bf16.msra.mxu0 %v10117_v18  ;;  %v2476_v18 = vld [vmem:[%s12057_s1 + $0x18] sm:$0xff] }
 0x1c4   :  { %8339 = vmatprep.subr.bf16.mxu0 %v10131_v27  ;;  %v8366_v19 = vpack.c.bf16 %v2476_v18, %v2473_v37  ;;  %v2480_v27 = vld [vmem:[%s12057_s1 + $0x38] sm:$0xf]  ;;  %v12062_v18 = vld [vmem:[#allocation18_spill] sm:$0xff] }
 0x1c5   :  { %8363 = vmatpush3.bf16.msk.msra.mxu1 %vm10221_vm4, %v10195_v20 }
 0x1c6   :  { %8365 = vmatprep.subr.bf16.mxu1 %v8364_v15 }
 0x1c7   :  { %8341 = vmatpush3.bf16.msra.mxu0 %v10144_v34  ;;  %v2479_v34 = vld [vmem:[%s12057_s1 + $0x30] sm:$0xf] }
 0x1c8   :  { %7579 = vmatmul.mubr.msk.f32.vlgmr.msra.gmra.mrb[26].mxu1 %vm1842_vm1, %v2315_v60  ;;  %8343 = vmatprep.subr.bf16.mxu0 %v10171_v53 }
 0x1c9   :  { %2559 = vmatprep.mubr.f32.mxu1 %v12056_v44  ;;  %8367 = vmatpush1.bf16.msra.mxu1 %v8366_v19 }
 0x1ca   :  { %6691 = vmatprep.subr.msk.mxu1 %vm1979_vm2, %v2480_v27 }
 0x1cb   :  { %8345 = vmatpush3.bf16.msra.mxu0 %v10183_v5 }
 0x1cc   :  { %8347 = vmatprep.subr.bf16.mxu0 %v10239_v13 }
 0x1cd   :  { %6692 = vmatpush1.msk.msra.mxu1 %vm1979_vm2, %v2479_v34 }
 0x1ce   :  { %8368 = vmatprep.subr.bf16.mxu1 %v12055_v25 }
 0x1cf   :  { %8349 = vmatpush3.bf16.msra.mxu0 %v10242_v17 }
 0x1d0   :  { %8351 = vmatprep.subr.bf16.mxu0 %v10279_v1 }
 0x1d3   :  { %8353 = vmatpush3.bf16.msra.mxu0 %v10290_v6 }
 0x1d4   :  { %8372 = vmatprep.subr.bf16.mxu0 %v8364_v15  ;;  %v12061_v15 = vld [vmem:[#allocation16_spill] sm:$0xff] }
 0x1d6   :  { %2384 = vmatmul.mubr.f32.vlgmr.msra.gmra.mrb[26].mxu0 %v2313_v49 }
 0x1d7   :  { %2704 = vmatprep.mubr.f32.mxu0 %v12056_v44  ;;  %8374 = vmatpush1.bf16.msra.mxu0 %v8366_v19  ;;  %v12063_v19 = vld [vmem:[#allocation20_spill] sm:$0xff] }
 0x1d8   :  { %6696 = vmatprep.subr.msk.mxu0 %vm1979_vm2, %v2480_v27  ;;  %v12064_v27 = vld [vmem:[#allocation17_spill] sm:$0xff] }
 0x1db   :  { %6697 = vmatpush1.msk.msra.mxu0 %vm1979_vm2, %v2479_v34  ;;  %v12065_v34 = vld [vmem:[#allocation19_spill] sm:$0xff] }
 0x289   :  { %v2119_v38 = vpop.f32.mrb[24].mxu0 }
 0x28a   :  { %v7565_v53 = vpop.f32.mrb[25].mxu0 }
 0x28f   :  { %v6994_v5 = vpop.f32.mrb[24].mxu1 }
 0x290   :  { %v6995_v20 = vpop.f32.mrb[25].mxu1 }
 0x291   :  { %v6996_v13 = vadd.f32 %v6995_v20, %v6994_v5  ;;  %v12066_v5 = vld [vmem:[#allocation22_spill] sm:$0xff] }
 0x293   :  { %v2120_v17 = vadd.f32 %v6996_v13, %v2119_v38  ;;  %v12067_v13 = vld [vmem:[#allocation24_spill] sm:$0xff] }
 0x295   :  { %v2459_v32 = vmul.f32 0.00055555557, %v2120_v17 }
 0x297   :  { %v2461_v39 = vmul.f32 %v2459_v32, %v2459_v32 }
 0x29b   :  { %v2455_v1 = vpop.f32.mrb[26].mxu1 }
 0x29c   :  { %v7580_v6 = vpop.f32.mrb[27].mxu1 }
 0x2a9   :  { %v7036_v41 = vpop.f32.mrb[26].mxu0 }
 0x2aa   :  { %v7037_v7 = vpop.f32.mrb[27].mxu0 }
 0x2ab   :  { %v7038_v11 = vadd.f32 %v7037_v7, %v7036_v41  ;;  %v12069_v41 = vld [vmem:[#allocation23_spill] sm:$0xff] }
 0x2ad   :  { %v2456_v36 = vadd.f32 %v7038_v11, %v2455_v1  ;;  %v12068_v1 = vld [vmem:[#allocation21_spill] sm:$0xff] }
 0x2af   :  { %v2460_v54 = vmul.f32 0.00055555557, %v2456_v36  ;;  %v12070_v36 = vld [vmem:[#allocation26_spill] sm:$0xff] }
 0x2b1   :  { %v2462_v55 = vsub.f32 %v2460_v54, %v2461_v39  ;;  %v12071_v54 = vld [vmem:[#allocation28_spill] sm:$0xff] }
 0x2b3   :  { %v2463_v48 = vmax.f32 %v2462_v55, 0.0 }
 0x2b5   :  { %v2465_v16 = vadd.f32 1e-05, %v2463_v48  ;;  %v12072_v48 = vld [vmem:[#allocation25_spill] sm:$0xff] }
 0x2b7   :  { %8859 = vrsqrt.f32 %v2465_v16 }
 0x2c1   :  { %v8860_v0 = vpop.eup %8859 }
 0x2c2   :  { %v2467_v23 = vmul.f32 %v8860_v0, %v2464_v59  ;;  %v12074_v0 = vld [vmem:[#allocation32_spill] sm:$0xff] }
 0x2c4   :  { %6693 = vmatmul.mubr.msk.f32.vlgmr.msra.gmra.mrb[28].mxu1 %vm2482_vm6, %v2467_v23  ;;  %v2468_v22 = vmul.f32 %v2467_v23, %v2459_v32 }
 0x2c5   :  { %8370 = vmatpush3.bf16.msra.mxu1 %v8369_v10  ;;  %7587 = vmatprep.mubr.msk.f32.mxu1 %vm8895_vm5, %v12056_v44 }
 0x2c6   :  { %7585 = vmatprep.subr.mxu1 %v12056_v44  ;;  %v2470_v12 = vrot.slane %v2468_v22, 7 }
 0x2c8   :  { %v2472_v40 = vsub.f32 %v2464_v59, %v2470_v12 }
 0x2c9   :  { %7586 = vmatpush3.msk.msra.mxu1 %vm1979_vm2, %v2481_v46 }
 0x2ca   :  { %7588 = vmatmul.mubr.msk.f32.vlgmr.msra.gmra.mrb[30].mxu1 %vm2482_vm6, %v2467_v23  ;;  %8375 = vmatprep.subr.bf16.mxu1 %v12055_v25  ;;  %v2637_v3 = vrot.slane %v2472_v40, 1  ;;  %v12075_v23 = vld [vmem:[#allocation36_spill] sm:$0xff] }
 0x2cb   :  { %8377 = vmatpush3.bf16.msra.mxu1 %v8369_v10  ;;  %7596 = vmatprep.mubr.msk.f32.mxu1 %vm8895_vm5, %v12056_v44 }
 0x2cc   :  { %6698 = vmatmul.mubr.msk.f32.vlgmr.msra.gmra.mrb[28].mxu0 %vm2482_vm6, %v2637_v3  ;;  %7594 = vmatprep.subr.mxu1 %v12056_v44 }
 0x2cd   :  { %3035 = vmatprep.mubr.f32.mxu0 %v12056_v44 }
 0x2cf   :  { %7595 = vmatpush3.msk.msra.mxu1 %vm1979_vm2, %v2481_v46  ;;  %v12076_v46 = vld [vmem:[#allocation30_spill] sm:$0xff]  ;;  %vm5203_vm2 = vcmask 113664  }
 0x2d0   :  { %7597 = vmatmul.mubr.msk.f32.vlgmr.msra.gmra.mrb[32].mxu1 %vm2482_vm6, %v2637_v3 }
 0x2d1   :  { %7637 = vmatprep.mubr.msk.f32.mxu1 %vm2958_vm7, %v10721_v4 }
 0x397   :  { %v2561_v31 = vpop.f32.mrb[28].mxu1 }
 0x398   :  { %v10728_v28 = vrot.slane %v2561_v31, %v10725_v8  ;;  %v2563_v60 = vpop.f32.mrb[29].mxu1  ;;  %v12078_v31 = vld [vmem:[#allocation5_spill] sm:$0xff] }
 0x399   :  { %v10731_v52 = vrot.slane %v2563_v60, %v10725_v8 }
 0x39a   :  { %v2793_v21 = vmul.f32 %v10728_v28, %v10305_v30  ;;  %v2796_v57 = vmul.f32 %v10728_v28, %v10322_v24  ;;  %v2799_v58 = vmul.f32 %v10728_v28, %v10345_v45  ;;  %v2802_v14 = vmul.f32 %v10728_v28, %v10358_v29 }
 0x39b   :  { %v2794_v49 = vmul.f32 %v10731_v52, %v12058_v42  ;;  %v2797_v62 = vmul.f32 %v10731_v52, %v12059_v47  ;;  %v2800_v37 = vmul.f32 %v10731_v52, %v12060_v2  ;;  %v2803_v30 = vmul.f32 %v10731_v52, %v12061_v15  ;;  %v12079_v42 = vld [vmem:[#allocation8_spill] sm:$0xff]  ;;  %v12080_v15 = vld [vmem:[#allocation7_spill] sm:$0xff] }
 0x39c   :  { %v2806_v24 = vmul.f32 %v10731_v52, %v12062_v18  ;;  %v2809_v45 = vmul.f32 %v10731_v52, %v12063_v19  ;;  %v10755_v29 = vmul.f32 %v10728_v28, %v12064_v27  ;;  %v10759_v38 = vmul.f32 %v10728_v28, %v12065_v34  ;;  %v12081_v19 = vld [vmem:[#allocation10_spill] sm:$0xff]  ;;  %v12082_v34 = vld [vmem:[#allocation9_spill] sm:$0xff] }
 0x39d   :  { %v2632_v53 = vpop.f32.mrb[30].mxu1  ;;  %v10763_v20 = vmul.f32 %v10731_v52, %v12066_v5  ;;  %v10767_v17 = vmul.f32 %v10731_v52, %v12067_v13  ;;  %v10771_v6 = vmul.f32 %v10728_v28, %v12068_v1  ;;  %v10775_v7 = vmul.f32 %v10728_v28, %v12069_v41 }
 0x39e   :  { %v10778_v32 = vrot.slane %v2632_v53, %v10725_v8  ;;  %v7589_v11 = vpop.f32.mrb[31].mxu1  ;;  %v10782_v39 = vmul.f32 %v10731_v52, %v12070_v36  ;;  %v10786_v55 = vmul.f32 %v10731_v52, %v12071_v54  ;;  %v10790_v16 = vmul.f32 %v10728_v28, %v12072_v48 }
 0x39f   :  { %v2706_v43 = vpop.f32.mrb[28].mxu0  ;;  %v10794_v59 = vmul.f32 %v10728_v28, %v12073_v63  ;;  %v10798_v10 = vmul.f32 %v10731_v52, %v12074_v0  ;;  %v10802_v22 = vmul.f32 %v10731_v52, %v12075_v23  ;;  %v10806_v12 = vmul.f32 %v10728_v28, %v12076_v46 }
 0x3a0   :  { %v10809_v40 = vrot.slane %v2706_v43, %v10725_v8  ;;  %v2708_v3 = vpop.f32.mrb[29].mxu0  ;;  %v2795_v51 = vmul.f32 %v10778_v32, %v12077_v35  ;;  %v2798_v60 = vmul.f32 %v12078_v31, %v10778_v32  ;;  %v2801_v47 = vmul.f32 %v10778_v32, %v12079_v42 }
 0x3a1   :  { %v10818_v2 = vrot.slane %v2708_v3, %v10725_v8  ;;  %v2804_v18 = vmul.f32 %v12080_v15, %v10778_v32  ;;  %v2807_v27 = vmul.f32 %v10778_v32, %v12081_v19  ;;  %v2810_v53 = vmul.f32 %v12082_v34, %v10778_v32 }
 0x3a2   :  { %v2829_v5 = vadd.f32 %v10809_v40, %v2793_v21  ;;  %v2832_v13 = vadd.f32 %v10809_v40, %v2796_v57  ;;  %v2835_v1 = vadd.f32 %v10809_v40, %v2799_v58  ;;  %v2838_v41 = vadd.f32 %v10809_v40, %v2802_v14 }
 0x3a3   :  { %v2777_v11 = vpop.f32.mrb[32].mxu1  ;;  %v2830_v36 = vadd.f32 %v10818_v2, %v2794_v49  ;;  %v2833_v54 = vadd.f32 %v10818_v2, %v2797_v62  ;;  %v2836_v48 = vadd.f32 %v10818_v2, %v2800_v37  ;;  %v2839_v43 = vadd.f32 %v10818_v2, %v2803_v30 }
 0x3a4   :  { %v10835_v63 = vrot.slane %v2777_v11, %v10725_v8  ;;  %v7598_v0 = vpop.f32.mrb[33].mxu1  ;;  %v2853_v21 = vmax.f32 %v2829_v5, 0.0  ;;  %v2856_v23 = vmax.f32 %v2832_v13, 0.0  ;;  %v2859_v57 = vmax.f32 %v2835_v1, 0.0 }
 0x3a5   :  { %v2854_v46 = vmax.f32 %v2830_v36, 0.0  ;;  %v2857_v58 = vmax.f32 %v2833_v54, 0.0  ;;  %v2860_v3 = vmax.f32 %v2836_v48, 0.0  ;;  %v2863_v14 = vmax.f32 %v2839_v43, 0.0 }
 0x3a6   :  { %v10837_v35 = vpack.c.bf16 %v2856_v23, %v2853_v21  ;;  %v2831_v49 = vadd.f32 %v10835_v63, %v2795_v51  ;;  %v2834_v62 = vadd.f32 %v10835_v63, %v2798_v60  ;;  %v2837_v37 = vadd.f32 %v10835_v63, %v2801_v47  ;;  %v12083_v23 = vld [vmem:[#allocation12_spill] sm:$0xff] }
 0x3a7   :  { %v10842_v30 = vpack.c.bf16 %v2857_v58, %v2854_v46  ;;  %v10844_v31 = vpack.c.bf16 %v2863_v14, %v2860_v3  ;;  %v2840_v42 = vadd.f32 %v10835_v63, %v2804_v18  ;;  %v2862_v15 = vmax.f32 %v2838_v41, 0.0 }
 0x3a8   :  { %v2855_v19 = vmax.f32 %v2831_v49, 0.0  ;;  %v2858_v34 = vmax.f32 %v2834_v62, 0.0  ;;  %v2861_v5 = vmax.f32 %v2837_v37, 0.0  ;;  %v2842_v13 = vadd.f32 %v10818_v2, %v2806_v24 }
 0x3a9   :  { %8379 = vmatprep.subr.bf16.mxu0 %v10842_v30  ;;  %v2864_v1 = vmax.f32 %v2840_v42, 0.0  ;;  %v10849_v51 = vpack.c.bf16 %v2862_v15, %v2859_v57  ;;  %v2845_v60 = vadd.f32 %v10818_v2, %v2809_v45  ;;  %v2843_v47 = vadd.f32 %v10835_v63, %v2807_v27 }
 0x3aa   :  { %8381 = vmatpush1.bf16.msra.mxu0 %v10837_v35  ;;  %v10854_v11 = vpack.c.bf16 %v2858_v34, %v2855_v19  ;;  %v2866_v18 = vmax.f32 %v2842_v13, 0.0  ;;  %v2846_v41 = vadd.f32 %v10835_v63, %v2810_v53  ;;  %v2841_v36 = vadd.f32 %v10809_v40, %v10755_v29  ;;  %v12085_v19 = vld [vmem:[#allocation31_spill] sm:$0xff] }
 0x3ab   :  { %8383 = vmatprep.subr.bf16.mxu0 %v10844_v31  ;;  %v10860_v24 = vpack.c.bf16 %v2864_v1, %v2861_v5  ;;  %v2869_v54 = vmax.f32 %v2845_v60, 0.0  ;;  %v2867_v48 = vmax.f32 %v2843_v47, 0.0  ;;  %v2844_v45 = vadd.f32 %v10809_v40, %v10759_v38  ;;  %v12084_v38 = vld [vmem:[#allocation11_spill] sm:$0xff]  ;;  %v12086_v5 = vld [vmem:[#allocation29_spill] sm:$0xff] }
 0x3ac   :  { %8427 = vmatprep.subr.bf16.mxu1 %v10854_v11  ;;  %v2870_v27 = vmax.f32 %v2846_v41, 0.0  ;;  %v2865_v43 = vmax.f32 %v2841_v36, 0.0  ;;  %v2848_v0 = vadd.f32 %v10818_v2, %v10763_v20  ;;  %v2851_v53 = vadd.f32 %v10818_v2, %v10767_v17  ;;  %v12087_v47 = vld [vmem:[#allocation35_spill] sm:$0xff]  ;;  %v12088_v36 = vld [vmem:[#allocation33_spill] sm:$0xff] }
 0x3ad   :  { %8429 = vmatpush3.bf16.msra.mxu1 %v10854_v11  ;;  %v10870_v29 = vpack.c.bf16 %v2869_v54, %v2866_v18  ;;  %v2868_v21 = vmax.f32 %v2844_v45, 0.0  ;;  %v2813_v57 = vmul.f32 %v10778_v32, %v12083_v23  ;;  %v2816_v46 = vmul.f32 %v12084_v38, %v10778_v32  ;;  %v12089_v23 = vld [vmem:[#allocation37_spill] sm:$0xff] }
 0x3ae   :  { %8431 = vmatprep.subr.bf16.mxu1 %v10860_v24  ;;  %8385 = vmatpush1.bf16.msra.mxu0 %v10849_v51  ;;  %v10878_v58 = vpack.c.bf16 %v2870_v27, %v2867_v48  ;;  %v2872_v20 = vmax.f32 %v2848_v0, 0.0  ;;  %v2875_v3 = vmax.f32 %v2851_v53, 0.0  ;;  %v2847_v17 = vadd.f32 %v10809_v40, %v10771_v6 }
 0x3af   :  { %8387 = vmatprep.subr.bf16.mxu0 %v10870_v29  ;;  %v10883_v14 = vpack.c.bf16 %v2868_v21, %v2865_v43  ;;  %v2849_v49 = vadd.f32 %v10835_v63, %v2813_v57  ;;  %v2852_v62 = vadd.f32 %v10835_v63, %v2816_v46  ;;  %v2850_v37 = vadd.f32 %v10809_v40, %v10775_v7 }
 0x3b0   :  { %v10889_v42 = vpack.c.bf16 %v2875_v3, %v2872_v20  ;;  %v2871_v15 = vmax.f32 %v2847_v17, 0.0  ;;  %v2879_v34 = vmul.f32 %v10778_v32, %v12085_v19  ;;  %v2882_v6 = vmul.f32 %v12086_v5, %v10778_v32 }
 0x3b1   :  { %8433 = vmatpush3.bf16.msra.mxu1 %v10860_v24  ;;  %v2873_v13 = vmax.f32 %v2849_v49, 0.0  ;;  %v2876_v1 = vmax.f32 %v2852_v62, 0.0  ;;  %v2874_v60 = vmax.f32 %v2850_v37, 0.0  ;;  %v2885_v18 = vmul.f32 %v10778_v32, %v12087_v47 }
 0x3b2   :  { %8435 = vmatprep.subr.bf16.mxu1 %v10878_v58  ;;  %8389 = vmatpush1.bf16.msra.mxu0 %v10883_v14  ;;  %v2903_v7 = vadd.f32 %v2879_v34, %v10835_v63  ;;  %v2906_v41 = vadd.f32 %v2882_v6, %v10835_v63  ;;  %v2888_v54 = vmul.f32 %v12088_v36, %v10778_v32  ;;  %v12090_v36 = vld [vmem:[#allocation34_spill] sm:$0xff] }
 0x3b3   :  { %8391 = vmatprep.subr.bf16.mxu0 %v10889_v42  ;;  %v10905_v48 = vpack.c.bf16 %v2876_v1, %v2873_v13  ;;  %v10907_v45 = vpack.c.bf16 %v2874_v60, %v2871_v15  ;;  %v2909_v27 = vadd.f32 %v2885_v18, %v10835_v63  ;;  %v2891_v43 = vmul.f32 %v10778_v32, %v10533_v50  ;;  %v10926_v50 = vld [vmem:[%s11938_s7] sm:$0xff] }
 0x3b4   :  { %v2927_v0 = vmax.f32 %v2903_v7, 0.0  ;;  %v2930_v53 = vmax.f32 %v2906_v41, 0.0  ;;  %v2912_v21 = vadd.f32 %v2888_v54, %v10835_v63  ;;  %v2894_v57 = vmul.f32 %v12089_v23, %v10778_v32 }
 0x3b5   :  { %8437 = vmatpush3.bf16.msra.mxu1 %v10878_v58  ;;  %v2933_v38 = vmax.f32 %v2909_v27, 0.0  ;;  %v2915_v46 = vadd.f32 %v2891_v43, %v10835_v63  ;;  %v2897_v20 = vmul.f32 %v10778_v32, %v10561_v33  ;;  %v2900_v3 = vmul.f32 %v10551_v56, %v10778_v32  ;;  %v12091_v43 = vld [vmem:[#allocation39_spill] sm:$0xff] }
 0x3b6   :  { %8439 = vmatprep.subr.bf16.mxu1 %v10905_v48  ;;  %8393 = vmatpush1.bf16.msra.mxu0 %v10907_v45  ;;  %v10928_v17 = vpack.c.bf16 %v2930_v53, %v2927_v0  ;;  %v2936_v49 = vmax.f32 %v2912_v21, 0.0  ;;  %v2918_v62 = vadd.f32 %v2894_v57, %v10835_v63  ;;  %v2902_v33 = vadd.f32 %v10782_v39, %v10818_v2  ;;  %v10948_v39 = vld [vmem:[%s11938_s7 + $0x28] sm:$0xff]  ;;  %v10985_v53 = vld [vmem:[%s11938_s7 + $0x30] sm:$0xff] }
 0x3b7   :  { %8395 = vmatprep.subr.bf16.mxu0 %v10854_v11  ;;  %v2939_v56 = vmax.f32 %v2915_v46, 0.0  ;;  %v2921_v32 = vadd.f32 %v2897_v20, %v10835_v63  ;;  %v2924_v37 = vadd.f32 %v2900_v3, %v10835_v63  ;;  %v2905_v15 = vadd.f32 %v10786_v55, %v10818_v2  ;;  %v10997_v57 = vld [vmem:[%s11938_s7 + $0x10] sm:$0xff] }
 0x3b8   :  { %v10938_v19 = vpack.c.bf16 %v2936_v49, %v2933_v38  ;;  %v2942_v34 = vmax.f32 %v2918_v62, 0.0  ;;  %v2926_v5 = vmax.f32 %v2902_v33, 0.0  ;;  %v2901_v6 = vadd.f32 %v10790_v16, %v10809_v40  ;;  %v10957_v16 = vld [vmem:[%s11938_s7 + $0x8] sm:$0xff]  ;;  %v12093_v62 = vld [vmem:[#allocation40_spill] sm:$0xff] }
 0x3b9   :  { %8441 = vmatpush3.bf16.msra.mxu1 %v10905_v48  ;;  %6705 = vmatmul.mubr.msk.f32.vlgmr.msra.gmra.mrb[30].mxu0 %vm2958_vm7, %v10926_v50  ;;  %v2945_v63 = vmax.f32 %v2921_v32, 0.0  ;;  %v2948_v13 = vmax.f32 %v2924_v37, 0.0  ;;  %v2929_v55 = vmax.f32 %v2905_v15, 0.0  ;;  %v2904_v1 = vadd.f32 %v10794_v59, %v10809_v40  ;;  %v12092_v3 = vld [vmem:[#allocation38_spill] sm:$0xff]  ;;  %v12094_v15 = vld [vmem:[#allocation43_spill] sm:$0xff] }
 0x3ba   :  { %8459 = vmatprep.subr.bf16.mxu1 %v10928_v17  ;;  %8397 = vmatpush3.bf16.msra.mxu0 %v10854_v11  ;;  %v10959_v60 = vpack.c.bf16 %v2942_v34, %v2939_v56  ;;  %v2925_v47 = vmax.f32 %v2901_v6, 0.0  ;;  %v2908_v18 = vadd.f32 %v10798_v10, %v10818_v2  ;;  %v2911_v7 = vadd.f32 %v10802_v22, %v10818_v2 }
 0x3bb   :  { %8399 = vmatprep.subr.bf16.mxu0 %v10860_v24  ;;  %3041 = vmatprep.mubr.f32.mxu0 %v12056_v44  ;;  %v10967_v59 = vpack.c.bf16 %v2948_v13, %v2945_v63  ;;  %v10969_v11 = vpack.c.bf16 %v2929_v55, %v2926_v5  ;;  %v2928_v41 = vmax.f32 %v2904_v1, 0.0  ;;  %v2886_v54 = vmul.f32 %v10728_v28, %v12090_v36  ;;  %v12095_v5 = vld [vmem:[#allocation41_spill] sm:$0xff]  ;;  %v11035_v1 = vld [vmem:[%s11938_s7 + $0x18] sm:$0x3f] }
 0x3bc   :  { %7638 = vmatmul.mubr.msk.f32.vlgmr.msra.gmra.mrb[34].mxu1 %vm2958_vm7, %v10948_v39  ;;  %v2932_v27 = vmax.f32 %v2908_v18, 0.0  ;;  %v2935_v10 = vmax.f32 %v2911_v7, 0.0  ;;  %v2907_v22 = vadd.f32 %v10806_v12, %v10809_v40  ;;  %v2890_v0 = vmul.f32 %v10731_v52, %v12091_v43  ;;  %v12096_v7 = vld [vmem:[#allocation42_spill] sm:$0xff] }
 0x3bd   :  { %8461 = vmatpush3.bf16.msra.mxu1 %v10928_v17  ;;  %6706 = vmatmul.mubr.msk.f32.gmra.mrb[32].mxu0 %vm2958_vm7, %v10957_v16  ;;  %v10987_v21 = vpack.c.bf16 %v2928_v41, %v2925_v47  ;;  %v2910_v23 = vadd.f32 %v2886_v54, %v10809_v40  ;;  %v2893_v12 = vmul.f32 %v10731_v52, %v10564_v9 }
 0x3be   :  { %8463 = vmatprep.subr.bf16.mxu1 %v10938_v19  ;;  %8401 = vmatpush3.bf16.msra.mxu0 %v10860_v24  ;;  %v10999_v38 = vpack.c.bf16 %v2935_v10, %v2932_v27  ;;  %v2931_v46 = vmax.f32 %v2907_v22, 0.0  ;;  %v2914_v20 = vadd.f32 %v2890_v0, %v10818_v2  ;;  %v2889_v49 = vmul.f32 %v10728_v28, %v12092_v3 }
 0x3bf   :  { %8403 = vmatprep.subr.bf16.mxu0 %v10878_v58  ;;  %3047 = vmatprep.mubr.f32.mxu0 %v12056_v44  ;;  %v2934_v9 = vmax.f32 %v2910_v23, 0.0  ;;  %v2917_v24 = vadd.f32 %v2893_v12, %v10818_v2  ;;  %v2892_v33 = vmul.f32 %v10728_v28, %v12093_v62  ;;  %v2896_v56 = vmul.f32 %v10731_v52, %v10585_v26  ;;  %v11024_v26 = vld [vmem:[%s11938_s7 + $0x38] sm:$0x3f]  ;;  %v3717_v23 = vld [vmem:[%s11939_s8 + $0x10] sm:$0xff] }
 0x3c0   :  { %7640 = vmatprep.mubr.msk.f32.mxu1 %vm2958_vm7, %v10985_v53  ;;  %v2938_v32 = vmax.f32 %v2914_v20, 0.0  ;;  %v2913_v37 = vadd.f32 %v2889_v49, %v10809_v40  ;;  %v2899_v34 = vmul.f32 %v10731_v52, %v12094_v15  ;;  %v2895_v6 = vmul.f32 %v10728_v28, %v12095_v5  ;;  %v3718_v12 = vld [vmem:[%s11939_s8 + $0x18] sm:$0xff]  ;;  %v3736_v20 = vld [vmem:[%s11939_s8 + $0xa8] sm:$0xff]  ;;  %v3719_v49 = vld [vmem:[%s11939_s8 + $0x20] sm:$0xff] }
 0x3c1   :  { %8465 = vmatpush3.bf16.msra.mxu1 %v10938_v19  ;;  %6707 = vmatmul.mubr.msk.f32.gmra.mrb[34].mxu0 %vm2958_vm7, %v10997_v57  ;;  %v11026_v63 = vpack.c.bf16 %v2934_v9, %v2931_v46  ;;  %v2941_v13 = vmax.f32 %v2917_v24, 0.0  ;;  %v2916_v55 = vadd.f32 %v2892_v33, %v10809_v40  ;;  %v2920_v52 = vadd.f32 %v2896_v56, %v10818_v2  ;;  %v3735_v46 = vld [vmem:[%s11939_s8 + $0xa0] sm:$0xff]  ;;  %v3720_v9 = vld [vmem:[%s11939_s8 + $0x28] sm:$0xff]  ;;  %v3737_v62 = vld [vmem:[%s11939_s8 + $0xb0] sm:$0xff] }
 0x3c2   :  { %8467 = vmatprep.subr.bf16.mxu1 %v10959_v60  ;;  %8405 = vmatpush3.bf16.msra.mxu0 %v10878_v58  ;;  %v2937_v47 = vmax.f32 %v2913_v37, 0.0  ;;  %v2923_v18 = vadd.f32 %v2899_v34, %v10818_v2  ;;  %v2898_v41 = vmul.f32 %v10728_v28, %v12096_v7  ;;  %v2919_v36 = vadd.f32 %v2895_v6, %v10809_v40  ;;  %v3738_v33 = vld [vmem:[%s11939_s8 + $0xb8] sm:$0xff]  ;;  %v3739_v34 = vld [vmem:[%s11939_s8 + $0xc0] sm:$0xff]  ;;  %v3740_v5 = vld [vmem:[%s11939_s8 + $0xc8] sm:$0xff] }
 0x3c3   :  { %8407 = vmatprep.subr.bf16.mxu0 %v10905_v48  ;;  %3053 = vmatprep.mubr.f32.mxu0 %v12056_v44  ;;  %v11043_v54 = vpack.c.bf16 %v2941_v13, %v2938_v32  ;;  %v2940_v58 = vmax.f32 %v2916_v55, 0.0  ;;  %v2944_v27 = vmax.f32 %v2920_v52, 0.0  ;;  %v8514_v3 = vpack.c.bf16 %v3736_v20, %v3735_v46  ;;  %v3721_v32 = vld [vmem:[%s11939_s8 + $0x30] sm:$0xff]  ;;  %v3722_v37 = vld [vmem:[%s11939_s8 + $0x38] sm:$0xff] }
 0x3c4   :  { %7641 = vmatmul.mubr.msk.f32.gmra.mrb[36].mxu1 %vm2958_vm7, %v11024_v26  ;;  %v2947_v10 = vmax.f32 %v2923_v18, 0.0  ;;  %v2922_v22 = vadd.f32 %v2898_v41, %v10809_v40  ;;  %v2943_v2 = vmax.f32 %v2919_v36, 0.0  ;;  %v8516_v24 = vpack.c.bf16 %v3720_v9, %v3719_v49  ;;  %v3741_v55 = vld [vmem:[%s11939_s8 + $0xd0] sm:$0xff]  ;;  %v3742_v52 = vld [vmem:[%s11939_s8 + $0xd8] sm:$0xff]  ;;  %v3743_v41 = vld [vmem:[%s11939_s8 + $0xe0] sm:$0xff] }
 0x3c5   :  { %8469 = vmatpush3.bf16.msra.mxu1 %v10959_v60  ;;  %6708 = vmatmul.mubr.msk.f32.gmra.mrb[36].mxu0 %vm2958_vm7, %v11035_v1  ;;  %v8452_v28 = vpack.c.bf16 %v2940_v58, %v2937_v47  ;;  %v8518_v56 = vpack.c.bf16 %v3738_v33, %v3737_v62  ;;  %v8520_v15 = vpack.c.bf16 %v3722_v37, %v3721_v32  ;;  %v3725_v47 = vld [vmem:[%s11939_s8 + $0x50] sm:$0xff]  ;;  %v3726_v18 = vld [vmem:[%s11939_s8 + $0x58] sm:$0xff]  ;;  %v3744_v36 = vld [vmem:[%s11939_s8 + $0xe8] sm:$0xff] }
 0x3c6   :  { %8471 = vmatprep.subr.bf16.mxu1 %v10967_v59  ;;  %8409 = vmatpush3.bf16.msra.mxu0 %v10905_v48  ;;  %v8454_v43 = vpack.c.bf16 %v2947_v10, %v2944_v27  ;;  %v2946_v0 = vmax.f32 %v2922_v22, 0.0  ;;  %v8522_v6 = vpack.c.bf16 %v3740_v5, %v3739_v34  ;;  %v8528_v7 = vpack.c.bf16 %v3726_v18, %v3725_v47  ;;  %v3727_v58 = vld [vmem:[%s11939_s8 + $0x60] sm:$0xff]  ;;  %v3728_v27 = vld [vmem:[%s11939_s8 + $0x68] sm:$0xff]  ;;  %v3745_v22 = vld [vmem:[%s11939_s8 + $0xf0] sm:$0xff] }
 0x3c7   :  { %8411 = vmatprep.subr.bf16.mxu0 %v10842_v30  ;;  %7615 = vmatprep.mubr.msk.f32.mxu0 %vm2958_vm7, %v10926_v50  ;;  %v8532_v10 = vpack.c.bf16 %v3728_v27, %v3727_v58  ;;  %v3939_v34 = vld [vmem:[%s11940_s9 + $0x8] sm:$0xff]  ;;  %v3940_v58 = vld [vmem:[%s11940_s9 + $0x10] sm:$0xff]  ;;  %v3941_v27 = vld [vmem:[%s11940_s9 + $0x18] sm:$0xff] }
 0x3c8   :  { %7659 = vmatprep.mubr.msk.f32.mxu1 %vm2958_vm7, %v10926_v50  ;;  %v8456_v40 = vpack.c.bf16 %v2946_v0, %v2943_v2  ;;  %v3746_v2 = vld [vmem:[%s11939_s8 + $0xf8] sm:$0xff] }
 0x3c9   :  { %8473 = vmatpush3.bf16.msra.mxu1 %v10967_v59  ;;  %7616 = vmatmul.mubr.msk.f32.vlgmr.msra.gmra.mrb[38].mxu0 %vm2958_vm7, %v10957_v16  ;;  %v3730_v0 = vld [vmem:[%s11939_s8 + $0x78] sm:$0xff] }
 0x3ca   :  { %8491 = vmatprep.subr.bf16.mxu1 %v10928_v17  ;;  %8413 = vmatpush1.bf16.msra.mxu0 %v10837_v35  ;;  %v3747_v35 = vld [vmem:[%s11939_s8 + $0x100] sm:$0xff] }
 0x3cb   :  { %8415 = vmatprep.subr.bf16.mxu0 %v10844_v31  ;;  %7618 = vmatprep.mubr.msk.f32.mxu0 %vm2958_vm7, %v10997_v57  ;;  %v3749_v31 = vld [vmem:[%s11939_s8 + $0x110] sm:$0xff] }
 0x3cc   :  { %7660 = vmatmul.mubr.msk.f32.vlgmr.msra.gmra.mrb[38].mxu1 %vm2958_vm7, %v10957_v16 }
 0x3cd   :  { %8493 = vmatpush3.bf16.msra.mxu1 %v10928_v17  ;;  %7619 = vmatmul.mubr.msk.f32.gmra.mrb[40].mxu0 %vm2958_vm7, %v11035_v1  ;;  %v3715_v17 = vld [vmem:[%s11939_s8] sm:$0xff] }
 0x3ce   :  { %8495 = vmatprep.subr.bf16.mxu1 %v10938_v19  ;;  %8417 = vmatpush1.bf16.msra.mxu0 %v10849_v51  ;;  %v3750_v51 = vld [vmem:[%s11939_s8 + $0x118] sm:$0xff] }
 0x3cf   :  { %8419 = vmatprep.subr.bf16.mxu0 %v10870_v29  ;;  %7662 = vmatprep.mubr.msk.f32.mxu1 %vm2958_vm7, %v10997_v57  ;;  %v8542_v29 = vpack.c.bf16 %v3750_v51, %v3749_v31 }
 0x3d0   :  { %7663 = vmatmul.mubr.msk.f32.gmra.mrb[40].mxu1 %vm2958_vm7, %v11035_v1  ;;  %3221 = vmatprep.mubr.f32.mxu0 %v12056_v44 }
 0x3d1   :  { %8497 = vmatpush3.bf16.msra.mxu1 %v10938_v19  ;;  %7681 = vmatprep.mubr.msk.f32.mxu1 %vm2958_vm7, %v10721_v4 }
 0x3d2   :  { %8499 = vmatprep.subr.bf16.mxu1 %v10959_v60  ;;  %8421 = vmatpush1.bf16.msra.mxu0 %v10883_v14  ;;  %v3751_v14 = vld [vmem:[%s11939_s8 + $0x120] sm:$0xff] }
 0x3d3   :  { %8423 = vmatprep.subr.bf16.mxu0 %v10889_v42  ;;  %v3752_v42 = vld [vmem:[%s11939_s8 + $0x128] sm:$0xf] }
 0x3d4   :  { %v8546_v48 = vpack.c.bf16 %v3752_v42, %v3751_v14 }
 0x3d5   :  { %8501 = vmatpush3.bf16.msra.mxu1 %v10959_v60  ;;  %v3955_v60 = vld [vmem:[%s11940_s9 + $0x88] sm:$0xff] }
 0x3d6   :  { %8503 = vmatprep.subr.bf16.mxu1 %v10967_v59  ;;  %8425 = vmatpush1.bf16.msra.mxu0 %v10907_v45  ;;  %v3731_v45 = vld [vmem:[%s11939_s8 + $0x80] sm:$0xff] }
 0x3d7   :  { %8443 = vmatprep.subr.bf16.mxu0 %v10969_v11 }
 0x3d9   :  { %8505 = vmatpush3.bf16.msra.mxu1 %v10967_v59  ;;  %6713 = vmatmul.mubr.msk.f32.vlgmr.msra.gmra.mrb[42].mxu0 %vm2958_vm7, %v10721_v4 }
 0x3da   :  { %8445 = vmatpush1.bf16.msra.mxu0 %v10987_v21  ;;  %3227 = vmatprep.mubr.f32.mxu0 %v12056_v44 }
 0x3db   :  { %8447 = vmatprep.subr.bf16.mxu0 %v10999_v38 }
 0x3dc   :  { %7682 = vmatmul.mubr.msk.f32.vlgmr.msra.gmra.mrb[42].mxu1 %vm2958_vm7, %v10948_v39 }
 0x3dd   :  { %6714 = vmatmul.mubr.msk.f32.gmra.mrb[44].mxu0 %vm2958_vm7, %v10948_v39  ;;  %7684 = vmatprep.mubr.msk.f32.mxu1 %vm2958_vm7, %v10985_v53 }
 0x3de   :  { %8449 = vmatpush1.bf16.msra.mxu0 %v11026_v63  ;;  %3233 = vmatprep.mubr.f32.mxu0 %v12056_v44 }
 0x3df   :  { %8451 = vmatprep.subr.bf16.mxu0 %v11043_v54 }
 0x3e0   :  { %7685 = vmatmul.mubr.msk.f32.gmra.mrb[44].mxu1 %vm2958_vm7, %v11024_v26 }
 0x3e1   :  { %6715 = vmatmul.mubr.msk.f32.gmra.mrb[46].mxu0 %vm2958_vm7, %v10985_v53 }
 0x3e2   :  { %8453 = vmatpush1.bf16.msra.mxu0 %v8452_v28  ;;  %3239 = vmatprep.mubr.f32.mxu0 %v12056_v44 }
 0x3e3   :  { %8455 = vmatprep.subr.bf16.mxu0 %v8454_v43 }
 0x3e5   :  { %6716 = vmatmul.mubr.msk.f32.gmra.mrb[48].mxu0 %vm2958_vm7, %v11024_v26 }
 0x3e6   :  { %8457 = vmatpush1.bf16.msra.mxu0 %v8456_v40  ;;  %3407 = vmatprep.mubr.f32.mxu0 %v12056_v44 }
 0x3e7   :  { %8475 = vmatprep.subr.bf16.mxu0 %v10969_v11 }
 0x3e9   :  { %6721 = vmatmul.mubr.msk.f32.vlgmr.msra.gmra.mrb[50].mxu0 %vm2958_vm7, %v10926_v50  ;;  %v3732_v50 = vld [vmem:[%s11939_s8 + $0x88] sm:$0xff] }
 0x3ea   :  { %8477 = vmatpush1.bf16.msra.mxu0 %v10987_v21  ;;  %3413 = vmatprep.mubr.f32.mxu0 %v12056_v44  ;;  %v8506_v19 = vpack.c.bf16 %v3732_v50, %v3731_v45  ;;  %v3734_v21 = vld [vmem:[%s11939_s8 + $0x98] sm:$0xff] }
 0x3eb   :  { %8479 = vmatprep.subr.bf16.mxu0 %v10999_v38  ;;  %v8512_v38 = vpack.c.bf16 %v3718_v12, %v3717_v23 }
 0x3ed   :  { %6722 = vmatmul.mubr.msk.f32.gmra.mrb[52].mxu0 %vm2958_vm7, %v10957_v16  ;;  %v3954_v16 = vld [vmem:[%s11940_s9 + $0x80] sm:$0xff] }
 0x3ee   :  { %8481 = vmatpush1.bf16.msra.mxu0 %v11026_v63  ;;  %3419 = vmatprep.mubr.f32.mxu0 %v12056_v44  ;;  %v8552_v11 = vpack.c.bf16 %v3955_v60, %v3954_v16  ;;  %v3724_v63 = vld [vmem:[%s11939_s8 + $0x48] sm:$0xff] }
 0x3ef   :  { %8483 = vmatprep.subr.bf16.mxu0 %v11043_v54  ;;  %v8530_v54 = vpack.c.bf16 %v3744_v36, %v3743_v41 }
 0x3f1   :  { %6723 = vmatmul.mubr.msk.f32.gmra.mrb[54].mxu0 %vm2958_vm7, %v10997_v57 }
 0x3f2   :  { %8485 = vmatpush1.bf16.msra.mxu0 %v8452_v28  ;;  %3425 = vmatprep.mubr.f32.mxu0 %v12056_v44  ;;  %v8534_v28 = vpack.c.bf16 %v3746_v2, %v3745_v22 }
 0x3f3   :  { %8487 = vmatprep.subr.bf16.mxu0 %v8454_v43  ;;  %v3729_v43 = vld [vmem:[%s11939_s8 + $0x70] sm:$0xff] }
 0x3f5   :  { %6724 = vmatmul.mubr.msk.f32.gmra.mrb[56].mxu0 %vm2958_vm7, %v11035_v1  ;;  %v8526_v1 = vpack.c.bf16 %v3742_v52, %v3741_v55 }
 0x3f6   :  { %8489 = vmatpush1.bf16.msra.mxu0 %v8456_v40  ;;  %3581 = vmatprep.mubr.f32.mxu0 %v12056_v44  ;;  %v8536_v40 = vpack.c.bf16 %v3730_v0, %v3729_v43  ;;  %v3959_v43 = vld [vmem:[%s11940_s9 + $0xa8] sm:$0xff] }
 0x3f7   :  { %8507 = vmatprep.subr.bf16.mxu0 %v8506_v19 }
 0x3f9   :  { %6729 = vmatmul.mubr.msk.f32.vlgmr.msra.gmra.mrb[58].mxu0 %vm2958_vm7, %v10721_v4  ;;  %v3748_v4 = vld [vmem:[%s11939_s8 + $0x108] sm:$0xff] }
 0x3fa   :  { %3587 = vmatprep.mubr.f32.mxu0 %v12056_v44  ;;  %v8538_v30 = vpack.c.bf16 %v3748_v4, %v3747_v35  ;;  %v3970_v35 = vld [vmem:[%s11940_s9 + $0x100] sm:$0xff]  ;;  %v3971_v4 = vld [vmem:[%s11940_s9 + $0x108] sm:$0xff] }
 0x3fc   :  { %8539 = vmatprep.subr.bf16.mxu1 %v8538_v30 }
 0x3fd   :  { %6730 = vmatmul.mubr.msk.f32.gmra.mrb[60].mxu0 %vm2958_vm7, %v10948_v39  ;;  %8541 = vmatpush3.bf16.msra.mxu1 %v8538_v30  ;;  %v3716_v39 = vld [vmem:[%s11939_s8 + $0x8] sm:$0xff]  ;;  %v11270_v30 = vpack.c.bf16 %v3971_v4, %v3970_v35  ;;  %v8558_v4 = vpack.c.bf16 %v3941_v27, %v3940_v58  ;;  %v3949_v58 = vld [vmem:[%s11940_s9 + $0x58] sm:$0xff] }
 0x3fe   :  { %3593 = vmatprep.mubr.f32.mxu0 %v12056_v44  ;;  %8543 = vmatprep.subr.bf16.mxu1 %v8542_v29  ;;  %v8508_v59 = vpack.c.bf16 %v3716_v39, %v3715_v17 }
 0x400   :  { %8509 = vmatpush3.bf16.msra.mxu0 %v8508_v59 }
 0x401   :  { %6731 = vmatmul.mubr.msk.f32.gmra.mrb[62].mxu0 %vm2958_vm7, %v10985_v53  ;;  %8545 = vmatpush3.bf16.msra.mxu1 %v8542_v29  ;;  %v3733_v53 = vld [vmem:[%s11939_s8 + $0x90] sm:$0xff] }
 0x402   :  { %3599 = vmatprep.mubr.f32.mxu0 %v12056_v44  ;;  %8548 = vmatprep.subr.msk.bf16.mxu1 %vm10221_vm4, %v8546_v48  ;;  %v8510_v57 = vpack.c.bf16 %v3734_v21, %v3733_v53 }
 0x404   :  { %8511 = vmatprep.subr.bf16.mxu0 %v8510_v57 }
 0x405   :  { %6732 = vmatmul.mubr.msk.f32.gmra.mrb[64].mxu0 %vm2958_vm7, %v11024_v26  ;;  %8551 = vmatpush3.bf16.msk.msra.mxu1 %vm10221_vm4, %v8546_v48  ;;  %v3723_v26 = vld [vmem:[%s11939_s8 + $0x40] sm:$0xff] }
 0x406   :  { %8553 = vmatprep.subr.bf16.mxu1 %v8552_v11  ;;  %8513 = vmatpush3.bf16.msra.mxu0 %v8512_v38  ;;  %v8524_v13 = vpack.c.bf16 %v3724_v63, %v3723_v26  ;;  %v3956_v63 = vld [vmem:[%s11940_s9 + $0x90] sm:$0xff] }
 0x407   :  { %8515 = vmatprep.subr.bf16.mxu0 %v8514_v3 }
 0x40a   :  { %8517 = vmatpush3.bf16.msra.mxu0 %v8516_v24 }
 0x40b   :  { %8519 = vmatprep.subr.bf16.mxu0 %v8518_v56 }
 0x40e   :  { %8521 = vmatpush3.bf16.msra.mxu0 %v8520_v15  ;;  %v3938_v15 = vld [vmem:[%s11940_s9] sm:$0xff] }
 0x40f   :  { %8523 = vmatprep.subr.bf16.mxu0 %v8522_v6  ;;  %v8554_v18 = vpack.c.bf16 %v3939_v34, %v3938_v15  ;;  %v3946_v34 = vld [vmem:[%s11940_s9 + $0x40] sm:$0xff] }
 0x412   :  { %8525 = vmatpush3.bf16.msra.mxu0 %v8524_v13  ;;  %v3957_v13 = vld [vmem:[%s11940_s9 + $0x98] sm:$0xff] }
 0x413   :  { %8527 = vmatprep.subr.bf16.mxu0 %v8526_v1 }
 0x416   :  { %8529 = vmatpush3.bf16.msra.mxu0 %v8528_v7 }
 0x417   :  { %8531 = vmatprep.subr.bf16.mxu0 %v8530_v54  ;;  %v8556_v54 = vpack.c.bf16 %v3957_v13, %v3956_v63  ;;  %v3964_v13 = vld [vmem:[%s11940_s9 + $0xd0] sm:$0xff] }
 0x41a   :  { %8533 = vmatpush3.bf16.msra.mxu0 %v8532_v10 }
 0x41b   :  { %8535 = vmatprep.subr.bf16.mxu0 %v8534_v28  ;;  %v3958_v28 = vld [vmem:[%s11940_s9 + $0xa0] sm:$0xff] }
 0x41e   :  { %8537 = vmatpush3.bf16.msra.mxu0 %v8536_v40 }
 0x41f   :  { %8585 = vmatprep.subr.bf16.mxu0 %v11270_v30 }
 0x48c   :  { %v11273_v31 = vpop.f32.mrb[30].mxu0 }
 0x48d   :  { %v11275_v51 = vpop.f32.mrb[31].mxu0 }
 0x48f   :  { %v7639_v29 = vpop.f32.mrb[34].mxu1 }
 0x490   :  { %v11277_v14 = vpop.f32.mrb[32].mxu0  ;;  %v3312_v42 = vpop.f32.mrb[35].mxu1 }
 0x491   :  { %v11279_v48 = vpop.f32.mrb[33].mxu0 }
 0x494   :  { %v11281_v45 = vpop.f32.mrb[34].mxu0 }
 0x495   :  { %v11283_v50 = vpop.f32.mrb[35].mxu0 }
 0x497   :  { %v7642_v17 = vpop.f32.mrb[36].mxu1 }
 0x498   :  { %v11285_v19 = vpop.f32.mrb[36].mxu0  ;;  %v3322_v39 = vpop.f32.mrb[37].mxu1 }
 0x499   :  { %v11287_v16 = vpop.f32.mrb[37].mxu0 }
 0x49c   :  { %v7617_v60 = vpop.f32.mrb[38].mxu0 }
 0x49d   :  { %v3336_v59 = vmax.f32 %v7617_v60, %v7639_v29  ;;  %v3126_v11 = vpop.f32.mrb[39].mxu0 }
 0x49e   :  { %v3333_v53 = vmax.f32 %v3126_v11, %v3312_v42  ;;  %v8560_v42 = vpack.c.bf16 %v3959_v43, %v3958_v28  ;;  %v3960_v11 = vld [vmem:[%s11940_s9 + $0xb0] sm:$0xff]  ;;  %v3967_v28 = vld [vmem:[%s11940_s9 + $0xe8] sm:$0xff] }
 0x49f   :  { %v7661_v21 = vpop.f32.mrb[38].mxu1 }
 0x4a0   :  { %v7620_v23 = vpop.f32.mrb[40].mxu0  ;;  %v3498_v12 = vpop.f32.mrb[39].mxu1 }
 0x4a1   :  { %v3342_v57 = vmax.f32 %v7620_v23, %v7642_v17  ;;  %v3136_v38 = vpop.f32.mrb[41].mxu0  ;;  %v3942_v17 = vld [vmem:[%s11940_s9 + $0x20] sm:$0xff] }
 0x4a2   :  { %v3339_v46 = vmax.f32 %v3136_v38, %v3322_v39  ;;  %v3943_v39 = vld [vmem:[%s11940_s9 + $0x28] sm:$0xff]  ;;  %v3944_v38 = vld [vmem:[%s11940_s9 + $0x30] sm:$0xff] }
 0x4a3   :  { %v7664_v20 = vpop.f32.mrb[40].mxu1  ;;  %v8562_v23 = vpack.c.bf16 %v3943_v39, %v3942_v17  ;;  %v3950_v17 = vld [vmem:[%s11940_s9 + $0x60] sm:$0xff]  ;;  %v3951_v39 = vld [vmem:[%s11940_s9 + $0x68] sm:$0xff] }
 0x4a4   :  { %v3508_v3 = vpop.f32.mrb[41].mxu1 }
 0x4ac   :  { %v11289_v49 = vpop.f32.mrb[42].mxu0 }
 0x4ad   :  { %v3331_v9 = vmax.f32 %v11273_v31, %v11289_v49  ;;  %v11293_v24 = vpop.f32.mrb[43].mxu0  ;;  %v3975_v31 = vld [vmem:[%s11940_s9 + $0x128] sm:$0xf] }
 0x4ae   :  { %v3332_v62 = vmax.f32 %v11275_v51, %v11293_v24 }
 0x4af   :  { %v7683_v33 = vpop.f32.mrb[42].mxu1 }
 0x4b0   :  { %v3696_v56 = vmax.f32 %v7661_v21, %v7683_v33  ;;  %v3672_v32 = vpop.f32.mrb[43].mxu1  ;;  %v11297_v37 = vpop.f32.mrb[44].mxu0  ;;  %v3963_v33 = vld [vmem:[%s11940_s9 + $0xc8] sm:$0xff] }
 0x4b1   :  { %v3693_v5 = vmax.f32 %v3498_v12, %v3672_v32  ;;  %v3334_v6 = vmax.f32 %v11277_v14, %v11297_v37  ;;  %v11307_v26 = vpop.f32.mrb[45].mxu0 }
 0x4b2   :  { %v11315_v55 = vmax.f32 %v3336_v59, %v3696_v56  ;;  %v3335_v52 = vmax.f32 %v11279_v48, %v11307_v26 }
 0x4b3   :  { %v11319_v1 = vmax.f32 %v3333_v53, %v3693_v5  ;;  %v7686_v47 = vpop.f32.mrb[44].mxu1  ;;  %v3961_v53 = vld [vmem:[%s11940_s9 + $0xb8] sm:$0xff]  ;;  %v3947_v5 = vld [vmem:[%s11940_s9 + $0x48] sm:$0xff] }
 0x4b4   :  { %v3702_v7 = vmax.f32 %v7664_v20, %v7686_v47  ;;  %v3682_v41 = vpop.f32.mrb[45].mxu1  ;;  %v11321_v36 = vpop.f32.mrb[46].mxu0  ;;  %v3965_v47 = vld [vmem:[%s11940_s9 + $0xd8] sm:$0xff] }
 0x4b5   :  { %v3699_v10 = vmax.f32 %v3508_v3, %v3682_v41  ;;  %v3337_v22 = vmax.f32 %v11281_v45, %v11321_v36  ;;  %7699 = vmatprep.mubr.msk.f32.mxu1 %vm1842_vm1, %v11319_v1  ;;  %v11333_v2 = vpop.f32.mrb[47].mxu0  ;;  %v3962_v3 = vld [vmem:[%s11940_s9 + $0xc0] sm:$0xff]  ;;  %v8572_v41 = vpack.c.bf16 %v3965_v47, %v3964_v13  ;;  %v3973_v13 = vld [vmem:[%s11940_s9 + $0x118] sm:$0xff] }
 0x4b6   :  { %v11341_v0 = vmax.f32 %v3342_v57, %v3702_v7  ;;  %v3338_v40 = vmax.f32 %v11283_v50, %v11333_v2  ;;  %7700 = vmatmul.mubr.msk.f32.vlgmr.msra.gmra.mrb[46].mxu1 %vm1842_vm1, %v11315_v55  ;;  %v8564_v57 = vpack.c.bf16 %v3961_v53, %v3960_v11  ;;  %v8568_v15 = vpack.c.bf16 %v3963_v33, %v3962_v3  ;;  %v3968_v53 = vld [vmem:[%s11940_s9 + $0xf0] sm:$0xff]  ;;  %v3953_v33 = vld [vmem:[%s11940_s9 + $0x78] sm:$0xff]  ;;  %v4188_v36 = vld [vmem:[%s11943_s12 + $0x20] sm:$0x7] }
 0x4b7   :  { %v11347_v35 = vmax.f32 %v3339_v46, %v3699_v10  ;;  %8555 = vmatpush3.bf16.msra.mxu1 %v8554_v18  ;;  %v3945_v46 = vld [vmem:[%s11940_s9 + $0x38] sm:$0xff]  ;;  %v8570_v18 = vpack.c.bf16 %v3947_v5, %v3946_v34  ;;  %v3966_v10 = vld [vmem:[%s11940_s9 + $0xe0] sm:$0xff]  ;;  %v3952_v3 = vld [vmem:[%s11940_s9 + $0x70] sm:$0xff] }
 0x4b8   :  { %v11349_v29 = vpop.f32.mrb[48].mxu0  ;;  %8557 = vmatprep.subr.bf16.mxu1 %v8556_v54  ;;  %v8566_v56 = vpack.c.bf16 %v3945_v46, %v3944_v38  ;;  %v3948_v54 = vld [vmem:[%s11940_s9 + $0x50] sm:$0xff] }
 0x4b9   :  { %v3340_v60 = vmax.f32 %v11285_v19, %v11349_v29  ;;  %7702 = vmatprep.mubr.msk.f32.mxu1 %vm1842_vm1, %v11347_v35  ;;  %v11361_v59 = vpop.f32.mrb[49].mxu0  ;;  %v8574_v43 = vpack.c.bf16 %v3949_v58, %v3948_v54  ;;  %v3972_v5 = vld [vmem:[%s11940_s9 + $0x110] sm:$0xff]  ;;  %v4185_v19 = vld [vmem:[%s11943_s12 + $0x8] sm:$0xff] }
 0x4ba   :  { %v3341_v21 = vmax.f32 %v11287_v16, %v11361_v59  ;;  %7703 = vmatmul.mubr.msk.f32.gmra.mrb[48].mxu1 %vm1842_vm1, %v11341_v0  ;;  %v8588_v58 = vpack.c.bf16 %v3973_v13, %v3972_v5  ;;  %v4186_v16 = vld [vmem:[%s11943_s12 + $0x10] sm:$0xff] }
 0x4bb   :  { %8559 = vmatpush3.bf16.msra.mxu1 %v8558_v4 }
 0x4bc   :  { %v3409_v12 = vpop.f32.mrb[50].mxu0  ;;  %8561 = vmatprep.subr.bf16.mxu1 %v8560_v42  ;;  %v8576_v42 = vpack.c.bf16 %v3967_v28, %v3966_v10  ;;  %v3974_v28 = vld [vmem:[%s11940_s9 + $0x120] sm:$0xff] }
 0x4bd   :  { %v3411_v20 = vpop.f32.mrb[51].mxu0 }
 0x4bf   :  { %8563 = vmatpush3.bf16.msra.mxu1 %v8562_v23  ;;  %v3969_v23 = vld [vmem:[%s11940_s9 + $0xf8] sm:$0xff] }
 0x4c0   :  { %v3415_v32 = vpop.f32.mrb[52].mxu0  ;;  %8565 = vmatprep.subr.bf16.mxu1 %v8564_v57  ;;  %v8578_v57 = vpack.c.bf16 %v3951_v39, %v3950_v17  ;;  %v8580_v46 = vpack.c.bf16 %v3969_v23, %v3968_v53 }
 0x4c1   :  { %v3417_v63 = vpop.f32.mrb[53].mxu0 }
 0x4c3   :  { %8567 = vmatpush3.bf16.msra.mxu1 %v8566_v56 }
 0x4c4   :  { %v3421_v7 = vpop.f32.mrb[54].mxu0  ;;  %8569 = vmatprep.subr.bf16.mxu1 %v8568_v15 }
 0x4c5   :  { %v3423_v27 = vpop.f32.mrb[55].mxu0 }
 0x4c7   :  { %8571 = vmatpush3.bf16.msra.mxu1 %v8570_v18  ;;  %v8582_v18 = vpack.c.bf16 %v3953_v33, %v3952_v3 }
 0x4c8   :  { %v3427_v4 = vpop.f32.mrb[56].mxu0  ;;  %8573 = vmatprep.subr.bf16.mxu1 %v8572_v41 }
 0x4c9   :  { %v3429_v11 = vpop.f32.mrb[57].mxu0 }
 0x4cb   :  { %8575 = vmatpush3.bf16.msra.mxu1 %v8574_v43 }
 0x4cc   :  { %v3583_v38 = vpop.f32.mrb[58].mxu0  ;;  %8577 = vmatprep.subr.bf16.mxu1 %v8576_v42 }
 0x4cd   :  { %v3691_v56 = vmax.f32 %v3409_v12, %v3583_v38  ;;  %v3585_v15 = vpop.f32.mrb[59].mxu0 }
 0x4ce   :  { %v3692_v34 = vmax.f32 %v3411_v20, %v3585_v15 }
 0x4cf   :  { %v3703_v47 = vmax.f32 %v3331_v9, %v3691_v56  ;;  %8579 = vmatpush3.bf16.msra.mxu1 %v8578_v57 }
 0x4d0   :  { %v3704_v12 = vmax.f32 %v3332_v62, %v3692_v34  ;;  %v3589_v41 = vpop.f32.mrb[60].mxu0  ;;  %8581 = vmatprep.subr.bf16.mxu1 %v8580_v46 }
 0x4d1   :  { %v3694_v20 = vmax.f32 %v3415_v32, %v3589_v41  ;;  %v3591_v54 = vpop.f32.mrb[61].mxu0  ;;  %v8592_v32 = vpack.c.bf16 %v3975_v31, %v3974_v28 }
 0x4d2   :  { %v3695_v10 = vmax.f32 %v3417_v63, %v3591_v54  ;;  %3832 = vmatprep.mubr.f32.mxu0 %v3704_v12  ;;  %4043 = vmatprep.mubr.f32.mxu1 %v3704_v12 }
 0x4d3   :  { %v3706_v51 = vmax.f32 %v3334_v6, %v3694_v20  ;;  %8583 = vmatpush3.bf16.msra.mxu1 %v8582_v18  ;;  %3833 = vmatmul.mubr.f32.vlgmr.msra.gmra.mrb[66].mxu0 %v3703_v47 }
 0x4d4   :  { %v3707_v49 = vmax.f32 %v3335_v52, %v3695_v10  ;;  %v3595_v9 = vpop.f32.mrb[62].mxu0  ;;  %8587 = vmatpush3.bf16.msra.mxu0 %v11270_v30  ;;  %8610 = vmatprep.subr.bf16.mxu1 %v12055_v25  ;;  %v4187_v52 = vld [vmem:[%s11943_s12 + $0x18] sm:$0xff] }
 0x4d5   :  { %v3697_v24 = vmax.f32 %v3421_v7, %v3595_v9  ;;  %v3597_v62 = vpop.f32.mrb[63].mxu0  ;;  %8589 = vmatprep.subr.bf16.mxu0 %v8588_v58 }
 0x4d6   :  { %4044 = vmatmul.mubr.f32.vlgmr.msra.gmra.mrb[50].mxu1 %v3703_v47  ;;  %v3698_v63 = vmax.f32 %v3423_v27, %v3597_v62  ;;  %3837 = vmatprep.mubr.f32.mxu0 %v3707_v49 }
 0x4d7   :  { %v3709_v14 = vmax.f32 %v3337_v22, %v3697_v24  ;;  %4048 = vmatprep.mubr.f32.mxu1 %v3707_v49  ;;  %3838 = vmatmul.mubr.f32.gmra.mrb[68].mxu0 %v3706_v51 }
 0x4d8   :  { %v3710_v48 = vmax.f32 %v3338_v40, %v3698_v63  ;;  %v3601_v30 = vpop.f32.mrb[64].mxu0  ;;  %8591 = vmatpush3.bf16.msra.mxu0 %v8588_v58 }
 0x4d9   :  { %v3700_v37 = vmax.f32 %v3427_v4, %v3601_v30  ;;  %v3603_v6 = vpop.f32.mrb[65].mxu0  ;;  %8594 = vmatprep.subr.msk.bf16.mxu0 %vm10221_vm4, %v8592_v32 }
 0x4da   :  { %4049 = vmatmul.mubr.f32.gmra.mrb[52].mxu1 %v3706_v51  ;;  %v3701_v26 = vmax.f32 %v3429_v11, %v3603_v6  ;;  %3842 = vmatprep.mubr.f32.mxu0 %v3710_v48 }
 0x4db   :  { %v3712_v45 = vmax.f32 %v3340_v60, %v3700_v37  ;;  %4053 = vmatprep.mubr.f32.mxu1 %v3710_v48  ;;  %3843 = vmatmul.mubr.f32.gmra.mrb[70].mxu0 %v3709_v14 }
 0x4dc   :  { %v3713_v50 = vmax.f32 %v3341_v21, %v3701_v26  ;;  %8597 = vmatpush3.bf16.msk.msra.mxu0 %vm10221_vm4, %v8592_v32 }
 0x4dd   :  { %8598 = vmatprep.subr.bf16.mxu0 %v12055_v25 }
 0x4de   :  { %4054 = vmatmul.mubr.f32.gmra.mrb[54].mxu1 %v3709_v14  ;;  %3847 = vmatprep.mubr.f32.mxu0 %v3713_v50 }
 0x4df   :  { %4058 = vmatprep.mubr.f32.mxu1 %v3713_v50  ;;  %3848 = vmatmul.mubr.f32.gmra.mrb[72].mxu0 %v3712_v45 }
 0x4e0   :  { %7717 = vmatprep.mubr.msk.f32.mxu0 %vm1842_vm1, %v11319_v1  ;;  %v8602_v1 = vpack.c.bf16 %v4187_v52, %v4186_v16 }
 0x4e2   :  { %4059 = vmatmul.mubr.f32.gmra.mrb[56].mxu1 %v3712_v45 }
 0x4e3   :  { %7718 = vmatmul.mubr.msk.f32.vlgmr.msra.gmra.mrb[74].mxu0 %vm1842_vm1, %v11315_v55  ;;  %7759 = vmatprep.mubr.msk.f32.mxu1 %vm8895_vm5, %v12056_v44  ;;  %v8599_v55 = vpack.c.bf16 %v4185_v19, %v4184_v61 }
 0x4e4   :  { %7720 = vmatprep.mubr.msk.f32.mxu0 %vm1842_vm1, %v11347_v35 }
 0x4e5   :  { %8612 = vmatpush3.bf16.msra.mxu1 %v8599_v55  ;;  %8600 = vmatpush3.bf16.msra.mxu0 %v8599_v55 }
 0x4e6   :  { %8613 = vmatprep.subr.bf16.mxu1 %v12055_v25  ;;  %8601 = vmatprep.subr.bf16.mxu0 %v12055_v25 }
 0x4e7   :  { %7721 = vmatmul.mubr.msk.f32.gmra.mrb[76].mxu0 %vm1842_vm1, %v11341_v0  ;;  %vm11638_vm1 = vmpackc.low %vm4882_vm0, %vm8894_vm3  ;;  %vm6402_vm3 = vcmask 74752  }
 0x4e8   :  { %7733 = vmatprep.mubr.msk.f32.mxu0 %vm8895_vm5, %v12056_v44 }
 0x4e9   :  { %8615 = vmatpush3.bf16.msra.mxu1 %v8602_v1  ;;  %8603 = vmatpush3.bf16.msra.mxu0 %v8602_v1 }
 0x4ea   :  { %7731 = vmatprep.subr.mxu0 %v12056_v44  ;;  %7757 = vmatprep.subr.mxu1 %v12056_v44 }
 0x4ed   :  { %7732 = vmatpush3.msk.msra.mxu0 %vm4192_vm8, %v4188_v36  ;;  %7758 = vmatpush3.msk.msra.mxu1 %vm4192_vm8, %v4188_v36 }
 0x4ee   :  { %8604 = vmatprep.subr.bf16.mxu0 %v12055_v25  ;;  %8616 = vmatprep.subr.bf16.mxu1 %v12055_v25 }
 0x589   :  { %v7701_v22 = vpop.f32.mrb[46].mxu1 }
 0x58a   :  { %v3919_v2 = vpop.f32.mrb[47].mxu1 }
 0x58d   :  { %v7704_v0 = vpop.f32.mrb[48].mxu1 }
 0x58e   :  { %v3929_v40 = vpop.f32.mrb[49].mxu1 }
 0x5a6   :  { %v7134_v35 = vpop.f32.mrb[66].mxu0 }
 0x5a7   :  { %v7135_v29 = vpop.f32.mrb[67].mxu0 }
 0x5a8   :  { %v7136_v60 = vadd.f32 %v7135_v29, %v7134_v35 }
 0x5a9   :  { %v7188_v59 = vpop.f32.mrb[50].mxu1 }
 0x5aa   :  { %v11505_v21 = vadd.f32 %v7136_v60, %v3919_v2  ;;  %v7189_v7 = vpop.f32.mrb[51].mxu1  ;;  %v7137_v27 = vpop.f32.mrb[68].mxu0 }
 0x5ab   :  { %v7190_v43 = vadd.f32 %v7189_v7, %v7188_v59  ;;  %v7138_v4 = vpop.f32.mrb[69].mxu0 }
 0x5ac   :  { %v7139_v42 = vadd.f32 %v7138_v4, %v7137_v27  ;;  %v4339_v20 = vmul.f32 %v11505_v21, %v11505_v21  ;;  %v4150_v49 = vsel %vm4149_vm9, %v11505_v21, 0.0 }
 0x5ad   :  { %v7191_v17 = vpop.f32.mrb[52].mxu1 }
 0x5ae   :  { %v11507_v39 = vadd.f32 %v7701_v22, %v7139_v42  ;;  %v7192_v11 = vpop.f32.mrb[53].mxu1  ;;  %v7140_v53 = vpop.f32.mrb[70].mxu0  ;;  %v4343_v37 = vsel %vm4149_vm9, %v4339_v20, 0.0 }
 0x5af   :  { %v7193_v23 = vadd.f32 %v7192_v11, %v7191_v17  ;;  %v7141_v57 = vpop.f32.mrb[71].mxu0 }
 0x5b0   :  { %v7142_v38 = vadd.f32 %v7141_v57, %v7140_v53  ;;  %v4340_v13 = vmul.f32 %v11507_v39, %v11507_v39  ;;  %v4151_v31 = vsel %vm4149_vm9, %v11507_v39, 0.0 }
 0x5b1   :  { %v7194_v46 = vpop.f32.mrb[54].mxu1  ;;  %v4152_v6 = vadd.f32 %v4151_v31, %v4150_v49 }
 0x5b2   :  { %v11509_v3 = vadd.f32 %v7142_v38, %v3929_v40  ;;  %v7195_v33 = vpop.f32.mrb[55].mxu1  ;;  %v7143_v56 = vpop.f32.mrb[72].mxu0  ;;  %v4344_v9 = vsel %vm4149_vm9, %v4340_v13, 0.0 }
 0x5b3   :  { %v7196_v15 = vadd.f32 %v7195_v33, %v7194_v46  ;;  %v7144_v34 = vpop.f32.mrb[73].mxu0  ;;  %v4345_v52 = vadd.f32 %v4344_v9, %v4343_v37  ;;  %v4166_v9 = vld [vmem:[%s11941_s10 + $0x10] sm:$0xff] }
 0x5b4   :  { %v7145_v5 = vadd.f32 %v7144_v34, %v7143_v56  ;;  %v4341_v54 = vmul.f32 %v11509_v3, %v11509_v3  ;;  %v4153_v24 = vsel %vm4149_vm9, %v11509_v3, 0.0 }
 0x5b5   :  { %v7197_v47 = vpop.f32.mrb[56].mxu1  ;;  %v4154_v1 = vadd.f32 %v4153_v24, %v4152_v6  ;;  %v4167_v24 = vld [vmem:[%s11941_s10 + $0x18] sm:$0xff] }
 0x5b6   :  { %v11513_v18 = vadd.f32 %v7704_v0, %v7145_v5  ;;  %v7198_v12 = vpop.f32.mrb[57].mxu1  ;;  %v7719_v41 = vpop.f32.mrb[74].mxu0  ;;  %v4346_v26 = vsel %vm4149_vm9, %v4341_v54, 0.0 }
 0x5b7   :  { %v7199_v58 = vadd.f32 %v7198_v12, %v7197_v47  ;;  %v11519_v10 = vadd.f32 %v7719_v41, %v7193_v23  ;;  %v4130_v28 = vpop.f32.mrb[75].mxu0  ;;  %v4347_v35 = vadd.f32 %v4346_v26, %v4345_v52  ;;  %v4164_v47 = vld [vmem:[%s11941_s10] sm:$0xff]  ;;  %v4165_v12 = vld [vmem:[%s11941_s10 + $0x8] sm:$0xff] }
 0x5b8   :  { %v11523_v51 = vadd.f32 %v7190_v43, %v4130_v28  ;;  %v4342_v32 = vmul.f32 %v11513_v18, %v11513_v18  ;;  %v4156_v45 = vsel %vm4155_vm11, %v11513_v18, 0.0 }
 0x5b9   :  { %v4357_v62 = vmul.f32 %v11519_v10, %v11519_v10  ;;  %v4171_v63 = vsel %vm4169_vm10, %v11519_v10, 0.0  ;;  %v4157_v29 = vadd.f32 %v4156_v45, %v4154_v1  ;;  %v4533_v45 = vld [vmem:[%s11942_s11] sm:$0x1f] }
 0x5ba   :  { %v4170_v14 = vsel %vm4169_vm10, %v11523_v51, 0.0  ;;  %v4356_v48 = vmul.f32 %v11523_v51, %v11523_v51  ;;  %v7722_v30 = vpop.f32.mrb[76].mxu0  ;;  %v4348_v22 = vsel %vm4155_vm11, %v4342_v32, 0.0 }
 0x5bb   :  { %v4140_v50 = vpop.f32.mrb[77].mxu0  ;;  %v4361_v61 = vsel %vm4169_vm10, %v4357_v62, 0.0  ;;  %v11546_v16 = vadd.f32 %v7722_v30, %v7199_v58  ;;  %v4172_v36 = vadd.f32 %v4171_v63, %v4170_v14  ;;  %v4349_v43 = vadd.f32 %v4348_v22, %v4347_v35  ;;  %v4168_v30 = vld [vmem:[%s11941_s10 + $0x20] sm:$0xff] }
 0x5bc   :  { %v4360_v19 = vsel %vm4169_vm10, %v4356_v48, 0.0  ;;  %v11548_v55 = vadd.f32 %v7196_v15, %v4140_v50  ;;  %v4158_v11 = vrot.slane %v4157_v29, 4  ;;  %v8605_v58 = vpack.c.bf16 %v4165_v12, %v4164_v47  ;;  %v4524_v35 = vld [vmem:[%s11945_s14] sm:$0x3] }
 0x5bd   :  { %v4359_v2 = vmul.f32 %v11546_v16, %v11546_v16  ;;  %v4362_v60 = vadd.f32 %v4361_v61, %v4360_v19  ;;  %v4176_v7 = vsel %vm4175_vm12, %v11546_v16, 0.0  ;;  %v4350_v57 = vrot.slane %v4349_v43, 4 }
 0x5be   :  { %v4173_v0 = vsel %vm4169_vm10, %v11548_v55, 0.0  ;;  %v4358_v40 = vmul.f32 %v11548_v55, %v11548_v55  ;;  %v4159_v33 = vadd.f32 %v4158_v11, %v4157_v29  ;;  %v8608_v63 = vpack.c.bf16 %v4167_v24, %v4166_v9 }
 0x5bf   :  { %v4174_v59 = vadd.f32 %v4173_v0, %v4172_v36  ;;  %v4365_v17 = vsel %vm4175_vm12, %v4359_v2, 0.0  ;;  %v4351_v34 = vadd.f32 %v4350_v57, %v4349_v43 }
 0x5c0   :  { %v4363_v27 = vsel %vm4169_vm10, %v4358_v40, 0.0  ;;  %v4160_v41 = vrot.slane %v4159_v33, 2 }
 0x5c1   :  { %v4177_v4 = vadd.f32 %v4176_v7, %v4174_v59  ;;  %v4364_v42 = vadd.f32 %v4363_v27, %v4362_v60  ;;  %v4352_v28 = vrot.slane %v4351_v34, 2  ;;  %v4706_v59 = vld [vmem:[%s11944_s13] sm:$0x1f] }
 0x5c2   :  { %v4161_v62 = vadd.f32 %v4160_v41, %v4159_v33 }
 0x5c3   :  { %v4178_v53 = vrot.slane %v4177_v4, 4  ;;  %v4366_v23 = vadd.f32 %v4365_v17, %v4364_v42  ;;  %v4353_v14 = vadd.f32 %v4352_v28, %v4351_v34  ;;  %v11614_v42 = vld [vmem:[%s11946_s15] sm:$0xff]  ;;  %v11619_v17 = vld [vmem:[%s11946_s15 + $0x10] sm:$0xff] }
 0x5c4   :  { %v4162_v48 = vrot.slane %v4161_v62, 1 }
 0x5c5   :  { %v4179_v38 = vadd.f32 %v4178_v53, %v4177_v4  ;;  %v4367_v46 = vrot.slane %v4366_v23, 4  ;;  %v4354_v37 = vrot.slane %v4353_v14, 1 }
 0x5c6   :  { %v4163_v6 = vadd.f32 %v4162_v48, %v4161_v62 }
 0x5c7   :  { %v4180_v56 = vrot.slane %v4179_v38, 2  ;;  %v4368_v15 = vadd.f32 %v4367_v46, %v4366_v23  ;;  %v4355_v26 = vadd.f32 %v4354_v37, %v4353_v14 }
 0x5c9   :  { %v4181_v5 = vadd.f32 %v4180_v56, %v4179_v38  ;;  %v4369_v13 = vrot.slane %v4368_v15, 2 }
 0x5cb   :  { %v4182_v20 = vrot.slane %v4181_v5, 1  ;;  %v4370_v54 = vadd.f32 %v4369_v13, %v4368_v15 }
 0x5cd   :  { %v4183_v31 = vadd.f32 %v4182_v20, %v4181_v5  ;;  %v4371_v49 = vrot.slane %v4370_v54, 1 }
 0x5cf   :  { %v4372_v32 = vadd.f32 %v4371_v49, %v4370_v54  ;;  %7734 = vmatmul.mubr.msk.f32.vlgmr.msra.gmra.mrb[78].mxu0 %vm4169_vm10, %v4183_v31 }
 0x5d0   :  { %8606 = vmatpush3.bf16.msra.mxu0 %v8605_v58  ;;  %7746 = vmatprep.mubr.msk.f32.mxu0 %vm8895_vm5, %v12056_v44 }
 0x5d1   :  { %7760 = vmatmul.mubr.msk.f32.vlgmr.msra.gmra.mrb[58].mxu1 %vm4169_vm10, %v4372_v32  ;;  %8607 = vmatprep.subr.bf16.mxu0 %v12055_v25 }
 0x5d2   :  { %8618 = vmatpush3.bf16.msra.mxu1 %v8605_v58  ;;  %7772 = vmatprep.mubr.msk.f32.mxu1 %vm8895_vm5, %v12056_v44 }
 0x5d3   :  { %8619 = vmatprep.subr.bf16.mxu1 %v12055_v25 }
 0x5d4   :  { %8609 = vmatpush3.bf16.msra.mxu0 %v8608_v63 }
 0x5d5   :  { %7744 = vmatprep.subr.mxu0 %v12056_v44 }
 0x5d6   :  { %8621 = vmatpush3.bf16.msra.mxu1 %v8608_v63 }
 0x5d7   :  { %7770 = vmatprep.subr.mxu1 %v12056_v44 }
 0x5d8   :  { %7745 = vmatpush3.msra.mxu0 %v4168_v30 }
 0x5d9   :  { %7747 = vmatmul.mubr.msk.f32.vlgmr.msra.gmra.mrb[78].mxu0 %vm4149_vm9, %v4163_v6  ;;  %7775 = vmatprep.subr.mxu0 %v12056_v44 }
 0x5da   :  { %7771 = vmatpush3.msra.mxu1 %v4168_v30  ;;  %7777 = vmatprep.mubr.msk.f32.mxu0 %vm8895_vm5, %v12056_v44 }
 0x5db   :  { %7773 = vmatmul.mubr.msk.f32.vlgmr.msra.gmra.mrb[58].mxu1 %vm4149_vm9, %v4355_v26  ;;  %7780 = vmatprep.subr.mxu1 %v12056_v44 }
 0x5dc   :  { %7782 = vmatprep.mubr.msk.f32.mxu1 %vm8895_vm5, %v12056_v44  ;;  %7776 = vmatpush3.msk.msra.mxu0 %vm4538_vm13, %v4533_v45 }
 0x5dd   :  { %7781 = vmatpush3.msk.msra.mxu1 %vm4538_vm13, %v4533_v45  ;;  %7785 = vmatprep.subr.mxu0 %v12056_v44  ;;  %v4871_v45 = vld [vmem:[%s11946_s15 + $0x8] sm:$0x3f] }
 0x5de   :  { %7790 = vmatprep.subr.mxu1 %v12056_v44 }
 0x6ac   :  { %v4335_v50 = vpop.f32.mrb[78].mxu0 }
 0x6ad   :  { %v4519_v61 = vmul.f32 0.0022222223, %v4335_v50  ;;  %v7748_v19 = vpop.f32.mrb[79].mxu0  ;;  %v6762_v50 = vld [vmem:[%s11946_s15 + $0x18] sm:$0x3f] }
 0x6ae   :  { %v4515_v52 = vpop.f32.mrb[58].mxu1  ;;  %v5281_v19 = vld [vmem:[%s11948_s17 + $0x8] sm:$0xff] }
 0x6af   :  { %v4521_v1 = vmul.f32 %v4519_v61, %v4519_v61  ;;  %v4520_v36 = vmul.f32 0.0022222223, %v4515_v52  ;;  %v7774_v22 = vpop.f32.mrb[59].mxu1  ;;  %v5282_v52 = vld [vmem:[%s11948_s17 + $0x10] sm:$0xff] }
 0x6b1   :  { %v4522_v2 = vsub.f32 %v4520_v36, %v4521_v1  ;;  %v5283_v36 = vld [vmem:[%s11948_s17 + $0x18] sm:$0xff] }
 0x6b2   :  { %v8670_v22 = vpack.c.bf16 %v5283_v36, %v5282_v52  ;;  %v6814_v36 = vld [vmem:[%s11948_s17 + $0xa8] sm:$0xff] }
 0x6b3   :  { %v4523_v0 = vmax.f32 %v4522_v2, 0.0  ;;  %v5284_v2 = vld [vmem:[%s11948_s17 + $0x20] sm:$0x7] }
 0x6b5   :  { %v4525_v40 = vadd.f32 1e-05, %v4523_v0 }
 0x6b7   :  { %8861 = vrsqrt.f32 %v4525_v40 }
 0x6c1   :  { %v8862_v29 = vpop.eup %8861 }
 0x6c2   :  { %v4527_v60 = vmul.f32 %v8862_v29, %v4524_v35 }
 0x6c4   :  { %7778 = vmatmul.mubr.msk.f32.vlgmr.msra.gmra.mrb[80].mxu0 %vm4534_vm14, %v4527_v60  ;;  %v4528_v7 = vmul.f32 %v4527_v60, %v4519_v61  ;;  %v5280_v61 = vld [vmem:[%s11948_s17] sm:$0xff] }
 0x6c5   :  { %7786 = vmatpush3.msk.msra.mxu0 %vm4538_vm13, %v4706_v59  ;;  %7787 = vmatprep.mubr.msk.f32.mxu0 %vm8895_vm5, %v12056_v44  ;;  %v8667_v1 = vpack.c.bf16 %v5281_v19, %v5280_v61 }
 0x6c6   :  { %v4530_v27 = vrot.slane %v4528_v7, 7 }
 0x6c8   :  { %7788 = vmatmul.mubr.msk.f32.vlgmr.msra.gmra.mrb[82].mxu0 %vm4534_vm14, %v4527_v60  ;;  %v4532_v43 = vsub.f32 %v4524_v35, %v4530_v27 }
 0x6c9   :  { %7803 = vmatprep.mubr.msk.f32.mxu0 %vm4875_vm15, %v11614_v42 }
 0x6ca   :  { %v4621_v4 = vrot.slane %v4532_v43, 1 }
 0x6cc   :  { %7783 = vmatmul.mubr.msk.f32.vlgmr.msra.gmra.mrb[60].mxu1 %vm4534_vm14, %v4621_v4 }
 0x6cd   :  { %7791 = vmatpush3.msk.msra.mxu1 %vm4538_vm13, %v4706_v59  ;;  %7792 = vmatprep.mubr.msk.f32.mxu1 %vm8895_vm5, %v12056_v44 }
 0x6d0   :  { %7793 = vmatmul.mubr.msk.f32.vlgmr.msra.gmra.mrb[62].mxu1 %vm4534_vm14, %v4621_v4 }
 0x6d1   :  { %7814 = vmatprep.mubr.msk.f32.mxu1 %vm4875_vm15, %v11619_v17 }
 0x797   :  { %v4608_v11 = vpop.f32.mrb[80].mxu0 }
 0x798   :  { %v7779_v53 = vpop.f32.mrb[81].mxu0  ;;  %v4615_v23 = vrot.slane %v4608_v11, %v10725_v8 }
 0x79a   :  { %v4616_v46 = vmul.f32 %v4615_v23, %v11505_v21  ;;  %v4617_v15 = vmul.f32 %v4615_v23, %v11507_v39  ;;  %v4618_v34 = vmul.f32 %v4615_v23, %v11509_v3  ;;  %v4619_v5 = vmul.f32 %v4615_v23, %v11513_v18 }
 0x79b   :  { %v4776_v57 = vpop.f32.mrb[82].mxu0 }
 0x79c   :  { %v7789_v38 = vpop.f32.mrb[83].mxu0  ;;  %v4783_v33 = vrot.slane %v4776_v57, %v10725_v8  ;;  %v5202_v57 = vld [vmem:[%s11947_s16] sm:$0x3] }
 0x79d   :  { %v6780_v38 = vld [vmem:[%s11947_s16 + $0x2] sm:$0x3] }
 0x79e   :  { %v4784_v58 = vmul.f32 %v4783_v33, %v11523_v51  ;;  %v4785_v3 = vmul.f32 %v4783_v33, %v11519_v10  ;;  %v4786_v18 = vmul.f32 %v4783_v33, %v11548_v55  ;;  %v4787_v24 = vmul.f32 %v4783_v33, %v11546_v16  ;;  %v6800_v33 = vld [vmem:[%s11947_s16 + $0x6] sm:$0x3] }
 0x79f   :  { %v4690_v56 = vpop.f32.mrb[60].mxu1 }
 0x7a0   :  { %v4697_v13 = vrot.slane %v4690_v56, %v10725_v8  ;;  %v7784_v47 = vpop.f32.mrb[61].mxu1  ;;  %v6810_v56 = vld [vmem:[%s11947_s16 + $0x8] sm:$0x3] }
 0x7a2   :  { %v4698_v12 = vadd.f32 %v4697_v13, %v4616_v46  ;;  %v4699_v41 = vadd.f32 %v4697_v13, %v4617_v15  ;;  %v4700_v20 = vadd.f32 %v4697_v13, %v4618_v34  ;;  %v4701_v54 = vadd.f32 %v4697_v13, %v4619_v5  ;;  %v6790_v46 = vld [vmem:[%s11947_s16 + $0x4] sm:$0x3]  ;;  %v6820_v15 = vld [vmem:[%s11947_s16 + $0xa] sm:$0x3]  ;;  %v6830_v34 = vld [vmem:[%s11947_s16 + $0xc] sm:$0x3] }
 0x7a3   :  { %v4854_v21 = vpop.f32.mrb[62].mxu1  ;;  %v6317_v5 = vld [vmem:[%s11950_s19] sm:$0xff]  ;;  %v6318_v13 = vld [vmem:[%s11950_s19 + $0x8] sm:$0xff] }
 0x7a4   :  { %v4702_v28 = vmax.f32 %v4698_v12, 0.0  ;;  %v4703_v31 = vmax.f32 %v4699_v41, 0.0  ;;  %v4704_v49 = vmax.f32 %v4700_v20, 0.0  ;;  %v4705_v9 = vmax.f32 %v4701_v54, 0.0  ;;  %v7794_v39 = vpop.f32.mrb[63].mxu1  ;;  %v6783_v12 = vld [vmem:[%s11948_s17 + $0x28] sm:$0xff] }
 0x7a5   :  { %v4861_v62 = vrot.slane %v4854_v21, %v10725_v8  ;;  %v8733_v47 = vpack.c.bf16 %v6318_v13, %v6317_v5  ;;  %v6784_v41 = vld [vmem:[%s11948_s17 + $0x30] sm:$0xff]  ;;  %v6785_v54 = vld [vmem:[%s11948_s17 + $0x38] sm:$0xff]  ;;  %v6779_v5 = vld [vmem:[%s11949_s18] ss:$0 sm:$0xff]  ;;  %s8896_s18 = smov [#allocation2]  }
 0x7a6   :  { %v8622_v32 = vpack.c.bf16 %v4703_v31, %v4702_v28  ;;  %v8626_v63 = vpack.c.bf16 %v4705_v9, %v4704_v49  ;;  %v8677_v20 = vpack.c.bf16 %v6784_v41, %v6783_v12  ;;  %v6793_v39 = vld [vmem:[%s11948_s17 + $0x50] sm:$0xff] }
 0x7a7   :  { %v4862_v51 = vadd.f32 %v4861_v62, %v4784_v58  ;;  %v4863_v48 = vadd.f32 %v4861_v62, %v4785_v3  ;;  %v4864_v30 = vadd.f32 %v4861_v62, %v4786_v18  ;;  %v4865_v37 = vadd.f32 %v4861_v62, %v4787_v24  ;;  %v6786_v58 = vld [vmem:[%s11948_s17 + $0x40] sm:$0xff]  ;;  %v6794_v3 = vld [vmem:[%s11948_s17 + $0x58] sm:$0xff]  ;;  %v6787_v18 = vld [vmem:[%s11948_s17 + $0x48] sm:$0x7] }
 0x7a8   :  { %8623 = vmatprep.subr.bf16.mxu0 %v8622_v32  ;;  %8633 = vmatprep.subr.bf16.mxu1 %v8622_v32  ;;  %v8680_v31 = vpack.c.bf16 %v6786_v58, %v6785_v54  ;;  %v8687_v24 = vpack.c.bf16 %v6794_v3, %v6793_v39 }
 0x7a9   :  { %v4866_v10 = vmax.f32 %v4862_v51, 0.0  ;;  %v4867_v6 = vmax.f32 %v4863_v48, 0.0  ;;  %v4868_v55 = vmax.f32 %v4864_v30, 0.0  ;;  %v4869_v26 = vmax.f32 %v4865_v37, 0.0  ;;  %8625 = vmatpush3.bf16.msra.mxu0 %v8622_v32  ;;  %8635 = vmatpush3.bf16.msra.mxu1 %v8622_v32  ;;  %v6795_v32 = vld [vmem:[%s11948_s17 + $0x60] sm:$0xff]  ;;  %v6803_v37 = vld [vmem:[%s11948_s17 + $0x78] sm:$0xff] }
 0x7aa   :  { %8628 = vmatprep.subr.msk.bf16.mxu0 %vm11638_vm1, %v8626_v63  ;;  %8638 = vmatprep.subr.msk.bf16.mxu1 %vm11638_vm1, %v8626_v63 }
 0x7ab   :  { %v8642_v8 = vpack.c.bf16 %v4867_v6, %v4866_v10  ;;  %v8646_v16 = vpack.c.bf16 %v4869_v26, %v4868_v55  ;;  %v6804_v10 = vld [vmem:[%s11948_s17 + $0x80] sm:$0xff]  ;;  %v6797_v55 = vld [vmem:[%s11948_s17 + $0x70] sm:$0x7] }
 0x7ad   :  { %8631 = vmatpush3.bf16.msk.msra.mxu0 %vm11638_vm1, %v8626_v63  ;;  %8641 = vmatpush3.bf16.msk.msra.mxu1 %vm11638_vm1, %v8626_v63  ;;  %v6796_v63 = vld [vmem:[%s11948_s17 + $0x68] sm:$0xff] }
 0x7ae   :  { %8643 = vmatprep.subr.bf16.mxu0 %v8642_v8  ;;  %8653 = vmatprep.subr.bf16.mxu1 %v8642_v8  ;;  %v8690_v51 = vpack.c.bf16 %v6796_v63, %v6795_v32 }
 0x7b0   :  { %7804 = vmatmul.mubr.msk.f32.vlgmr.msra.gmra.mrb[84].mxu0 %vm4875_vm15, %v4871_v45  ;;  %7815 = vmatmul.mubr.msk.f32.vlgmr.msra.gmra.mrb[64].mxu1 %vm4875_vm15, %v6762_v50 }
 0x7b1   :  { %8645 = vmatpush3.bf16.msra.mxu0 %v8642_v8  ;;  %8655 = vmatpush3.bf16.msra.mxu1 %v8642_v8  ;;  %v8697_v8 = vpack.c.bf16 %v6804_v10, %v6803_v37 }
 0x7b2   :  { %8648 = vmatprep.subr.msk.bf16.mxu0 %vm11638_vm1, %v8646_v16  ;;  %8658 = vmatprep.subr.msk.bf16.mxu1 %vm11638_vm1, %v8646_v16 }
 0x7b3   :  { %7825 = vmatprep.mubr.msk.f32.mxu0 %vm4875_vm15, %v11614_v42  ;;  %7836 = vmatprep.mubr.msk.f32.mxu1 %vm4875_vm15, %v11619_v17 }
 0x7b5   :  { %8651 = vmatpush3.bf16.msk.msra.mxu0 %vm11638_vm1, %v8646_v16  ;;  %8661 = vmatpush3.bf16.msk.msra.mxu1 %vm11638_vm1, %v8646_v16  ;;  %v6805_v16 = vld [vmem:[%s11948_s17 + $0x88] sm:$0xff] }
 0x7b6   :  { %8662 = vmatprep.subr.bf16.mxu0 %v12055_v25  ;;  %8666 = vmatprep.subr.bf16.mxu1 %v12055_v25 }
 0x7b8   :  { %7826 = vmatmul.mubr.msk.f32.vlgmr.msra.gmra.mrb[86].mxu0 %vm4875_vm15, %v4871_v45  ;;  %7837 = vmatmul.mubr.msk.f32.vlgmr.msra.gmra.mrb[66].mxu1 %vm4875_vm15, %v6762_v50  ;;  %v6806_v45 = vld [vmem:[%s11948_s17 + $0x90] sm:$0xff] }
 0x7b9   :  { %7843 = vmatprep.mubr.msk.f32.mxu0 %vm8895_vm5, %v12056_v44  ;;  %7856 = vmatprep.mubr.msk.f32.mxu1 %vm8895_vm5, %v12056_v44  ;;  %v8700_v19 = vpack.c.bf16 %v6806_v45, %v6805_v16 }
 0x7ba   :  { %8668 = vmatpush3.bf16.msra.mxu1 %v8667_v1  ;;  %v6813_v1 = vld [vmem:[%s11948_s17 + $0xa0] sm:$0xff] }
 0x7bb   :  { %8669 = vmatprep.subr.bf16.mxu1 %v12055_v25 }
 0x7be   :  { %8671 = vmatpush3.bf16.msra.mxu1 %v8670_v22 }
 0x7bf   :  { %7854 = vmatprep.subr.mxu1 %v12056_v44 }
 0x7c2   :  { %7855 = vmatpush3.msk.msra.mxu1 %vm4192_vm8, %v5284_v2  ;;  %v6807_v2 = vld [vmem:[%s11948_s17 + $0x98] sm:$0x7] }
 0x7c3   :  { %8676 = vmatprep.subr.bf16.mxu1 %v12055_v25 }
 0x883   :  { %v7805_v0 = vpop.f32.mrb[84].mxu0  ;;  %v7816_v40 = vpop.f32.mrb[64].mxu1 }
 0x884   :  { %v5043_v35 = vmax.f32 %v7805_v0, %v7816_v40  ;;  %v4952_v29 = vpop.f32.mrb[85].mxu0  ;;  %v5033_v60 = vpop.f32.mrb[65].mxu1  ;;  %v8707_v0 = vpack.c.bf16 %v6814_v36, %v6813_v1  ;;  %v6815_v40 = vld [vmem:[%s11948_s17 + $0xb0] sm:$0xff] }
 0x885   :  { %v5042_v59 = vmax.f32 %v4952_v29, %v5033_v60  ;;  %v6823_v60 = vld [vmem:[%s11948_s17 + $0xc8] sm:$0xff] }
 0x88b   :  { %v7827_v7 = vpop.f32.mrb[86].mxu0  ;;  %v7838_v27 = vpop.f32.mrb[66].mxu1 }
 0x88c   :  { %v5198_v43 = vmax.f32 %v7827_v7, %v7838_v27  ;;  %v5113_v4 = vpop.f32.mrb[87].mxu0  ;;  %v5188_v42 = vpop.f32.mrb[67].mxu1  ;;  %v6817_v7 = vld [vmem:[%s11948_s17 + $0xc0] sm:$0x7] }
 0x88d   :  { %v5197_v17 = vmax.f32 %v5113_v4, %v5188_v42  ;;  %v6826_v4 = vld [vmem:[%s11948_s17 + $0xe0] sm:$0xff] }
 0x88e   :  { %v5200_v11 = vmax.f32 %v5043_v35, %v5198_v43  ;;  %v6816_v35 = vld [vmem:[%s11948_s17 + $0xb8] sm:$0xff] }
 0x88f   :  { %v5199_v53 = vmax.f32 %v5042_v59, %v5197_v17  ;;  %v8710_v29 = vpack.c.bf16 %v6816_v35, %v6815_v40  ;;  %v6824_v59 = vld [vmem:[%s11948_s17 + $0xd0] sm:$0xff]  ;;  %v6825_v43 = vld [vmem:[%s11948_s17 + $0xd8] sm:$0xff] }
 0x890   :  { %v8717_v27 = vpack.c.bf16 %v6824_v59, %v6823_v60  ;;  %v8720_v42 = vpack.c.bf16 %v6826_v4, %v6825_v43  ;;  %v6833_v17 = vld [vmem:[%s11948_s17 + $0xf0] sm:$0xff] }
 0x891   :  { %v8663_v23 = vpack.c.bf16 %v5200_v11, %v5199_v53  ;;  %v6834_v11 = vld [vmem:[%s11948_s17 + $0xf8] sm:$0xff]  ;;  %v6827_v53 = vld [vmem:[%s11948_s17 + $0xe8] sm:$0x7] }
 0x893   :  { %8665 = vmatpush3.bf16.msk.msra.mxu0 %vm11638_vm1, %v8663_v23 }
 0x894   :  { %8672 = vmatprep.subr.bf16.mxu0 %v12055_v25 }
 0x896   :  { %7844 = vmatmul.mubr.msk.f32.vlgmr.msra.gmra.mrb[88].mxu0 %vm5203_vm2, %v5202_v57  ;;  %v6835_v57 = vld [vmem:[%s11948_s17 + $0x100] sm:$0xff] }
 0x897   :  { %8675 = vmatpush3.bf16.msk.msra.mxu0 %vm11638_vm1, %v8663_v23  ;;  %7863 = vmatprep.mubr.msk.f32.mxu0 %vm8895_vm5, %v12056_v44 }
 0x898   :  { %8682 = vmatprep.subr.bf16.mxu0 %v12055_v25 }
 0x89a   :  { %7864 = vmatmul.mubr.msk.f32.vlgmr.msra.gmra.mrb[90].mxu0 %vm5203_vm2, %v6780_v38  ;;  %v6836_v38 = vld [vmem:[%s11948_s17 + $0x108] sm:$0xff] }
 0x89b   :  { %8685 = vmatpush3.bf16.msk.msra.mxu0 %vm11638_vm1, %v8663_v23  ;;  %7883 = vmatprep.mubr.msk.f32.mxu0 %vm8895_vm5, %v12056_v44 }
 0x89c   :  { %8692 = vmatprep.subr.bf16.mxu0 %v12055_v25 }
 0x89e   :  { %7884 = vmatmul.mubr.msk.f32.vlgmr.msra.gmra.mrb[92].mxu0 %vm5203_vm2, %v6790_v46  ;;  %v8730_v46 = vpack.c.bf16 %v6836_v38, %v6835_v57 }
 0x89f   :  { %8695 = vmatpush3.bf16.msk.msra.mxu0 %vm11638_vm1, %v8663_v23  ;;  %7903 = vmatprep.mubr.msk.f32.mxu0 %vm8895_vm5, %v12056_v44 }
 0x8a0   :  { %8702 = vmatprep.subr.bf16.mxu0 %v12055_v25 }
 0x8a2   :  { %7904 = vmatmul.mubr.msk.f32.vlgmr.msra.gmra.mrb[94].mxu0 %vm5203_vm2, %v6800_v33  ;;  %v6837_v33 = vld [vmem:[%s11948_s17 + $0x110] sm:$0x7] }
 0x8a3   :  { %8705 = vmatpush3.bf16.msk.msra.mxu0 %vm11638_vm1, %v8663_v23  ;;  %7923 = vmatprep.mubr.msk.f32.mxu0 %vm8895_vm5, %v12056_v44 }
 0x8a4   :  { %8712 = vmatprep.subr.bf16.mxu0 %v12055_v25 }
 0x8a6   :  { %7924 = vmatmul.mubr.msk.f32.vlgmr.msra.gmra.mrb[96].mxu0 %vm5203_vm2, %v6810_v56  ;;  %v6319_v56 = vld [vmem:[%s11950_s19 + $0x10] sm:$0xff] }
 0x8a7   :  { %8715 = vmatpush3.bf16.msk.msra.mxu0 %vm11638_vm1, %v8663_v23  ;;  %7943 = vmatprep.mubr.msk.f32.mxu0 %vm8895_vm5, %v12056_v44 }
 0x8a8   :  { %8722 = vmatprep.subr.bf16.mxu0 %v12055_v25 }
 0x8aa   :  { %7944 = vmatmul.mubr.msk.f32.vlgmr.msra.gmra.mrb[98].mxu0 %vm5203_vm2, %v6820_v15  ;;  %v6320_v15 = vld [vmem:[%s11950_s19 + $0x18] sm:$0xff] }
 0x8ab   :  { %8725 = vmatpush3.bf16.msk.msra.mxu0 %vm11638_vm1, %v8663_v23  ;;  %7963 = vmatprep.mubr.msk.f32.mxu0 %vm8895_vm5, %v12056_v44  ;;  %v8727_v23 = vpack.c.bf16 %v6834_v11, %v6833_v17 }
 0x8ac   :  { %8732 = vmatprep.subr.bf16.mxu0 %v12055_v25 }
 0x8ae   :  { %7964 = vmatmul.mubr.msk.f32.vlgmr.msra.gmra.mrb[100].mxu0 %vm5203_vm2, %v6830_v34  ;;  %v6321_v34 = vld [vmem:[%s11950_s19 + $0x20] sm:$0xff]  ;;  %s6423_s19 = sshll.u32 %s8896_s18, 4  ;;  %s6424_s19 = int_to_ptr.vmem [resolvable:$true] %s6423_s19 }
 0x8af   :  { %7989 = vmatprep.mubr.msk.f32.mxu0 %vm8895_vm5, %v12056_v44  ;;  %8734 = vmatpush3.bf16.msra.mxu0 %v8733_v47  ;;  %p8872_p1 = scmp.lt.s32.totalorder %s6424_s19, %s6424_s19 }
 0x8b0   :  { %8735 = vmatprep.subr.bf16.mxu0 %v12055_v25 }
 0x969   :  { %v5276_v21 = vpop.f32.mrb[88].mxu0 }
 0x96a   :  { %v7845_v28 = vpop.f32.mrb[89].mxu0  ;;  %7857 = vmatmul.mubr.msk.f32.vlgmr.msra.gmra.mrb[68].mxu1 %vm4169_vm10, %v5276_v21 }
 0x96b   :  { %8678 = vmatpush3.bf16.msra.mxu1 %v8677_v20  ;;  %7876 = vmatprep.mubr.msk.f32.mxu1 %vm8895_vm5, %v12056_v44  ;;  %v6840_v20 = vld [vmem:[%s11951_s20] ss:$0 sm:$0xff]  ;;  %s8867_s20 = scalar_lea.vmem %s6424_s19, 32 }
 0x96c   :  { %8679 = vmatprep.subr.bf16.mxu1 %v12055_v25  ;;  %p8868_p0 = scmp.ne.s32.totalorder %s6424_s19, %s8867_s20  ;;  %p8873_p2 = scmp.lt.s32.totalorder %s8867_s20, %s8867_s20 }
 0x96d   :  { %v5439_v49 = vpop.f32.mrb[90].mxu0 }
 0x96e   :  { %v7865_v9 = vpop.f32.mrb[91].mxu0  ;;  %p8874_p3 = por %p8873_p2, %p8872_p1 }
 0x96f   :  { %8681 = vmatpush3.bf16.msra.mxu1 %v8680_v31 }
 0x970   :  { %7874 = vmatprep.subr.mxu1 %v12056_v44  ;;  %p8875_p4 = pnand %p8874_p3, %p8868_p0 }
 0x971   :  { %v5597_v62 = vpop.f32.mrb[92].mxu0 }
 0x972   :  { %v7885_v14 = vpop.f32.mrb[93].mxu0 }
 0x973   :  { %7875 = vmatpush3.msk.msra.mxu1 %vm4192_vm8, %v6787_v18 }
 0x974   :  { %8686 = vmatprep.subr.bf16.mxu1 %v12055_v25  ;;  %7877 = vmatmul.mubr.msk.f32.vlgmr.msra.gmra.mrb[68].mxu1 %vm4169_vm10, %v5439_v49 }
 0x975   :  { %8688 = vmatpush3.bf16.msra.mxu1 %v8687_v24  ;;  %7896 = vmatprep.mubr.msk.f32.mxu1 %vm8895_vm5, %v12056_v44  ;;  %v5755_v48 = vpop.f32.mrb[94].mxu0 }
 0x976   :  { %8689 = vmatprep.subr.bf16.mxu1 %v12055_v25  ;;  %v7905_v30 = vpop.f32.mrb[95].mxu0 }
 0x979   :  { %8691 = vmatpush3.bf16.msra.mxu1 %v8690_v51  ;;  %v5913_v6 = vpop.f32.mrb[96].mxu0 }
 0x97a   :  { %7894 = vmatprep.subr.mxu1 %v12056_v44  ;;  %v7925_v26 = vpop.f32.mrb[97].mxu0 }
 0x97d   :  { %7895 = vmatpush3.msk.msra.mxu1 %vm4192_vm8, %v6797_v55  ;;  %v6071_v50 = vpop.f32.mrb[98].mxu0 }
 0x97e   :  { %8696 = vmatprep.subr.bf16.mxu1 %v12055_v25  ;;  %7897 = vmatmul.mubr.msk.f32.vlgmr.msra.gmra.mrb[68].mxu1 %vm4169_vm10, %v5597_v62  ;;  %v7945_v61 = vpop.f32.mrb[99].mxu0 }
 0x97f   :  { %8698 = vmatpush3.bf16.msra.mxu1 %v8697_v8  ;;  %7916 = vmatprep.mubr.msk.f32.mxu1 %vm8895_vm5, %v12056_v44 }
 0x980   :  { %8699 = vmatprep.subr.bf16.mxu1 %v12055_v25 }
 0x981   :  { %v6229_v52 = vpop.f32.mrb[100].mxu0 }
 0x982   :  { %v7965_v22 = vpop.f32.mrb[101].mxu0 }
 0x983   :  { %8701 = vmatpush3.bf16.msra.mxu1 %v8700_v19 }
 0x984   :  { %7914 = vmatprep.subr.mxu1 %v12056_v44 }
 0x987   :  { %7915 = vmatpush3.msk.msra.mxu1 %vm4192_vm8, %v6807_v2 }
 0x988   :  { %8706 = vmatprep.subr.bf16.mxu1 %v12055_v25  ;;  %7917 = vmatmul.mubr.msk.f32.vlgmr.msra.gmra.mrb[68].mxu1 %vm4169_vm10, %v5755_v48 }
 0x989   :  { %8708 = vmatpush3.bf16.msra.mxu1 %v8707_v0  ;;  %7936 = vmatprep.mubr.msk.f32.mxu1 %vm8895_vm5, %v12056_v44 }
 0x98a   :  { %8709 = vmatprep.subr.bf16.mxu1 %v12055_v25 }
 0x98d   :  { %8711 = vmatpush3.bf16.msra.mxu1 %v8710_v29 }
 0x98e   :  { %7934 = vmatprep.subr.mxu1 %v12056_v44 }
 0x991   :  { %7935 = vmatpush3.msk.msra.mxu1 %vm4192_vm8, %v6817_v7 }
 0x992   :  { %8716 = vmatprep.subr.bf16.mxu1 %v12055_v25  ;;  %7937 = vmatmul.mubr.msk.f32.vlgmr.msra.gmra.mrb[68].mxu1 %vm4169_vm10, %v5913_v6 }
 0x993   :  { %8718 = vmatpush3.bf16.msra.mxu1 %v8717_v27  ;;  %7956 = vmatprep.mubr.msk.f32.mxu1 %vm8895_vm5, %v12056_v44 }
 0x994   :  { %8719 = vmatprep.subr.bf16.mxu1 %v12055_v25 }
 0x997   :  { %8721 = vmatpush3.bf16.msra.mxu1 %v8720_v42 }
 0x998   :  { %7954 = vmatprep.subr.mxu1 %v12056_v44 }
 0x99b   :  { %7955 = vmatpush3.msk.msra.mxu1 %vm4192_vm8, %v6827_v53 }
 0x99c   :  { %8726 = vmatprep.subr.bf16.mxu1 %v12055_v25  ;;  %7957 = vmatmul.mubr.msk.f32.vlgmr.msra.gmra.mrb[68].mxu1 %vm4169_vm10, %v6071_v50 }
 0x99d   :  { %8728 = vmatpush3.bf16.msra.mxu1 %v8727_v23  ;;  %7976 = vmatprep.mubr.msk.f32.mxu1 %vm8895_vm5, %v12056_v44 }
 0x99e   :  { %8729 = vmatprep.subr.bf16.mxu1 %v12055_v25  ;;  %v8736_v25 = vpack.c.bf16 %v6320_v15, %v6319_v56 }
 0x9a0   :  { %8737 = vmatpush3.bf16.msra.mxu0 %v8736_v25 }
 0x9a1   :  { %8731 = vmatpush3.bf16.msra.mxu1 %v8730_v46  ;;  %7987 = vmatprep.subr.mxu0 %v12056_v44 }
 0x9a2   :  { %7974 = vmatprep.subr.mxu1 %v12056_v44 }
 0x9a4   :  { %7988 = vmatpush3.msra.mxu0 %v6321_v34 }
 0x9a5   :  { %7975 = vmatpush3.msk.msra.mxu1 %vm4192_vm8, %v6837_v33 }
 0x9a6   :  { %7977 = vmatmul.mubr.msk.f32.vlgmr.msra.gmra.mrb[68].mxu1 %vm4169_vm10, %v6229_v52 }
 0xa79   :  { %v6311_v13 = vpop.f32.mrb[68].mxu1 }
 0xa7a   :  { %v8738_v47 = vadd.f32 %v6779_v5, %v6311_v13  ;;  %v7978_v12 = vpop.f32.mrb[69].mxu1 }
 0xa7c   :  { %v6316_v41 = vmax.f32 %v8738_v47, 0.0 }
 0xa7e   :  { %7990 = vmatmul.mubr.msk.f32.vlgmr.msra.gmra.mrb[102].mxu0 %vm4149_vm9, %v6316_v41 }
 0xb51   :  { %v6398_v44 = vpop.f32.mrb[102].mxu0 }
 0xb52   :  { %v6399_v54 = vadd.f32 %v6840_v20, %v6398_v44  ;;  %v7991_v58 = vpop.f32.mrb[103].mxu0 }
 0xb54   :  { %v6403_v21 = vsel %vm6402_vm3, %v6399_v54, -inf }
 0xb55   :  { %6404 = vmax.xlane.f32.xlu0 %v6403_v21 }
 0xbe2   :  { %v6405_v28 = vpop.xlane.xlu0 %6404 }
 0xbe3   :  { %v6406_v31 = vsub.f32 %v6399_v54, %v6405_v28 }
 0xbe5   :  { %v6407_v49 = vmul.f32 1.442695, %v6406_v31 }
 0xbe7   :  { %8863 = vpow2.f32 %v6407_v49 }
 0xbf1   :  { %v8864_v9 = vpop.eup %8863 }
 0xbf2   :  { %v6409_v39 = vsel %vm6402_vm3, %v8864_v9, 0.0 }
 0xbf3   :  { %6410 = vadd.xlane.f32.xlu1 %v6409_v39 }
 0xc80   :  { %v6411_v3 = vpop.xlane.xlu1 %6410 }
 0xc81   :  { %8865 = vlog2.f32 %v6411_v3 }
 0xc8b   :  { %v8866_v18 = vpop.eup %8865 }
 0xc8c   :  { %v6413_v24 = vmul.f32 0.6931472, %v8866_v18 }
 0xc8e   :  { %v6414_v62 = vadd.f32 %v6413_v24, %v6405_v28 }
 0xc90   :  { %v6415_v32 = vsub.f32 %v6399_v54, %v6414_v62 }
 0xc92   :  { %6416 = vst.msk [vmem:[#allocation2] sm:$0x3] %vm6402_vm3, %v6415_v32 }
 0xc93   :  { %8878 = shalt.err (!%p8875_p4)
}
 0xc94   :  { %s8879_s28 = scalar_lea.hbm %s11952_s21, 32 }
 0xc95   :  { %p8880_p5 = scmp.ne.s32.totalorder %s11952_s21, %s8879_s28  ;;  %p8883_p6 = scmp.lt.u32.totalorder %s8879_s28, %s11952_s21 }
 0xc97   :  { %p8885_p7 = pnand %p8883_p6, %p8880_p5 }
 0xc99   :  { %8888 = shalt.err (!%p8885_p7)
}
 0xc9a   :  { %6426 = dma.vmem_to_hbm [thread:$0]  %s6424_s19, 32, %s11952_s21, [#allocation3]  }
 0xc9b   :  { %8889 = dma.done.wait [#allocation3], 32  }
 0xc9c   :  { %8890 = vsyncadd [#allocation3], 4294967264 }
 0xc9d   :  { %6430 = vsyncpa [#allocation3], 1 }

</bundles_post_ra>
